<compile_context>
chip_gen: v6e
topology: v6e:2x2x1
jax: 0.10.0
libtpu: 0.0.40
codegen_flags: <defaults>
</compile_context>

<pallas_src>
import functools
import math

import jax
import jax.numpy as jnp
from jax import lax
from jax.experimental import pallas as pl
from jax.experimental.pallas import tpu as pltpu


def _token_tile(M, pref=256, min_grid=2):
    """Pick a token tile dividing M; prefer >=2 blocks so both v7x TCs get work."""
    assert M % 8 == 0
    tm = min(pref, M)
    while M % tm:
        tm //= 2
    if M // tm < min_grid and M % 2 == 0 and (M // 2) % 8 == 0:
        tm = M // 2
    return max(tm, 8)


# ----------------------- fused LayerNorm + Linear ---------------------------

def _ln_matmul_kernel(x_ref, g_ref, b_ref, w_ref, bias_ref, o_ref):
    x = x_ref[...]                                       # (tm, C) f32
    mu = jnp.mean(x, axis=-1, keepdims=True)
    var = jnp.mean(jnp.square(x - mu), axis=-1, keepdims=True)
    xn = (x - mu) * lax.rsqrt(var + 1e-5) * g_ref[...] + b_ref[...]
    y = jnp.dot(xn.astype(jnp.bfloat16), w_ref[...],    # bf16 weights, f32 acc
                preferred_element_type=jnp.float32) + bias_ref[...]
    o_ref[...] = y.astype(o_ref.dtype)


def pallas_ln_matmul(x2d, gamma, beta, w, b, *, out_dtype=jnp.float32, tm=256):
    """LayerNorm(x) @ w + b.  Grid is over token blocks only; the full output
    width N lives in one block so LN statistics are computed exactly once per
    token block (no per-column-tile recompute).
    # TODO(synk): for very large C/N, tile N and cache xn in a VMEM scratch at
    #             j == 0 (j axis 'arbitrary'), and set vmem_limit_bytes (v5e)."""
    M, C = x2d.shape
    _, N = w.shape
    tm = _token_tile(M, tm)
    return pl.pallas_call(
        _ln_matmul_kernel,
        grid=(M // tm,),
        in_specs=[
            pl.BlockSpec((tm, C), lambda i: (i, 0)),
            pl.BlockSpec((1, C), lambda i: (0, 0)),
            pl.BlockSpec((1, C), lambda i: (0, 0)),
            pl.BlockSpec((C, N), lambda i: (0, 0)),
            pl.BlockSpec((1, N), lambda i: (0, 0)),
        ],
        out_specs=pl.BlockSpec((tm, N), lambda i: (i, 0)),
        out_shape=jax.ShapeDtypeStruct((M, N), out_dtype),
        compiler_params=pltpu.CompilerParams(
            dimension_semantics=("parallel",)),
    )(x2d, gamma.reshape(1, C), beta.reshape(1, C), w, b.reshape(1, N))


# ------------- fused LayerNorm + router (lane-dense logits) -----------------

def _ln_router_kernel(x_ref, g_ref, b_ref, w_ref, bias_ref, ln_ref, logit_ref):
    x = x_ref[...]
    mu = jnp.mean(x, axis=-1, keepdims=True)
    var = jnp.mean(jnp.square(x - mu), axis=-1, keepdims=True)
    xn = (x - mu) * lax.rsqrt(var + 1e-5) * g_ref[...] + b_ref[...]
    ln_ref[...] = xn                                     # moe_in (expert input)
    logit_ref[...] = (jnp.dot(xn.astype(jnp.bfloat16), w_ref[...],
                              preferred_element_type=jnp.float32) + bias_ref[...])


def pallas_ln_router(x2d, gamma, beta, w_pad, b_pad, *, tm=256):
    """ln2 + fused (router || noise) projection.  The logit output is padded to a
    lane-dense width (>=128 cols) so the store is an unmasked full-lane vst; the
    real 2E columns are sliced back out in JAX."""
    M, C = x2d.shape
    _, NP = w_pad.shape
    tm = _token_tile(M, tm)
    return pl.pallas_call(
        _ln_router_kernel,
        grid=(M // tm,),
        in_specs=[
            pl.BlockSpec((tm, C), lambda i: (i, 0)),
            pl.BlockSpec((1, C), lambda i: (0, 0)),
            pl.BlockSpec((1, C), lambda i: (0, 0)),
            pl.BlockSpec((C, NP), lambda i: (0, 0)),
            pl.BlockSpec((1, NP), lambda i: (0, 0)),
        ],
        out_specs=(
            pl.BlockSpec((tm, C), lambda i: (i, 0)),
            pl.BlockSpec((tm, NP), lambda i: (i, 0)),
        ),
        out_shape=(
            jax.ShapeDtypeStruct((M, C), jnp.float32),
            jax.ShapeDtypeStruct((M, NP), jnp.float32),
        ),
        compiler_params=pltpu.CompilerParams(
            dimension_semantics=("parallel",)),
    )(x2d, gamma.reshape(1, C), beta.reshape(1, C), w_pad, b_pad.reshape(1, NP))


# ------------------ general tiled matmul (+bias, no scratch) ----------------

def _matmul_bias_kernel(x_ref, w_ref, b_ref, o_ref):
    x = x_ref[...]
    if x.dtype != jnp.bfloat16:
        x = x.astype(jnp.bfloat16)
    part = jnp.dot(x, w_ref[...], preferred_element_type=jnp.float32)
    k = pl.program_id(2)

    @pl.when(k == 0)
    def _():
        o_ref[...] = part + b_ref[...]          # bias folded in at first k-step

    @pl.when(k != 0)
    def _():
        o_ref[...] += part                      # f32 output block IS the accumulator


def pallas_matmul(x2d, w, b, *, tm=256, tn=256, tk=512):
    """x @ w + b.  The resident f32 output block doubles as the K-reduction
    accumulator (no VMEM scratch, no final copy)."""
    M, K = x2d.shape
    _, N = w.shape
    tm = _token_tile(M, tm)
    tn, tk = min(tn, N), min(tk, K)
    assert N % tn == 0 and K % tk == 0
    return pl.pallas_call(
        _matmul_bias_kernel,
        grid=(M // tm, N // tn, K // tk),
        in_specs=[
            pl.BlockSpec((tm, tk), lambda i, j, k: (i, k)),
            pl.BlockSpec((tk, tn), lambda i, j, k: (k, j)),
            pl.BlockSpec((1, tn), lambda i, j, k: (0, j)),
        ],
        out_specs=pl.BlockSpec((tm, tn), lambda i, j, k: (i, j)),
        out_shape=jax.ShapeDtypeStruct((M, N), jnp.float32),
        compiler_params=pltpu.CompilerParams(
            dimension_semantics=("parallel", "parallel", "arbitrary")),
    )(x2d, w, b.reshape(1, N))


# ----------------------------- causal attention ------------------------------

def _attn_kernel(q_ref, k_ref, v_ref, o_ref, *, n_head):
    T, C = q_ref.shape
    D = C // n_head
    scale = 1.0 / math.sqrt(D)
    # single broadcast causal mask (two thin iotas, no (T,T) i32 slabs)
    row = lax.broadcasted_iota(jnp.int32, (T, 1), 0)
    col = lax.broadcasted_iota(jnp.int32, (1, T), 1)
    causal = col <= row
    for h in range(n_head):                               # static unroll over heads
        sl = pl.ds(h * D, D)
        q = q_ref[:, sl]                                  # bf16, lane-aligned (D%128==0)
        k = k_ref[:, sl]
        v = v_ref[:, sl]
        s = lax.dot_general(q, k, (((1,), (1,)), ((), ())),
                            preferred_element_type=jnp.float32) * scale
        s = jnp.where(causal, s, -jnp.inf)
        s = s - jnp.max(s, axis=-1, keepdims=True)
        p = jnp.exp(s)
        # TODO(synk): approx reciprocal; set approx=False for bit-level softmax parity.
        p = p * pl.reciprocal(jnp.sum(p, axis=-1, keepdims=True), approx=True)
        ctx = lax.dot_general(p.astype(jnp.bfloat16), v, (((1,), (0,)), ((), ())),
                              preferred_element_type=jnp.float32)
        o_ref[:, sl] = ctx.astype(o_ref.dtype)


def pallas_causal_attention(qkv, B, T, n_head, n_embed):
    """qkv: (B*T, 3C) bf16.  One grid step per batch handles ALL heads (fewer
    grid-step overheads, better MXU utilisation than per-(b,h) steps) and writes
    the context directly in (token, head*dim) bf16 layout for the out-projection.
    # TODO(synk): switch to KV-tiled online-softmax (flash pattern) once T grows;
    #             the (T,T) score tile is fine at T=32 but scales quadratically."""
    C, H = n_embed, n_head
    D = C // H
    assert C % H == 0 and D % 128 == 0, \
        "head_dim must be a multiple of 128 for lane-aligned head slicing"
    assert T % 8 == 0
    kern = functools.partial(_attn_kernel, n_head=H)
    return pl.pallas_call(
        kern,
        grid=(B,),
        in_specs=[
            pl.BlockSpec((T, C), lambda b: (b, 0)),       # Q slab (all heads)
            pl.BlockSpec((T, C), lambda b: (b, 1)),       # K slab
            pl.BlockSpec((T, C), lambda b: (b, 2)),       # V slab
        ],
        out_specs=pl.BlockSpec((T, C), lambda b: (b, 0)),
        out_shape=jax.ShapeDtypeStruct((B * T, C), jnp.bfloat16),
        compiler_params=pltpu.CompilerParams(
            dimension_semantics=("parallel",)),
    )(qkv, qkv, qkv)


# ----------- grouped expert FFN with fused token gather + H tiling -----------

def pallas_grouped_expert_ffn(gather_idx, moe_in, w1, b1, w2, b2, *, th=512):
    """Expert FFN over capacity-limited, pre-routed tokens.

    gather_idx: (E, cap) int32 token ids per expert (empty slots -> 0; their
    contribution is zeroed by a 0 gate downstream).  The gather is fused: the
    ids arrive via scalar prefetch (SMEM) and token rows are DMA'd HBM->VMEM
    inside the kernel, so no (E, cap, C) slab ever round-trips through HBM.
    The hidden dim H = 4C is tiled with the f32 output block as accumulator.
    # TODO(synk): prefetch expert e+1's tokens during expert e's compute, and
    #             pack multiple experts' slabs when capacity is tiny."""
    E, cap = gather_idx.shape
    N, C = moe_in.shape
    H = w1.shape[-1]
    th = min(th, H)
    assert H % th == 0 and cap % 8 == 0
    nH = H // th

    def kernel(gidx_ref, x_hbm, w1_ref, b1_ref, w2_ref, b2_ref, o_ref, xg, sems):
        e = pl.program_id(0)
        hk = pl.program_id(1)

        @pl.when(hk == 0)
        def _():
            # Fused gather: start all row DMAs, then one wait pass.
            for r in range(cap):
                pltpu.make_async_copy(
                    x_hbm.at[pl.ds(gidx_ref[e, r], 1)],
                    xg.at[pl.ds(r, 1)], sems.at[r]).start()
            for r in range(cap):
                pltpu.make_async_copy(
                    x_hbm.at[pl.ds(0, 1)],
                    xg.at[pl.ds(r, 1)], sems.at[r]).wait()

        x = xg[...].astype(jnp.bfloat16)                            # (cap, C)
        h = jnp.dot(x, w1_ref[0], preferred_element_type=jnp.float32) + b1_ref[0]
        h = jnp.maximum(h, 0.0).astype(jnp.bfloat16)                # ReLU
        # TODO(synk): Expert's nn.Dropout(0.2) is identity in eval mode.
        part = jnp.dot(h, w2_ref[0], preferred_element_type=jnp.float32)

        @pl.when(hk == 0)
        def _():
            o_ref[0] = part + b2_ref[0]

        @pl.when(hk != 0)
        def _():
            o_ref[0] += part

    return pl.pallas_call(
        kernel,
        grid_spec=pltpu.PrefetchScalarGridSpec(
            num_scalar_prefetch=1,
            grid=(E, nH),
            in_specs=[
                pl.BlockSpec(memory_space=pl.ANY),                       # moe_in (HBM)
                pl.BlockSpec((1, C, th), lambda e, h, gidx: (e, 0, h)),  # w1 H-tile
                pl.BlockSpec((1, 1, th), lambda e, h, gidx: (e, 0, h)),  # b1 H-tile
                pl.BlockSpec((1, th, C), lambda e, h, gidx: (e, h, 0)),  # w2 H-tile
                pl.BlockSpec((1, 1, C), lambda e, h, gidx: (e, 0, 0)),   # b2
            ],
            out_specs=pl.BlockSpec((1, cap, C), lambda e, h, gidx: (e, 0, 0)),
            scratch_shapes=[
                pltpu.VMEM((cap, C), moe_in.dtype),                      # gathered tokens
                pltpu.SemaphoreType.DMA((cap,)),
            ],
        ),
        out_shape=jax.ShapeDtypeStruct((E, cap, C), jnp.float32),
        compiler_params=pltpu.CompilerParams(
            dimension_semantics=("parallel", "arbitrary")),
    )(gather_idx, moe_in, w1, b1, w2, b2)


# ------------------------------ model pieces ---------------------------------

def causal_self_attention(x2d, p, cfg, B, T):
    qkv = pallas_ln_matmul(x2d, p["ln1_g"], p["ln1_b"], p["w_attn"], p["b_attn"],
                           out_dtype=jnp.bfloat16)       # bf16 intermediate slab
    ctx = pallas_causal_attention(qkv, B, T, cfg["n_head"], cfg["n_embed"])
    return pallas_matmul(ctx, p["w_proj"], p["b_proj"])  # f32 out for residual add


def sparse_moe(x2d, p, cfg, key):
    N, C = x2d.shape
    E, K = cfg["num_experts"], cfg["top_k"]

    # fused ln2 + (router || noise) projection; logits slab is lane-dense padded
    moe_in, logits_pad = pallas_ln_router(x2d, p["ln2_g"], p["ln2_b"],
                                          p["w_router"], p["b_router"])
    logits, noise_logits = logits_pad[:, :E], logits_pad[:, E:2 * E]
    noise_std = jax.nn.softplus(noise_logits)
    # TODO(synk): torch.randn_like uses PyTorch's RNG stream; reproduced with a
    # deterministic JAX PRNG (same distribution, different bits).
    noise = jax.random.normal(key, (N, E), dtype=jnp.float32) * noise_std
    noisy = logits + noise

    _, topi = lax.top_k(noisy, K)                                     # (N, K)
    expert_ids = jnp.arange(E, dtype=topi.dtype)
    sel_mask = jnp.any(topi[:, :, None] == expert_ids[None, None, :], axis=1)
    sparse_logits = jnp.where(sel_mask, noisy, -jnp.inf)
    gates = jax.nn.softmax(sparse_logits, axis=-1)                    # (N, E)

    lb_loss = jnp.mean(jnp.square(jnp.mean(gates, axis=0) - 1.0 / E))

    capacity = max(int(N * K / E * cfg["capacity_factor"]), 1)
    cap_pad = max(8, ((capacity + 7) // 8) * 8)          # sublane-aligned capacity

    # first-`capacity` tokens per expert in flat token order (== torch reference)
    pos = jnp.cumsum(sel_mask.astype(jnp.int32), axis=0) - 1          # (N, E)
    keep = sel_mask & (pos < capacity)
    slot = jnp.where(keep, pos, cap_pad).astype(jnp.int32)
    t_idx = jnp.broadcast_to(jnp.arange(N, dtype=jnp.int32)[:, None], (N, E))
    e_idx = jnp.broadcast_to(jnp.arange(E, dtype=jnp.int32)[None, :], (N, E))
    # empty slots -> token 0 with gate 0 (contribution is exactly zero)
    gather_idx = jnp.zeros((E, cap_pad + 1), jnp.int32).at[e_idx, slot].set(t_idx)[:, :cap_pad]
    gate_slab = jnp.zeros((E, cap_pad + 1), jnp.float32).at[e_idx, slot].set(gates)[:, :cap_pad]

    eo = pallas_grouped_expert_ffn(gather_idx, moe_in,
                                   p["w1"], p["b1"], p["w2"], p["b2"])
    weighted = eo * gate_slab[:, :, None]
    upd = jnp.zeros((N, C), jnp.float32).at[gather_idx.reshape(-1)].add(
        weighted.reshape(E * cap_pad, C))
    return upd, cfg["moe_lb_weight"] * lb_loss


def block_forward(params, x, key, cfg):
    B, T, C = x.shape
    x2 = x.reshape(B * T, C)
    x2 = x2 + causal_self_attention(x2, params, cfg, B, T)
    moe_out, moe_loss = sparse_moe(x2, params, cfg, key)
    x2 = x2 + moe_out
    return x2.reshape(B, T, C), moe_loss


# --------------------------------- init --------------------------------------

def init_block_params(key, cfg):
    C = cfg["n_embed"]
    E = cfg["num_experts"]
    Hd = 4 * C
    router_pad = max(128, ((2 * E + 127) // 128) * 128)  # lane-dense logit slab
    std = 0.02
    proj_std = 0.02 / math.sqrt(2 * cfg["n_layer"])
    ks = jax.random.split(key, 5)

    def nrm(k, shape, s=std, dtype=jnp.bfloat16):
        return (s * jax.random.normal(k, shape, dtype=jnp.float32)).astype(dtype)

    w_router = jnp.zeros((C, router_pad), jnp.bfloat16)
    w_router = w_router.at[:, :2 * E].set(nrm(ks[2], (C, 2 * E)))

    return {
        "ln1_g": jnp.ones((C,), jnp.float32), "ln1_b": jnp.zeros((C,), jnp.float32),
        "ln2_g": jnp.ones((C,), jnp.float32), "ln2_b": jnp.zeros((C,), jnp.float32),
        # matmul weights stored in bf16 (MXU-native, halves HBM/VMEM traffic)
        "w_attn": nrm(ks[0], (C, 3 * C)),
        "b_attn": jnp.zeros((3 * C,), jnp.float32),
        "w_proj": nrm(ks[1], (C, C), proj_std),
        "b_proj": jnp.zeros((C,), jnp.float32),
        # router + noise linears fused and zero-padded to a lane-dense width
        "w_router": w_router,
        "b_router": jnp.zeros((router_pad,), jnp.float32),
        # expert weights stacked per expert
        "w1": nrm(ks[3], (E, C, Hd)),
        "b1": jnp.zeros((E, 1, Hd), jnp.float32),
        "w2": nrm(ks[4], (E, Hd, C)),
        "b2": jnp.zeros((E, 1, C), jnp.float32),
    }


# --------------------------------- main ---------------------------------------

if __name__ == "__main__":
    cfg = dict(
        block_size=32,
        n_layer=6,           # only used for c_proj init scale
        n_head=2,            # head_dim = 128 (lane-aligned head slicing)
        n_embed=256,
        num_experts=8,
        top_k=2,
        capacity_factor=1.0,
        moe_lb_weight=0.01,
    )

    root = jax.random.PRNGKey(0)
    k_params, k_x, k_noise = jax.random.split(root, 3)
    params = init_block_params(k_params, cfg)

    B, T, C = 2, 32, cfg["n_embed"]
    x = jax.random.normal(k_x, (B, T, C), dtype=jnp.float32)

    fwd = jax.jit(lambda p, xx, kk: block_forward(p, xx, kk, cfg))
    y, moe_loss = fwd(params, x, k_noise)
    jax.block_until_ready(y)
    jax.block_until_ready(moe_loss)

    assert y.shape == (B, T, C)
    assert bool(jnp.isfinite(y).all())
    assert bool(jnp.isfinite(moe_loss))
    print("KERNEL_OK")
</pallas_src>

<mosaic_0001>
module attributes {stable_mosaic.version = 11 : i64} {
  func.func @_attn_kernel(%arg0: i32, %arg1: memref<32x256xbf16, #tpu.memory_space<vmem>>, %arg2: memref<32x256xbf16, #tpu.memory_space<vmem>>, %arg3: memref<32x256xbf16, #tpu.memory_space<vmem>>, %arg4: memref<32x256xbf16, #tpu.memory_space<vmem>>) attributes {dimension_semantics = [#tpu.dimension_semantics<parallel>], iteration_bounds = array<i64: 2>, scalar_prefetch = 0 : i64, scratch_operands = 0 : i64, tpu.core_type = #tpu.core_type<tc>, window_params = [{transform_indices = @transform_0, window_bounds = array<i64: 32, 256>}, {transform_indices = @transform_1, window_bounds = array<i64: 32, 256>}, {transform_indices = @transform_2, window_bounds = array<i64: 32, 256>}, {transform_indices = @transform_3, window_bounds = array<i64: 32, 256>}]} {
    %0 = tpu.iota {dimensions = array<i32: 0>} : vector<32x1xi32>
    %1 = tpu.iota {dimensions = array<i32: 1>} : vector<1x32xi32>
    %2 = vector.broadcast %1 : vector<1x32xi32> to vector<32x32xi32>
    %3 = vector.broadcast %0 : vector<32x1xi32> to vector<32x32xi32>
    %4 = arith.cmpi sle, %2, %3 : vector<32x32xi32>
    %c0 = arith.constant 0 : index
    %c0_0 = arith.constant 0 : index
    %5 = vector.load %arg1[%c0, %c0_0] : memref<32x256xbf16, #tpu.memory_space<vmem>>, vector<32x128xbf16>
    %c0_1 = arith.constant 0 : index
    %c0_2 = arith.constant 0 : index
    %6 = vector.load %arg2[%c0_1, %c0_2] : memref<32x256xbf16, #tpu.memory_space<vmem>>, vector<32x128xbf16>
    %c0_3 = arith.constant 0 : index
    %c0_4 = arith.constant 0 : index
    %7 = vector.load %arg3[%c0_3, %c0_4] : memref<32x256xbf16, #tpu.memory_space<vmem>>, vector<32x128xbf16>
    %cst = arith.constant dense<0.000000e+00> : vector<32x32xf32>
    %8 = tpu.matmul %5, %6, %cst {dimension_numbers = #tpu.dot_dimension_numbers<[1], [1], [0], [0], [0, 0, 1, 0], [], []>} : vector<32x128xbf16>, vector<32x128xbf16>, vector<32x32xf32> -> vector<32x32xf32>
    %cst_5 = arith.constant 0.0883883461 : f32
    %9 = vector.broadcast %cst_5 : f32 to vector<32x32xf32>
    %10 = arith.mulf %8, %9 : vector<32x32xf32>
    %cst_6 = arith.constant 0xFF800000 : f32
    %11 = vector.broadcast %cst_6 : f32 to vector<32x32xf32>
    %12 = arith.select %4, %10, %11 : vector<32x32xi1>, vector<32x32xf32>
    %cst_7 = arith.constant dense<0xFF800000> : vector<32xf32>
    %13 = vector.multi_reduction <maximumf>, %12, %cst_7 [1] : vector<32x32xf32> to vector<32xf32>
    %14 = vector.shape_cast %13 : vector<32xf32> to vector<32x1xf32>
    %15 = vector.broadcast %14 : vector<32x1xf32> to vector<32x32xf32>
    %16 = arith.subf %12, %15 : vector<32x32xf32>
    %17 = math.exp %16 : vector<32x32xf32>
    %cst_8 = arith.constant dense<0.000000e+00> : vector<32xf32>
    %18 = vector.multi_reduction <add>, %17, %cst_8 [1] : vector<32x32xf32> to vector<32xf32>
    %19 = vector.shape_cast %18 : vector<32xf32> to vector<32x1xf32>
    %20 = tpu.reciprocal %19 {approx = true} : vector<32x1xf32> -> vector<32x1xf32>
    %21 = vector.broadcast %20 : vector<32x1xf32> to vector<32x32xf32>
    %22 = arith.mulf %17, %21 : vector<32x32xf32>
    %23 = arith.truncf %22 : vector<32x32xf32> to vector<32x32xbf16>
    %cst_9 = arith.constant dense<0.000000e+00> : vector<32x128xf32>
    %24 = tpu.matmul %23, %7, %cst_9 {dimension_numbers = #tpu.dot_dimension_numbers<[1], [0], [0], [1], [0, 0, 1, 1], [], []>} : vector<32x32xbf16>, vector<32x128xbf16>, vector<32x128xf32> -> vector<32x128xf32>
    %25 = arith.truncf %24 : vector<32x128xf32> to vector<32x128xbf16>
    %c0_10 = arith.constant 0 : index
    %c0_11 = arith.constant 0 : index
    %26 = vector.load %arg4[%c0_10, %c0_11] : memref<32x256xbf16, #tpu.memory_space<vmem>>, vector<32x128xbf16>
    tpu.vector_store %arg4[%c0_10, %c0_11], %25 {strides = array<i32>} : memref<32x256xbf16, #tpu.memory_space<vmem>>, vector<32x128xbf16>,
    %c0_12 = arith.constant 0 : index
    %c128 = arith.constant 128 : index
    %27 = vector.load %arg1[%c0_12, %c128] : memref<32x256xbf16, #tpu.memory_space<vmem>>, vector<32x128xbf16>
    %c0_13 = arith.constant 0 : index
    %c128_14 = arith.constant 128 : index
    %28 = vector.load %arg2[%c0_13, %c128_14] : memref<32x256xbf16, #tpu.memory_space<vmem>>, vector<32x128xbf16>
    %c0_15 = arith.constant 0 : index
    %c128_16 = arith.constant 128 : index
    %29 = vector.load %arg3[%c0_15, %c128_16] : memref<32x256xbf16, #tpu.memory_space<vmem>>, vector<32x128xbf16>
    %cst_17 = arith.constant dense<0.000000e+00> : vector<32x32xf32>
    %30 = tpu.matmul %27, %28, %cst_17 {dimension_numbers = #tpu.dot_dimension_numbers<[1], [1], [0], [0], [0, 0, 1, 0], [], []>} : vector<32x128xbf16>, vector<32x128xbf16>, vector<32x32xf32> -> vector<32x32xf32>
    %cst_18 = arith.constant 0.0883883461 : f32
    %31 = vector.broadcast %cst_18 : f32 to vector<32x32xf32>
    %32 = arith.mulf %30, %31 : vector<32x32xf32>
    %cst_19 = arith.constant 0xFF800000 : f32
    %33 = vector.broadcast %cst_19 : f32 to vector<32x32xf32>
    %34 = arith.select %4, %32, %33 : vector<32x32xi1>, vector<32x32xf32>
    %cst_20 = arith.constant dense<0xFF800000> : vector<32xf32>
    %35 = vector.multi_reduction <maximumf>, %34, %cst_20 [1] : vector<32x32xf32> to vector<32xf32>
    %36 = vector.shape_cast %35 : vector<32xf32> to vector<32x1xf32>
    %37 = vector.broadcast %36 : vector<32x1xf32> to vector<32x32xf32>
    %38 = arith.subf %34, %37 : vector<32x32xf32>
    %39 = math.exp %38 : vector<32x32xf32>
    %cst_21 = arith.constant dense<0.000000e+00> : vector<32xf32>
    %40 = vector.multi_reduction <add>, %39, %cst_21 [1] : vector<32x32xf32> to vector<32xf32>
    %41 = vector.shape_cast %40 : vector<32xf32> to vector<32x1xf32>
    %42 = tpu.reciprocal %41 {approx = true} : vector<32x1xf32> -> vector<32x1xf32>
    %43 = vector.broadcast %42 : vector<32x1xf32> to vector<32x32xf32>
    %44 = arith.mulf %39, %43 : vector<32x32xf32>
    %45 = arith.truncf %44 : vector<32x32xf32> to vector<32x32xbf16>
    %cst_22 = arith.constant dense<0.000000e+00> : vector<32x128xf32>
    %46 = tpu.matmul %45, %29, %cst_22 {dimension_numbers = #tpu.dot_dimension_numbers<[1], [0], [0], [1], [0, 0, 1, 1], [], []>} : vector<32x32xbf16>, vector<32x128xbf16>, vector<32x128xf32> -> vector<32x128xf32>
    %47 = arith.truncf %46 : vector<32x128xf32> to vector<32x128xbf16>
    %c0_23 = arith.constant 0 : index
    %c128_24 = arith.constant 128 : index
    %48 = vector.load %arg4[%c0_23, %c128_24] : memref<32x256xbf16, #tpu.memory_space<vmem>>, vector<32x128xbf16>
    tpu.vector_store %arg4[%c0_23, %c128_24], %47 {strides = array<i32>} : memref<32x256xbf16, #tpu.memory_space<vmem>>, vector<32x128xbf16>,
    return
  }
  func.func @transform_0(%arg0: i32) -> (i32, i32) {
    %c0_i32 = arith.constant 0 : i32
    %c0_i32_0 = arith.constant 0 : i32
    return %arg0, %c0_i32 : i32, i32
  }
  func.func @transform_1(%arg0: i32) -> (i32, i32) {
    %c1_i32 = arith.constant 1 : i32
    %c0_i32 = arith.constant 0 : i32
    return %arg0, %c1_i32 : i32, i32
  }
  func.func @transform_2(%arg0: i32) -> (i32, i32) {
    %c2_i32 = arith.constant 2 : i32
    %c0_i32 = arith.constant 0 : i32
    return %arg0, %c2_i32 : i32, i32
  }
  func.func @transform_3(%arg0: i32) -> (i32, i32) {
    %c0_i32 = arith.constant 0 : i32
    %c0_i32_0 = arith.constant 0 : i32
    return %arg0, %c0_i32 : i32, i32
  }
}

module attributes {stable_mosaic.version = 11 : i64} {
  func.func @_ln_router_kernel(%arg0: i32, %arg1: memref<32x256xf32, #tpu.memory_space<vmem>>, %arg2: memref<1x256xf32, #tpu.memory_space<vmem>>, %arg3: memref<1x256xf32, #tpu.memory_space<vmem>>, %arg4: memref<256x128xbf16, #tpu.memory_space<vmem>>, %arg5: memref<1x128xf32, #tpu.memory_space<vmem>>, %arg6: memref<32x256xf32, #tpu.memory_space<vmem>>, %arg7: memref<32x128xf32, #tpu.memory_space<vmem>>) attributes {dimension_semantics = [#tpu.dimension_semantics<parallel>], iteration_bounds = array<i64: 2>, scalar_prefetch = 0 : i64, scratch_operands = 0 : i64, tpu.core_type = #tpu.core_type<tc>, window_params = [{transform_indices = @transform_0, window_bounds = array<i64: 32, 256>}, {pipeline_mode = #tpu.pipeline_mode<synchronous>, transform_indices = @transform_1, window_bounds = array<i64: 1, 256>}, {pipeline_mode = #tpu.pipeline_mode<synchronous>, transform_indices = @transform_2, window_bounds = array<i64: 1, 256>}, {pipeline_mode = #tpu.pipeline_mode<synchronous>, transform_indices = @transform_3, window_bounds = array<i64: 256, 128>}, {pipeline_mode = #tpu.pipeline_mode<synchronous>, transform_indices = @transform_4, window_bounds = array<i64: 1, 128>}, {transform_indices = @transform_5, window_bounds = array<i64: 32, 256>}, {transform_indices = @transform_6, window_bounds = array<i64: 32, 128>}]} {
    %c0 = arith.constant 0 : index
    %c0_0 = arith.constant 0 : index
    %0 = vector.load %arg1[%c0, %c0_0] : memref<32x256xf32, #tpu.memory_space<vmem>>, vector<32x256xf32>
    %cst = arith.constant dense<0.000000e+00> : vector<32xf32>
    %1 = vector.multi_reduction <add>, %0, %cst [1] : vector<32x256xf32> to vector<32xf32>
    %2 = vector.shape_cast %1 : vector<32xf32> to vector<32x1xf32>
    %cst_1 = arith.constant 2.560000e+02 : f32
    %3 = vector.broadcast %cst_1 : f32 to vector<32x1xf32>
    %4 = arith.divf %2, %3 : vector<32x1xf32>
    %5 = vector.broadcast %4 : vector<32x1xf32> to vector<32x256xf32>
    %6 = arith.subf %0, %5 : vector<32x256xf32>
    %7 = arith.mulf %6, %6 : vector<32x256xf32>
    %cst_2 = arith.constant dense<0.000000e+00> : vector<32xf32>
    %8 = vector.multi_reduction <add>, %7, %cst_2 [1] : vector<32x256xf32> to vector<32xf32>
    %9 = vector.shape_cast %8 : vector<32xf32> to vector<32x1xf32>
    %cst_3 = arith.constant 2.560000e+02 : f32
    %10 = vector.broadcast %cst_3 : f32 to vector<32x1xf32>
    %11 = arith.divf %9, %10 : vector<32x1xf32>
    %12 = vector.broadcast %4 : vector<32x1xf32> to vector<32x256xf32>
    %13 = arith.subf %0, %12 : vector<32x256xf32>
    %cst_4 = arith.constant 9.99999974E-6 : f32
    %14 = vector.broadcast %cst_4 : f32 to vector<32x1xf32>
    %15 = arith.addf %11, %14 : vector<32x1xf32>
    %16 = math.rsqrt %15 : vector<32x1xf32>
    %17 = vector.broadcast %16 : vector<32x1xf32> to vector<32x256xf32>
    %18 = arith.mulf %13, %17 : vector<32x256xf32>
    %c0_5 = arith.constant 0 : index
    %c0_6 = arith.constant 0 : index
    %19 = vector.load %arg2[%c0_5, %c0_6] : memref<1x256xf32, #tpu.memory_space<vmem>>, vector<1x256xf32>
    %20 = vector.broadcast %19 : vector<1x256xf32> to vector<32x256xf32>
    %21 = arith.mulf %18, %20 : vector<32x256xf32>
    %c0_7 = arith.constant 0 : index
    %c0_8 = arith.constant 0 : index
    %22 = vector.load %arg3[%c0_7, %c0_8] : memref<1x256xf32, #tpu.memory_space<vmem>>, vector<1x256xf32>
    %23 = vector.broadcast %22 : vector<1x256xf32> to vector<32x256xf32>
    %24 = arith.addf %21, %23 : vector<32x256xf32>
    %c0_9 = arith.constant 0 : index
    %c0_10 = arith.constant 0 : index
    %25 = vector.load %arg6[%c0_9, %c0_10] : memref<32x256xf32, #tpu.memory_space<vmem>>, vector<32x256xf32>
    tpu.vector_store %arg6[%c0_9, %c0_10], %24 {strides = array<i32>} : memref<32x256xf32, #tpu.memory_space<vmem>>, vector<32x256xf32>,
    %26 = arith.truncf %24 : vector<32x256xf32> to vector<32x256xbf16>
    %c0_11 = arith.constant 0 : index
    %c0_12 = arith.constant 0 : index
    %27 = vector.load %arg4[%c0_11, %c0_12] : memref<256x128xbf16, #tpu.memory_space<vmem>>, vector<256x128xbf16>
    %cst_13 = arith.constant dense<0.000000e+00> : vector<32x128xf32>
    %28 = tpu.matmul %26, %27, %cst_13 {dimension_numbers = #tpu.dot_dimension_numbers<[1], [0], [0], [1], [0, 0, 1, 1], [], []>} : vector<32x256xbf16>, vector<256x128xbf16>, vector<32x128xf32> -> vector<32x128xf32>
    %c0_14 = arith.constant 0 : index
    %c0_15 = arith.constant 0 : index
    %29 = vector.load %arg5[%c0_14, %c0_15] : memref<1x128xf32, #tpu.memory_space<vmem>>, vector<1x128xf32>
    %30 = vector.broadcast %29 : vector<1x128xf32> to vector<32x128xf32>
    %31 = arith.addf %28, %30 : vector<32x128xf32>
    %c0_16 = arith.constant 0 : index
    %c0_17 = arith.constant 0 : index
    %32 = vector.load %arg7[%c0_16, %c0_17] : memref<32x128xf32, #tpu.memory_space<vmem>>, vector<32x128xf32>
    tpu.vector_store %arg7[%c0_16, %c0_17], %31 {strides = array<i32>} : memref<32x128xf32, #tpu.memory_space<vmem>>, vector<32x128xf32>,
    return
  }
  func.func @transform_0(%arg0: i32) -> (i32, i32) {
    %c0_i32 = arith.constant 0 : i32
    %c0_i32_0 = arith.constant 0 : i32
    return %arg0, %c0_i32 : i32, i32
  }
  func.func @transform_1(%arg0: i32) -> (i32, i32) {
    %c0_i32 = arith.constant 0 : i32
    %c0_i32_0 = arith.constant 0 : i32
    %c0_i32_1 = arith.constant 0 : i32
    return %c0_i32, %c0_i32_0 : i32, i32
  }
  func.func @transform_2(%arg0: i32) -> (i32, i32) {
    %c0_i32 = arith.constant 0 : i32
    %c0_i32_0 = arith.constant 0 : i32
    %c0_i32_1 = arith.constant 0 : i32
    return %c0_i32, %c0_i32_0 : i32, i32
  }
  func.func @transform_3(%arg0: i32) -> (i32, i32) {
    %c0_i32 = arith.constant 0 : i32
    %c0_i32_0 = arith.constant 0 : i32
    %c0_i32_1 = arith.constant 0 : i32
    return %c0_i32, %c0_i32_0 : i32, i32
  }
  func.func @transform_4(%arg0: i32) -> (i32, i32) {
    %c0_i32 = arith.constant 0 : i32
    %c0_i32_0 = arith.constant 0 : i32
    %c0_i32_1 = arith.constant 0 : i32
    return %c0_i32, %c0_i32_0 : i32, i32
  }
  func.func @transform_5(%arg0: i32) -> (i32, i32) {
    %c0_i32 = arith.constant 0 : i32
    %c0_i32_0 = arith.constant 0 : i32
    return %arg0, %c0_i32 : i32, i32
  }
  func.func @transform_6(%arg0: i32) -> (i32, i32) {
    %c0_i32 = arith.constant 0 : i32
    %c0_i32_0 = arith.constant 0 : i32
    return %arg0, %c0_i32 : i32, i32
  }
}

module attributes {stable_mosaic.version = 11 : i64} {
  func.func @_ln_matmul_kernel(%arg0: i32, %arg1: memref<32x256xf32, #tpu.memory_space<vmem>>, %arg2: memref<1x256xf32, #tpu.memory_space<vmem>>, %arg3: memref<1x256xf32, #tpu.memory_space<vmem>>, %arg4: memref<256x768xbf16, #tpu.memory_space<vmem>>, %arg5: memref<1x768xf32, #tpu.memory_space<vmem>>, %arg6: memref<32x768xbf16, #tpu.memory_space<vmem>>) attributes {dimension_semantics = [#tpu.dimension_semantics<parallel>], iteration_bounds = array<i64: 2>, scalar_prefetch = 0 : i64, scratch_operands = 0 : i64, tpu.core_type = #tpu.core_type<tc>, window_params = [{transform_indices = @transform_0, window_bounds = array<i64: 32, 256>}, {pipeline_mode = #tpu.pipeline_mode<synchronous>, transform_indices = @transform_1, window_bounds = array<i64: 1, 256>}, {pipeline_mode = #tpu.pipeline_mode<synchronous>, transform_indices = @transform_2, window_bounds = array<i64: 1, 256>}, {pipeline_mode = #tpu.pipeline_mode<synchronous>, transform_indices = @transform_3, window_bounds = array<i64: 256, 768>}, {pipeline_mode = #tpu.pipeline_mode<synchronous>, transform_indices = @transform_4, window_bounds = array<i64: 1, 768>}, {transform_indices = @transform_5, window_bounds = array<i64: 32, 768>}]} {
    %c0 = arith.constant 0 : index
    %c0_0 = arith.constant 0 : index
    %0 = vector.load %arg1[%c0, %c0_0] : memref<32x256xf32, #tpu.memory_space<vmem>>, vector<32x256xf32>
    %cst = arith.constant dense<0.000000e+00> : vector<32xf32>
    %1 = vector.multi_reduction <add>, %0, %cst [1] : vector<32x256xf32> to vector<32xf32>
    %2 = vector.shape_cast %1 : vector<32xf32> to vector<32x1xf32>
    %cst_1 = arith.constant 2.560000e+02 : f32
    %3 = vector.broadcast %cst_1 : f32 to vector<32x1xf32>
    %4 = arith.divf %2, %3 : vector<32x1xf32>
    %5 = vector.broadcast %4 : vector<32x1xf32> to vector<32x256xf32>
    %6 = arith.subf %0, %5 : vector<32x256xf32>
    %7 = arith.mulf %6, %6 : vector<32x256xf32>
    %cst_2 = arith.constant dense<0.000000e+00> : vector<32xf32>
    %8 = vector.multi_reduction <add>, %7, %cst_2 [1] : vector<32x256xf32> to vector<32xf32>
    %9 = vector.shape_cast %8 : vector<32xf32> to vector<32x1xf32>
    %cst_3 = arith.constant 2.560000e+02 : f32
    %10 = vector.broadcast %cst_3 : f32 to vector<32x1xf32>
    %11 = arith.divf %9, %10 : vector<32x1xf32>
    %12 = vector.broadcast %4 : vector<32x1xf32> to vector<32x256xf32>
    %13 = arith.subf %0, %12 : vector<32x256xf32>
    %cst_4 = arith.constant 9.99999974E-6 : f32
    %14 = vector.broadcast %cst_4 : f32 to vector<32x1xf32>
    %15 = arith.addf %11, %14 : vector<32x1xf32>
    %16 = math.rsqrt %15 : vector<32x1xf32>
    %17 = vector.broadcast %16 : vector<32x1xf32> to vector<32x256xf32>
    %18 = arith.mulf %13, %17 : vector<32x256xf32>
    %c0_5 = arith.constant 0 : index
    %c0_6 = arith.constant 0 : index
    %19 = vector.load %arg2[%c0_5, %c0_6] : memref<1x256xf32, #tpu.memory_space<vmem>>, vector<1x256xf32>
    %20 = vector.broadcast %19 : vector<1x256xf32> to vector<32x256xf32>
    %21 = arith.mulf %18, %20 : vector<32x256xf32>
    %c0_7 = arith.constant 0 : index
    %c0_8 = arith.constant 0 : index
    %22 = vector.load %arg3[%c0_7, %c0_8] : memref<1x256xf32, #tpu.memory_space<vmem>>, vector<1x256xf32>
    %23 = vector.broadcast %22 : vector<1x256xf32> to vector<32x256xf32>
    %24 = arith.addf %21, %23 : vector<32x256xf32>
    %25 = arith.truncf %24 : vector<32x256xf32> to vector<32x256xbf16>
    %c0_9 = arith.constant 0 : index
    %c0_10 = arith.constant 0 : index
    %26 = vector.load %arg4[%c0_9, %c0_10] : memref<256x768xbf16, #tpu.memory_space<vmem>>, vector<256x768xbf16>
    %cst_11 = arith.constant dense<0.000000e+00> : vector<32x768xf32>
    %27 = tpu.matmul %25, %26, %cst_11 {dimension_numbers = #tpu.dot_dimension_numbers<[1], [0], [0], [1], [0, 0, 1, 1], [], []>} : vector<32x256xbf16>, vector<256x768xbf16>, vector<32x768xf32> -> vector<32x768xf32>
    %c0_12 = arith.constant 0 : index
    %c0_13 = arith.constant 0 : index
    %28 = vector.load %arg5[%c0_12, %c0_13] : memref<1x768xf32, #tpu.memory_space<vmem>>, vector<1x768xf32>
    %29 = vector.broadcast %28 : vector<1x768xf32> to vector<32x768xf32>
    %30 = arith.addf %27, %29 : vector<32x768xf32>
    %31 = arith.truncf %30 : vector<32x768xf32> to vector<32x768xbf16>
    %c0_14 = arith.constant 0 : index
    %c0_15 = arith.constant 0 : index
    %32 = vector.load %arg6[%c0_14, %c0_15] : memref<32x768xbf16, #tpu.memory_space<vmem>>, vector<32x768xbf16>
    tpu.vector_store %arg6[%c0_14, %c0_15], %31 {strides = array<i32>} : memref<32x768xbf16, #tpu.memory_space<vmem>>, vector<32x768xbf16>,
    return
  }
  func.func @transform_0(%arg0: i32) -> (i32, i32) {
    %c0_i32 = arith.constant 0 : i32
    %c0_i32_0 = arith.constant 0 : i32
    return %arg0, %c0_i32 : i32, i32
  }
  func.func @transform_1(%arg0: i32) -> (i32, i32) {
    %c0_i32 = arith.constant 0 : i32
    %c0_i32_0 = arith.constant 0 : i32
    %c0_i32_1 = arith.constant 0 : i32
    return %c0_i32, %c0_i32_0 : i32, i32
  }
  func.func @transform_2(%arg0: i32) -> (i32, i32) {
    %c0_i32 = arith.constant 0 : i32
    %c0_i32_0 = arith.constant 0 : i32
    %c0_i32_1 = arith.constant 0 : i32
    return %c0_i32, %c0_i32_0 : i32, i32
  }
  func.func @transform_3(%arg0: i32) -> (i32, i32) {
    %c0_i32 = arith.constant 0 : i32
    %c0_i32_0 = arith.constant 0 : i32
    %c0_i32_1 = arith.constant 0 : i32
    return %c0_i32, %c0_i32_0 : i32, i32
  }
  func.func @transform_4(%arg0: i32) -> (i32, i32) {
    %c0_i32 = arith.constant 0 : i32
    %c0_i32_0 = arith.constant 0 : i32
    %c0_i32_1 = arith.constant 0 : i32
    return %c0_i32, %c0_i32_0 : i32, i32
  }
  func.func @transform_5(%arg0: i32) -> (i32, i32) {
    %c0_i32 = arith.constant 0 : i32
    %c0_i32_0 = arith.constant 0 : i32
    return %arg0, %c0_i32 : i32, i32
  }
}

module attributes {stable_mosaic.version = 11 : i64} {
  func.func @_matmul_bias_kernel(%arg0: i32, %arg1: i32, %arg2: i32, %arg3: memref<32x256xbf16, #tpu.memory_space<vmem>>, %arg4: memref<256x256xbf16, #tpu.memory_space<vmem>>, %arg5: memref<1x256xf32, #tpu.memory_space<vmem>>, %arg6: memref<32x256xf32, #tpu.memory_space<vmem>>) attributes {dimension_semantics = [#tpu.dimension_semantics<parallel>, #tpu.dimension_semantics<parallel>, #tpu.dimension_semantics<arbitrary>], iteration_bounds = array<i64: 2, 1, 1>, scalar_prefetch = 0 : i64, scratch_operands = 0 : i64, tpu.core_type = #tpu.core_type<tc>, window_params = [{transform_indices = @transform_0, window_bounds = array<i64: 32, 256>}, {transform_indices = @transform_1, window_bounds = array<i64: 256, 256>}, {transform_indices = @transform_2, window_bounds = array<i64: 1, 256>}, {transform_indices = @transform_3, window_bounds = array<i64: 32, 256>}]} {
    %c0 = arith.constant 0 : index
    %c0_0 = arith.constant 0 : index
    %0 = vector.load %arg3[%c0, %c0_0] : memref<32x256xbf16, #tpu.memory_space<vmem>>, vector<32x256xbf16>
    %c0_1 = arith.constant 0 : index
    %c0_2 = arith.constant 0 : index
    %1 = vector.load %arg4[%c0_1, %c0_2] : memref<256x256xbf16, #tpu.memory_space<vmem>>, vector<256x256xbf16>
    %cst = arith.constant dense<0.000000e+00> : vector<32x256xf32>
    %2 = tpu.matmul %0, %1, %cst {dimension_numbers = #tpu.dot_dimension_numbers<[1], [0], [0], [1], [0, 0, 1, 1], [], []>} : vector<32x256xbf16>, vector<256x256xbf16>, vector<32x256xf32> -> vector<32x256xf32>
    %c0_i32 = arith.constant 0 : i32
    %3 = arith.cmpi eq, %arg2, %c0_i32 : i32
    %4 = arith.extui %3 : i1 to i32
    %c0_i32_3 = arith.constant 0 : i32
    %5 = arith.cmpi ne, %4, %c0_i32_3 : i32
    scf.if %5 {
      %c0_6 = arith.constant 0 : index
      %c0_7 = arith.constant 0 : index
      %9 = vector.load %arg5[%c0_6, %c0_7] : memref<1x256xf32, #tpu.memory_space<vmem>>, vector<1x256xf32>
      %10 = vector.broadcast %9 : vector<1x256xf32> to vector<32x256xf32>
      %11 = arith.addf %2, %10 : vector<32x256xf32>
      %c0_8 = arith.constant 0 : index
      %c0_9 = arith.constant 0 : index
      %12 = vector.load %arg6[%c0_8, %c0_9] : memref<32x256xf32, #tpu.memory_space<vmem>>, vector<32x256xf32>
      tpu.vector_store %arg6[%c0_8, %c0_9], %11 {strides = array<i32>} : memref<32x256xf32, #tpu.memory_space<vmem>>, vector<32x256xf32>,
    } else {
    }
    %c0_i32_4 = arith.constant 0 : i32
    %6 = arith.cmpi ne, %arg2, %c0_i32_4 : i32
    %7 = arith.extui %6 : i1 to i32
    %c0_i32_5 = arith.constant 0 : i32
    %8 = arith.cmpi ne, %7, %c0_i32_5 : i32
    scf.if %8 {
      %c0_6 = arith.constant 0 : index
      %c0_7 = arith.constant 0 : index
      %9 = vector.load %arg6[%c0_6, %c0_7] : memref<32x256xf32, #tpu.memory_space<vmem>>, vector<32x256xf32>
      %10 = arith.addf %9, %2 : vector<32x256xf32>
      %c0_8 = arith.constant 0 : index
      %c0_9 = arith.constant 0 : index
      %11 = vector.load %arg6[%c0_8, %c0_9] : memref<32x256xf32, #tpu.memory_space<vmem>>, vector<32x256xf32>
      tpu.vector_store %arg6[%c0_8, %c0_9], %10 {strides = array<i32>} : memref<32x256xf32, #tpu.memory_space<vmem>>, vector<32x256xf32>,
    } else {
    }
    return
  }
  func.func @transform_0(%arg0: i32, %arg1: i32, %arg2: i32) -> (i32, i32) {
    %c0_i32 = arith.constant 0 : i32
    return %arg0, %arg2 : i32, i32
  }
  func.func @transform_1(%arg0: i32, %arg1: i32, %arg2: i32) -> (i32, i32) {
    %c0_i32 = arith.constant 0 : i32
    return %arg2, %arg1 : i32, i32
  }
  func.func @transform_2(%arg0: i32, %arg1: i32, %arg2: i32) -> (i32, i32) {
    %c0_i32 = arith.constant 0 : i32
    %c0_i32_0 = arith.constant 0 : i32
    return %c0_i32, %arg1 : i32, i32
  }
  func.func @transform_3(%arg0: i32, %arg1: i32, %arg2: i32) -> (i32, i32) {
    %c0_i32 = arith.constant 0 : i32
    return %arg0, %arg1 : i32, i32
  }
}

module attributes {stable_mosaic.version = 11 : i64} {
  func.func @kernel(%arg0: i32, %arg1: i32, %arg2: memref<8x16xi32, #tpu.memory_space<smem>>, %arg3: memref<64x256xf32, #tpu.memory_space<any>>, %arg4: memref<1x256x512xbf16, #tpu.memory_space<vmem>>, %arg5: memref<1x1x512xf32, #tpu.memory_space<vmem>>, %arg6: memref<1x512x256xbf16, #tpu.memory_space<vmem>>, %arg7: memref<1x1x256xf32, #tpu.memory_space<vmem>>, %arg8: memref<1x16x256xf32, #tpu.memory_space<vmem>>, %arg9: memref<16x256xf32, #tpu.memory_space<vmem>>, %arg10: memref<16x!tpu.dma_semaphore, #tpu.memory_space<semaphore_mem>>) attributes {dimension_semantics = [#tpu.dimension_semantics<parallel>, #tpu.dimension_semantics<arbitrary>], iteration_bounds = array<i64: 8, 2>, scalar_prefetch = 1 : i64, scratch_operands = 2 : i64, tpu.core_type = #tpu.core_type<tc>, window_params = [{}, {transform_indices = @transform_1, window_bounds = array<i64: 1, 256, 512>}, {transform_indices = @transform_2, window_bounds = array<i64: 1, 1, 512>}, {transform_indices = @transform_3, window_bounds = array<i64: 1, 512, 256>}, {transform_indices = @transform_4, window_bounds = array<i64: 1, 1, 256>}, {transform_indices = @transform_5, window_bounds = array<i64: 1, 16, 256>}]} {
    %c0_i32 = arith.constant 0 : i32
    %0 = arith.cmpi eq, %arg1, %c0_i32 : i32
    %1 = arith.extui %0 : i1 to i32
    %c0_i32_0 = arith.constant 0 : i32
    %2 = arith.cmpi ne, %1, %c0_i32_0 : i32
    scf.if %2 {
      %24 = arith.index_cast %arg0 : i32 to index
      %c0_17 = arith.constant 0 : index
      %25 = memref.load %arg2[%24, %c0_17] : memref<8x16xi32, #tpu.memory_space<smem>>
      %c0_i32_18 = arith.constant 0 : i32
      %c0_i32_19 = arith.constant 0 : i32
      %26 = tpu.memref_slice %arg3[%25, %c0_i32_19] : memref<64x256xf32, #tpu.memory_space<any>> -> memref<1x256xf32, #tpu.memory_space<any>>
      %c0_i32_20 = arith.constant 0 : i32
      %c0_i32_21 = arith.constant 0 : i32
      %27 = tpu.memref_slice %arg9[%c0_i32_20, %c0_i32_21] : memref<16x256xf32, #tpu.memory_space<vmem>> -> memref<1x256xf32, #tpu.memory_space<vmem>>
      %28 = tpu.memref_slice %arg10[%c0_i32_18] : memref<16x!tpu.dma_semaphore, #tpu.memory_space<semaphore_mem>> -> memref<1x!tpu.dma_semaphore, #tpu.memory_space<semaphore_mem>>
      %29 = tpu.memref_squeeze %28 : memref<1x!tpu.dma_semaphore, #tpu.memory_space<semaphore_mem>> -> memref<!tpu.dma_semaphore, #tpu.memory_space<semaphore_mem>>
      tpu.enqueue_dma source(%26 : memref<1x256xf32, #tpu.memory_space<any>>) target(%27 : memref<1x256xf32, #tpu.memory_space<vmem>>) target_semaphore(%29 : memref<!tpu.dma_semaphore, #tpu.memory_space<semaphore_mem>>)
      %30 = arith.index_cast %arg0 : i32 to index
      %c1 = arith.constant 1 : index
      %31 = memref.load %arg2[%30, %c1] : memref<8x16xi32, #tpu.memory_space<smem>>
      %c1_i32 = arith.constant 1 : i32
      %c0_i32_22 = arith.constant 0 : i32
      %32 = tpu.memref_slice %arg3[%31, %c0_i32_22] : memref<64x256xf32, #tpu.memory_space<any>> -> memref<1x256xf32, #tpu.memory_space<any>>
      %c1_i32_23 = arith.constant 1 : i32
      %c0_i32_24 = arith.constant 0 : i32
      %33 = tpu.memref_slice %arg9[%c1_i32_23, %c0_i32_24] : memref<16x256xf32, #tpu.memory_space<vmem>> -> memref<1x256xf32, #tpu.memory_space<vmem>>
      %34 = tpu.memref_slice %arg10[%c1_i32] : memref<16x!tpu.dma_semaphore, #tpu.memory_space<semaphore_mem>> -> memref<1x!tpu.dma_semaphore, #tpu.memory_space<semaphore_mem>>
      %35 = tpu.memref_squeeze %34 : memref<1x!tpu.dma_semaphore, #tpu.memory_space<semaphore_mem>> -> memref<!tpu.dma_semaphore, #tpu.memory_space<semaphore_mem>>
      tpu.enqueue_dma source(%32 : memref<1x256xf32, #tpu.memory_space<any>>) target(%33 : memref<1x256xf32, #tpu.memory_space<vmem>>) target_semaphore(%35 : memref<!tpu.dma_semaphore, #tpu.memory_space<semaphore_mem>>)
      %36 = arith.index_cast %arg0 : i32 to index
      %c2 = arith.constant 2 : index
      %37 = memref.load %arg2[%36, %c2] : memref<8x16xi32, #tpu.memory_space<smem>>
      %c2_i32 = arith.constant 2 : i32
      %c0_i32_25 = arith.constant 0 : i32
      %38 = tpu.memref_slice %arg3[%37, %c0_i32_25] : memref<64x256xf32, #tpu.memory_space<any>> -> memref<1x256xf32, #tpu.memory_space<any>>
      %c2_i32_26 = arith.constant 2 : i32
      %c0_i32_27 = arith.constant 0 : i32
      %39 = tpu.memref_slice %arg9[%c2_i32_26, %c0_i32_27] : memref<16x256xf32, #tpu.memory_space<vmem>> -> memref<1x256xf32, #tpu.memory_space<vmem>>
      %40 = tpu.memref_slice %arg10[%c2_i32] : memref<16x!tpu.dma_semaphore, #tpu.memory_space<semaphore_mem>> -> memref<1x!tpu.dma_semaphore, #tpu.memory_space<semaphore_mem>>
      %41 = tpu.memref_squeeze %40 : memref<1x!tpu.dma_semaphore, #tpu.memory_space<semaphore_mem>> -> memref<!tpu.dma_semaphore, #tpu.memory_space<semaphore_mem>>
      tpu.enqueue_dma source(%38 : memref<1x256xf32, #tpu.memory_space<any>>) target(%39 : memref<1x256xf32, #tpu.memory_space<vmem>>) target_semaphore(%41 : memref<!tpu.dma_semaphore, #tpu.memory_space<semaphore_mem>>)
      %42 = arith.index_cast %arg0 : i32 to index
      %c3 = arith.constant 3 : index
      %43 = memref.load %arg2[%42, %c3] : memref<8x16xi32, #tpu.memory_space<smem>>
      %c3_i32 = arith.constant 3 : i32
      %c0_i32_28 = arith.constant 0 : i32
      %44 = tpu.memref_slice %arg3[%43, %c0_i32_28] : memref<64x256xf32, #tpu.memory_space<any>> -> memref<1x256xf32, #tpu.memory_space<any>>
      %c3_i32_29 = arith.constant 3 : i32
      %c0_i32_30 = arith.constant 0 : i32
      %45 = tpu.memref_slice %arg9[%c3_i32_29, %c0_i32_30] : memref<16x256xf32, #tpu.memory_space<vmem>> -> memref<1x256xf32, #tpu.memory_space<vmem>>
      %46 = tpu.memref_slice %arg10[%c3_i32] : memref<16x!tpu.dma_semaphore, #tpu.memory_space<semaphore_mem>> -> memref<1x!tpu.dma_semaphore, #tpu.memory_space<semaphore_mem>>
      %47 = tpu.memref_squeeze %46 : memref<1x!tpu.dma_semaphore, #tpu.memory_space<semaphore_mem>> -> memref<!tpu.dma_semaphore, #tpu.memory_space<semaphore_mem>>
      tpu.enqueue_dma source(%44 : memref<1x256xf32, #tpu.memory_space<any>>) target(%45 : memref<1x256xf32, #tpu.memory_space<vmem>>) target_semaphore(%47 : memref<!tpu.dma_semaphore, #tpu.memory_space<semaphore_mem>>)
      %48 = arith.index_cast %arg0 : i32 to index
      %c4 = arith.constant 4 : index
      %49 = memref.load %arg2[%48, %c4] : memref<8x16xi32, #tpu.memory_space<smem>>
      %c4_i32 = arith.constant 4 : i32
      %c0_i32_31 = arith.constant 0 : i32
      %50 = tpu.memref_slice %arg3[%49, %c0_i32_31] : memref<64x256xf32, #tpu.memory_space<any>> -> memref<1x256xf32, #tpu.memory_space<any>>
      %c4_i32_32 = arith.constant 4 : i32
      %c0_i32_33 = arith.constant 0 : i32
      %51 = tpu.memref_slice %arg9[%c4_i32_32, %c0_i32_33] : memref<16x256xf32, #tpu.memory_space<vmem>> -> memref<1x256xf32, #tpu.memory_space<vmem>>
      %52 = tpu.memref_slice %arg10[%c4_i32] : memref<16x!tpu.dma_semaphore, #tpu.memory_space<semaphore_mem>> -> memref<1x!tpu.dma_semaphore, #tpu.memory_space<semaphore_mem>>
      %53 = tpu.memref_squeeze %52 : memref<1x!tpu.dma_semaphore, #tpu.memory_space<semaphore_mem>> -> memref<!tpu.dma_semaphore, #tpu.memory_space<semaphore_mem>>
      tpu.enqueue_dma source(%50 : memref<1x256xf32, #tpu.memory_space<any>>) target(%51 : memref<1x256xf32, #tpu.memory_space<vmem>>) target_semaphore(%53 : memref<!tpu.dma_semaphore, #tpu.memory_space<semaphore_mem>>)
      %54 = arith.index_cast %arg0 : i32 to index
      %c5 = arith.constant 5 : index
      %55 = memref.load %arg2[%54, %c5] : memref<8x16xi32, #tpu.memory_space<smem>>
      %c5_i32 = arith.constant 5 : i32
      %c0_i32_34 = arith.constant 0 : i32
      %56 = tpu.memref_slice %arg3[%55, %c0_i32_34] : memref<64x256xf32, #tpu.memory_space<any>> -> memref<1x256xf32, #tpu.memory_space<any>>
      %c5_i32_35 = arith.constant 5 : i32
      %c0_i32_36 = arith.constant 0 : i32
      %57 = tpu.memref_slice %arg9[%c5_i32_35, %c0_i32_36] : memref<16x256xf32, #tpu.memory_space<vmem>> -> memref<1x256xf32, #tpu.memory_space<vmem>>
      %58 = tpu.memref_slice %arg10[%c5_i32] : memref<16x!tpu.dma_semaphore, #tpu.memory_space<semaphore_mem>> -> memref<1x!tpu.dma_semaphore, #tpu.memory_space<semaphore_mem>>
      %59 = tpu.memref_squeeze %58 : memref<1x!tpu.dma_semaphore, #tpu.memory_space<semaphore_mem>> -> memref<!tpu.dma_semaphore, #tpu.memory_space<semaphore_mem>>
      tpu.enqueue_dma source(%56 : memref<1x256xf32, #tpu.memory_space<any>>) target(%57 : memref<1x256xf32, #tpu.memory_space<vmem>>) target_semaphore(%59 : memref<!tpu.dma_semaphore, #tpu.memory_space<semaphore_mem>>)
      %60 = arith.index_cast %arg0 : i32 to index
      %c6 = arith.constant 6 : index
      %61 = memref.load %arg2[%60, %c6] : memref<8x16xi32, #tpu.memory_space<smem>>
      %c6_i32 = arith.constant 6 : i32
      %c0_i32_37 = arith.constant 0 : i32
      %62 = tpu.memref_slice %arg3[%61, %c0_i32_37] : memref<64x256xf32, #tpu.memory_space<any>> -> memref<1x256xf32, #tpu.memory_space<any>>
      %c6_i32_38 = arith.constant 6 : i32
      %c0_i32_39 = arith.constant 0 : i32
      %63 = tpu.memref_slice %arg9[%c6_i32_38, %c0_i32_39] : memref<16x256xf32, #tpu.memory_space<vmem>> -> memref<1x256xf32, #tpu.memory_space<vmem>>
      %64 = tpu.memref_slice %arg10[%c6_i32] : memref<16x!tpu.dma_semaphore, #tpu.memory_space<semaphore_mem>> -> memref<1x!tpu.dma_semaphore, #tpu.memory_space<semaphore_mem>>
      %65 = tpu.memref_squeeze %64 : memref<1x!tpu.dma_semaphore, #tpu.memory_space<semaphore_mem>> -> memref<!tpu.dma_semaphore, #tpu.memory_space<semaphore_mem>>
      tpu.enqueue_dma source(%62 : memref<1x256xf32, #tpu.memory_space<any>>) target(%63 : memref<1x256xf32, #tpu.memory_space<vmem>>) target_semaphore(%65 : memref<!tpu.dma_semaphore, #tpu.memory_space<semaphore_mem>>)
      %66 = arith.index_cast %arg0 : i32 to index
      %c7 = arith.constant 7 : index
      %67 = memref.load %arg2[%66, %c7] : memref<8x16xi32, #tpu.memory_space<smem>>
      %c7_i32 = arith.constant 7 : i32
      %c0_i32_40 = arith.constant 0 : i32
      %68 = tpu.memref_slice %arg3[%67, %c0_i32_40] : memref<64x256xf32, #tpu.memory_space<any>> -> memref<1x256xf32, #tpu.memory_space<any>>
      %c7_i32_41 = arith.constant 7 : i32
      %c0_i32_42 = arith.constant 0 : i32
      %69 = tpu.memref_slice %arg9[%c7_i32_41, %c0_i32_42] : memref<16x256xf32, #tpu.memory_space<vmem>> -> memref<1x256xf32, #tpu.memory_space<vmem>>
      %70 = tpu.memref_slice %arg10[%c7_i32] : memref<16x!tpu.dma_semaphore, #tpu.memory_space<semaphore_mem>> -> memref<1x!tpu.dma_semaphore, #tpu.memory_space<semaphore_mem>>
      %71 = tpu.memref_squeeze %70 : memref<1x!tpu.dma_semaphore, #tpu.memory_space<semaphore_mem>> -> memref<!tpu.dma_semaphore, #tpu.memory_space<semaphore_mem>>
      tpu.enqueue_dma source(%68 : memref<1x256xf32, #tpu.memory_space<any>>) target(%69 : memref<1x256xf32, #tpu.memory_space<vmem>>) target_semaphore(%71 : memref<!tpu.dma_semaphore, #tpu.memory_space<semaphore_mem>>)
      %72 = arith.index_cast %arg0 : i32 to index
      %c8 = arith.constant 8 : index
      %73 = memref.load %arg2[%72, %c8] : memref<8x16xi32, #tpu.memory_space<smem>>
      %c8_i32 = arith.constant 8 : i32
      %c0_i32_43 = arith.constant 0 : i32
      %74 = tpu.memref_slice %arg3[%73, %c0_i32_43] : memref<64x256xf32, #tpu.memory_space<any>> -> memref<1x256xf32, #tpu.memory_space<any>>
      %c8_i32_44 = arith.constant 8 : i32
      %c0_i32_45 = arith.constant 0 : i32
      %75 = tpu.memref_slice %arg9[%c8_i32_44, %c0_i32_45] : memref<16x256xf32, #tpu.memory_space<vmem>> -> memref<1x256xf32, #tpu.memory_space<vmem>>
      %76 = tpu.memref_slice %arg10[%c8_i32] : memref<16x!tpu.dma_semaphore, #tpu.memory_space<semaphore_mem>> -> memref<1x!tpu.dma_semaphore, #tpu.memory_space<semaphore_mem>>
      %77 = tpu.memref_squeeze %76 : memref<1x!tpu.dma_semaphore, #tpu.memory_space<semaphore_mem>> -> memref<!tpu.dma_semaphore, #tpu.memory_space<semaphore_mem>>
      tpu.enqueue_dma source(%74 : memref<1x256xf32, #tpu.memory_space<any>>) target(%75 : memref<1x256xf32, #tpu.memory_space<vmem>>) target_semaphore(%77 : memref<!tpu.dma_semaphore, #tpu.memory_space<semaphore_mem>>)
      %78 = arith.index_cast %arg0 : i32 to index
      %c9 = arith.constant 9 : index
      %79 = memref.load %arg2[%78, %c9] : memref<8x16xi32, #tpu.memory_space<smem>>
      %c9_i32 = arith.constant 9 : i32
      %c0_i32_46 = arith.constant 0 : i32
      %80 = tpu.memref_slice %arg3[%79, %c0_i32_46] : memref<64x256xf32, #tpu.memory_space<any>> -> memref<1x256xf32, #tpu.memory_space<any>>
      %c9_i32_47 = arith.constant 9 : i32
      %c0_i32_48 = arith.constant 0 : i32
      %81 = tpu.memref_slice %arg9[%c9_i32_47, %c0_i32_48] : memref<16x256xf32, #tpu.memory_space<vmem>> -> memref<1x256xf32, #tpu.memory_space<vmem>>
      %82 = tpu.memref_slice %arg10[%c9_i32] : memref<16x!tpu.dma_semaphore, #tpu.memory_space<semaphore_mem>> -> memref<1x!tpu.dma_semaphore, #tpu.memory_space<semaphore_mem>>
      %83 = tpu.memref_squeeze %82 : memref<1x!tpu.dma_semaphore, #tpu.memory_space<semaphore_mem>> -> memref<!tpu.dma_semaphore, #tpu.memory_space<semaphore_mem>>
      tpu.enqueue_dma source(%80 : memref<1x256xf32, #tpu.memory_space<any>>) target(%81 : memref<1x256xf32, #tpu.memory_space<vmem>>) target_semaphore(%83 : memref<!tpu.dma_semaphore, #tpu.memory_space<semaphore_mem>>)
      %84 = arith.index_cast %arg0 : i32 to index
      %c10 = arith.constant 10 : index
      %85 = memref.load %arg2[%84, %c10] : memref<8x16xi32, #tpu.memory_space<smem>>
      %c10_i32 = arith.constant 10 : i32
      %c0_i32_49 = arith.constant 0 : i32
      %86 = tpu.memref_slice %arg3[%85, %c0_i32_49] : memref<64x256xf32, #tpu.memory_space<any>> -> memref<1x256xf32, #tpu.memory_space<any>>
      %c10_i32_50 = arith.constant 10 : i32
      %c0_i32_51 = arith.constant 0 : i32
      %87 = tpu.memref_slice %arg9[%c10_i32_50, %c0_i32_51] : memref<16x256xf32, #tpu.memory_space<vmem>> -> memref<1x256xf32, #tpu.memory_space<vmem>>
      %88 = tpu.memref_slice %arg10[%c10_i32] : memref<16x!tpu.dma_semaphore, #tpu.memory_space<semaphore_mem>> -> memref<1x!tpu.dma_semaphore, #tpu.memory_space<semaphore_mem>>
      %89 = tpu.memref_squeeze %88 : memref<1x!tpu.dma_semaphore, #tpu.memory_space<semaphore_mem>> -> memref<!tpu.dma_semaphore, #tpu.memory_space<semaphore_mem>>
      tpu.enqueue_dma source(%86 : memref<1x256xf32, #tpu.memory_space<any>>) target(%87 : memref<1x256xf32, #tpu.memory_space<vmem>>) target_semaphore(%89 : memref<!tpu.dma_semaphore, #tpu.memory_space<semaphore_mem>>)
      %90 = arith.index_cast %arg0 : i32 to index
      %c11 = arith.constant 11 : index
      %91 = memref.load %arg2[%90, %c11] : memref<8x16xi32, #tpu.memory_space<smem>>
      %c11_i32 = arith.constant 11 : i32
      %c0_i32_52 = arith.constant 0 : i32
      %92 = tpu.memref_slice %arg3[%91, %c0_i32_52] : memref<64x256xf32, #tpu.memory_space<any>> -> memref<1x256xf32, #tpu.memory_space<any>>
      %c11_i32_53 = arith.constant 11 : i32
      %c0_i32_54 = arith.constant 0 : i32
      %93 = tpu.memref_slice %arg9[%c11_i32_53, %c0_i32_54] : memref<16x256xf32, #tpu.memory_space<vmem>> -> memref<1x256xf32, #tpu.memory_space<vmem>>
      %94 = tpu.memref_slice %arg10[%c11_i32] : memref<16x!tpu.dma_semaphore, #tpu.memory_space<semaphore_mem>> -> memref<1x!tpu.dma_semaphore, #tpu.memory_space<semaphore_mem>>
      %95 = tpu.memref_squeeze %94 : memref<1x!tpu.dma_semaphore, #tpu.memory_space<semaphore_mem>> -> memref<!tpu.dma_semaphore, #tpu.memory_space<semaphore_mem>>
      tpu.enqueue_dma source(%92 : memref<1x256xf32, #tpu.memory_space<any>>) target(%93 : memref<1x256xf32, #tpu.memory_space<vmem>>) target_semaphore(%95 : memref<!tpu.dma_semaphore, #tpu.memory_space<semaphore_mem>>)
      %96 = arith.index_cast %arg0 : i32 to index
      %c12 = arith.constant 12 : index
      %97 = memref.load %arg2[%96, %c12] : memref<8x16xi32, #tpu.memory_space<smem>>
      %c12_i32 = arith.constant 12 : i32
      %c0_i32_55 = arith.constant 0 : i32
      %98 = tpu.memref_slice %arg3[%97, %c0_i32_55] : memref<64x256xf32, #tpu.memory_space<any>> -> memref<1x256xf32, #tpu.memory_space<any>>
      %c12_i32_56 = arith.constant 12 : i32
      %c0_i32_57 = arith.constant 0 : i32
      %99 = tpu.memref_slice %arg9[%c12_i32_56, %c0_i32_57] : memref<16x256xf32, #tpu.memory_space<vmem>> -> memref<1x256xf32, #tpu.memory_space<vmem>>
      %100 = tpu.memref_slice %arg10[%c12_i32] : memref<16x!tpu.dma_semaphore, #tpu.memory_space<semaphore_mem>> -> memref<1x!tpu.dma_semaphore, #tpu.memory_space<semaphore_mem>>
      %101 = tpu.memref_squeeze %100 : memref<1x!tpu.dma_semaphore, #tpu.memory_space<semaphore_mem>> -> memref<!tpu.dma_semaphore, #tpu.memory_space<semaphore_mem>>
      tpu.enqueue_dma source(%98 : memref<1x256xf32, #tpu.memory_space<any>>) target(%99 : memref<1x256xf32, #tpu.memory_space<vmem>>) target_semaphore(%101 : memref<!tpu.dma_semaphore, #tpu.memory_space<semaphore_mem>>)
      %102 = arith.index_cast %arg0 : i32 to index
      %c13 = arith.constant 13 : index
      %103 = memref.load %arg2[%102, %c13] : memref<8x16xi32, #tpu.memory_space<smem>>
      %c13_i32 = arith.constant 13 : i32
      %c0_i32_58 = arith.constant 0 : i32
      %104 = tpu.memref_slice %arg3[%103, %c0_i32_58] : memref<64x256xf32, #tpu.memory_space<any>> -> memref<1x256xf32, #tpu.memory_space<any>>
      %c13_i32_59 = arith.constant 13 : i32
      %c0_i32_60 = arith.constant 0 : i32
      %105 = tpu.memref_slice %arg9[%c13_i32_59, %c0_i32_60] : memref<16x256xf32, #tpu.memory_space<vmem>> -> memref<1x256xf32, #tpu.memory_space<vmem>>
      %106 = tpu.memref_slice %arg10[%c13_i32] : memref<16x!tpu.dma_semaphore, #tpu.memory_space<semaphore_mem>> -> memref<1x!tpu.dma_semaphore, #tpu.memory_space<semaphore_mem>>
      %107 = tpu.memref_squeeze %106 : memref<1x!tpu.dma_semaphore, #tpu.memory_space<semaphore_mem>> -> memref<!tpu.dma_semaphore, #tpu.memory_space<semaphore_mem>>
      tpu.enqueue_dma source(%104 : memref<1x256xf32, #tpu.memory_space<any>>) target(%105 : memref<1x256xf32, #tpu.memory_space<vmem>>) target_semaphore(%107 : memref<!tpu.dma_semaphore, #tpu.memory_space<semaphore_mem>>)
      %108 = arith.index_cast %arg0 : i32 to index
      %c14 = arith.constant 14 : index
      %109 = memref.load %arg2[%108, %c14] : memref<8x16xi32, #tpu.memory_space<smem>>
      %c14_i32 = arith.constant 14 : i32
      %c0_i32_61 = arith.constant 0 : i32
      %110 = tpu.memref_slice %arg3[%109, %c0_i32_61] : memref<64x256xf32, #tpu.memory_space<any>> -> memref<1x256xf32, #tpu.memory_space<any>>
      %c14_i32_62 = arith.constant 14 : i32
      %c0_i32_63 = arith.constant 0 : i32
      %111 = tpu.memref_slice %arg9[%c14_i32_62, %c0_i32_63] : memref<16x256xf32, #tpu.memory_space<vmem>> -> memref<1x256xf32, #tpu.memory_space<vmem>>
      %112 = tpu.memref_slice %arg10[%c14_i32] : memref<16x!tpu.dma_semaphore, #tpu.memory_space<semaphore_mem>> -> memref<1x!tpu.dma_semaphore, #tpu.memory_space<semaphore_mem>>
      %113 = tpu.memref_squeeze %112 : memref<1x!tpu.dma_semaphore, #tpu.memory_space<semaphore_mem>> -> memref<!tpu.dma_semaphore, #tpu.memory_space<semaphore_mem>>
      tpu.enqueue_dma source(%110 : memref<1x256xf32, #tpu.memory_space<any>>) target(%111 : memref<1x256xf32, #tpu.memory_space<vmem>>) target_semaphore(%113 : memref<!tpu.dma_semaphore, #tpu.memory_space<semaphore_mem>>)
      %114 = arith.index_cast %arg0 : i32 to index
      %c15 = arith.constant 15 : index
      %115 = memref.load %arg2[%114, %c15] : memref<8x16xi32, #tpu.memory_space<smem>>
      %c15_i32 = arith.constant 15 : i32
      %c0_i32_64 = arith.constant 0 : i32
      %116 = tpu.memref_slice %arg3[%115, %c0_i32_64] : memref<64x256xf32, #tpu.memory_space<any>> -> memref<1x256xf32, #tpu.memory_space<any>>
      %c15_i32_65 = arith.constant 15 : i32
      %c0_i32_66 = arith.constant 0 : i32
      %117 = tpu.memref_slice %arg9[%c15_i32_65, %c0_i32_66] : memref<16x256xf32, #tpu.memory_space<vmem>> -> memref<1x256xf32, #tpu.memory_space<vmem>>
      %118 = tpu.memref_slice %arg10[%c15_i32] : memref<16x!tpu.dma_semaphore, #tpu.memory_space<semaphore_mem>> -> memref<1x!tpu.dma_semaphore, #tpu.memory_space<semaphore_mem>>
      %119 = tpu.memref_squeeze %118 : memref<1x!tpu.dma_semaphore, #tpu.memory_space<semaphore_mem>> -> memref<!tpu.dma_semaphore, #tpu.memory_space<semaphore_mem>>
      tpu.enqueue_dma source(%116 : memref<1x256xf32, #tpu.memory_space<any>>) target(%117 : memref<1x256xf32, #tpu.memory_space<vmem>>) target_semaphore(%119 : memref<!tpu.dma_semaphore, #tpu.memory_space<semaphore_mem>>)
      %c0_i32_67 = arith.constant 0 : i32
      %c0_i32_68 = arith.constant 0 : i32
      %c0_i32_69 = arith.constant 0 : i32
      %120 = tpu.memref_slice %arg3[%c0_i32_68, %c0_i32_69] : memref<64x256xf32, #tpu.memory_space<any>> -> memref<1x256xf32, #tpu.memory_space<any>>
      %c0_i32_70 = arith.constant 0 : i32
      %c0_i32_71 = arith.constant 0 : i32
      %121 = tpu.memref_slice %arg9[%c0_i32_70, %c0_i32_71] : memref<16x256xf32, #tpu.memory_space<vmem>> -> memref<1x256xf32, #tpu.memory_space<vmem>>
      %122 = tpu.memref_slice %arg10[%c0_i32_67] : memref<16x!tpu.dma_semaphore, #tpu.memory_space<semaphore_mem>> -> memref<1x!tpu.dma_semaphore, #tpu.memory_space<semaphore_mem>>
      %123 = tpu.memref_squeeze %122 : memref<1x!tpu.dma_semaphore, #tpu.memory_space<semaphore_mem>> -> memref<!tpu.dma_semaphore, #tpu.memory_space<semaphore_mem>>
      tpu.wait_dma2 semaphore(%123 : memref<!tpu.dma_semaphore, #tpu.memory_space<semaphore_mem>>) src(%120 : memref<1x256xf32, #tpu.memory_space<any>>) dst(%121 : memref<1x256xf32, #tpu.memory_space<vmem>>)
      %c1_i32_72 = arith.constant 1 : i32
      %c0_i32_73 = arith.constant 0 : i32
      %c0_i32_74 = arith.constant 0 : i32
      %124 = tpu.memref_slice %arg3[%c0_i32_73, %c0_i32_74] : memref<64x256xf32, #tpu.memory_space<any>> -> memref<1x256xf32, #tpu.memory_space<any>>
      %c1_i32_75 = arith.constant 1 : i32
      %c0_i32_76 = arith.constant 0 : i32
      %125 = tpu.memref_slice %arg9[%c1_i32_75, %c0_i32_76] : memref<16x256xf32, #tpu.memory_space<vmem>> -> memref<1x256xf32, #tpu.memory_space<vmem>>
      %126 = tpu.memref_slice %arg10[%c1_i32_72] : memref<16x!tpu.dma_semaphore, #tpu.memory_space<semaphore_mem>> -> memref<1x!tpu.dma_semaphore, #tpu.memory_space<semaphore_mem>>
      %127 = tpu.memref_squeeze %126 : memref<1x!tpu.dma_semaphore, #tpu.memory_space<semaphore_mem>> -> memref<!tpu.dma_semaphore, #tpu.memory_space<semaphore_mem>>
      tpu.wait_dma2 semaphore(%127 : memref<!tpu.dma_semaphore, #tpu.memory_space<semaphore_mem>>) src(%124 : memref<1x256xf32, #tpu.memory_space<any>>) dst(%125 : memref<1x256xf32, #tpu.memory_space<vmem>>)
      %c2_i32_77 = arith.constant 2 : i32
      %c0_i32_78 = arith.constant 0 : i32
      %c0_i32_79 = arith.constant 0 : i32
      %128 = tpu.memref_slice %arg3[%c0_i32_78, %c0_i32_79] : memref<64x256xf32, #tpu.memory_space<any>> -> memref<1x256xf32, #tpu.memory_space<any>>
      %c2_i32_80 = arith.constant 2 : i32
      %c0_i32_81 = arith.constant 0 : i32
      %129 = tpu.memref_slice %arg9[%c2_i32_80, %c0_i32_81] : memref<16x256xf32, #tpu.memory_space<vmem>> -> memref<1x256xf32, #tpu.memory_space<vmem>>
      %130 = tpu.memref_slice %arg10[%c2_i32_77] : memref<16x!tpu.dma_semaphore, #tpu.memory_space<semaphore_mem>> -> memref<1x!tpu.dma_semaphore, #tpu.memory_space<semaphore_mem>>
      %131 = tpu.memref_squeeze %130 : memref<1x!tpu.dma_semaphore, #tpu.memory_space<semaphore_mem>> -> memref<!tpu.dma_semaphore, #tpu.memory_space<semaphore_mem>>
      tpu.wait_dma2 semaphore(%131 : memref<!tpu.dma_semaphore, #tpu.memory_space<semaphore_mem>>) src(%128 : memref<1x256xf32, #tpu.memory_space<any>>) dst(%129 : memref<1x256xf32, #tpu.memory_space<vmem>>)
      %c3_i32_82 = arith.constant 3 : i32
      %c0_i32_83 = arith.constant 0 : i32
      %c0_i32_84 = arith.constant 0 : i32
      %132 = tpu.memref_slice %arg3[%c0_i32_83, %c0_i32_84] : memref<64x256xf32, #tpu.memory_space<any>> -> memref<1x256xf32, #tpu.memory_space<any>>
      %c3_i32_85 = arith.constant 3 : i32
      %c0_i32_86 = arith.constant 0 : i32
      %133 = tpu.memref_slice %arg9[%c3_i32_85, %c0_i32_86] : memref<16x256xf32, #tpu.memory_space<vmem>> -> memref<1x256xf32, #tpu.memory_space<vmem>>
      %134 = tpu.memref_slice %arg10[%c3_i32_82] : memref<16x!tpu.dma_semaphore, #tpu.memory_space<semaphore_mem>> -> memref<1x!tpu.dma_semaphore, #tpu.memory_space<semaphore_mem>>
      %135 = tpu.memref_squeeze %134 : memref<1x!tpu.dma_semaphore, #tpu.memory_space<semaphore_mem>> -> memref<!tpu.dma_semaphore, #tpu.memory_space<semaphore_mem>>
      tpu.wait_dma2 semaphore(%135 : memref<!tpu.dma_semaphore, #tpu.memory_space<semaphore_mem>>) src(%132 : memref<1x256xf32, #tpu.memory_space<any>>) dst(%133 : memref<1x256xf32, #tpu.memory_space<vmem>>)
      %c4_i32_87 = arith.constant 4 : i32
      %c0_i32_88 = arith.constant 0 : i32
      %c0_i32_89 = arith.constant 0 : i32
      %136 = tpu.memref_slice %arg3[%c0_i32_88, %c0_i32_89] : memref<64x256xf32, #tpu.memory_space<any>> -> memref<1x256xf32, #tpu.memory_space<any>>
      %c4_i32_90 = arith.constant 4 : i32
      %c0_i32_91 = arith.constant 0 : i32
      %137 = tpu.memref_slice %arg9[%c4_i32_90, %c0_i32_91] : memref<16x256xf32, #tpu.memory_space<vmem>> -> memref<1x256xf32, #tpu.memory_space<vmem>>
      %138 = tpu.memref_slice %arg10[%c4_i32_87] : memref<16x!tpu.dma_semaphore, #tpu.memory_space<semaphore_mem>> -> memref<1x!tpu.dma_semaphore, #tpu.memory_space<semaphore_mem>>
      %139 = tpu.memref_squeeze %138 : memref<1x!tpu.dma_semaphore, #tpu.memory_space<semaphore_mem>> -> memref<!tpu.dma_semaphore, #tpu.memory_space<semaphore_mem>>
      tpu.wait_dma2 semaphore(%139 : memref<!tpu.dma_semaphore, #tpu.memory_space<semaphore_mem>>) src(%136 : memref<1x256xf32, #tpu.memory_space<any>>) dst(%137 : memref<1x256xf32, #tpu.memory_space<vmem>>)
      %c5_i32_92 = arith.constant 5 : i32
      %c0_i32_93 = arith.constant 0 : i32
      %c0_i32_94 = arith.constant 0 : i32
      %140 = tpu.memref_slice %arg3[%c0_i32_93, %c0_i32_94] : memref<64x256xf32, #tpu.memory_space<any>> -> memref<1x256xf32, #tpu.memory_space<any>>
      %c5_i32_95 = arith.constant 5 : i32
      %c0_i32_96 = arith.constant 0 : i32
      %141 = tpu.memref_slice %arg9[%c5_i32_95, %c0_i32_96] : memref<16x256xf32, #tpu.memory_space<vmem>> -> memref<1x256xf32, #tpu.memory_space<vmem>>
      %142 = tpu.memref_slice %arg10[%c5_i32_92] : memref<16x!tpu.dma_semaphore, #tpu.memory_space<semaphore_mem>> -> memref<1x!tpu.dma_semaphore, #tpu.memory_space<semaphore_mem>>
      %143 = tpu.memref_squeeze %142 : memref<1x!tpu.dma_semaphore, #tpu.memory_space<semaphore_mem>> -> memref<!tpu.dma_semaphore, #tpu.memory_space<semaphore_mem>>
      tpu.wait_dma2 semaphore(%143 : memref<!tpu.dma_semaphore, #tpu.memory_space<semaphore_mem>>) src(%140 : memref<1x256xf32, #tpu.memory_space<any>>) dst(%141 : memref<1x256xf32, #tpu.memory_space<vmem>>)
      %c6_i32_97 = arith.constant 6 : i32
      %c0_i32_98 = arith.constant 0 : i32
      %c0_i32_99 = arith.constant 0 : i32
      %144 = tpu.memref_slice %arg3[%c0_i32_98, %c0_i32_99] : memref<64x256xf32, #tpu.memory_space<any>> -> memref<1x256xf32, #tpu.memory_space<any>>
      %c6_i32_100 = arith.constant 6 : i32
      %c0_i32_101 = arith.constant 0 : i32
      %145 = tpu.memref_slice %arg9[%c6_i32_100, %c0_i32_101] : memref<16x256xf32, #tpu.memory_space<vmem>> -> memref<1x256xf32, #tpu.memory_space<vmem>>
      %146 = tpu.memref_slice %arg10[%c6_i32_97] : memref<16x!tpu.dma_semaphore, #tpu.memory_space<semaphore_mem>> -> memref<1x!tpu.dma_semaphore, #tpu.memory_space<semaphore_mem>>
      %147 = tpu.memref_squeeze %146 : memref<1x!tpu.dma_semaphore, #tpu.memory_space<semaphore_mem>> -> memref<!tpu.dma_semaphore, #tpu.memory_space<semaphore_mem>>
      tpu.wait_dma2 semaphore(%147 : memref<!tpu.dma_semaphore, #tpu.memory_space<semaphore_mem>>) src(%144 : memref<1x256xf32, #tpu.memory_space<any>>) dst(%145 : memref<1x256xf32, #tpu.memory_space<vmem>>)
      %c7_i32_102 = arith.constant 7 : i32
      %c0_i32_103 = arith.constant 0 : i32
      %c0_i32_104 = arith.constant 0 : i32
      %148 = tpu.memref_slice %arg3[%c0_i32_103, %c0_i32_104] : memref<64x256xf32, #tpu.memory_space<any>> -> memref<1x256xf32, #tpu.memory_space<any>>
      %c7_i32_105 = arith.constant 7 : i32
      %c0_i32_106 = arith.constant 0 : i32
      %149 = tpu.memref_slice %arg9[%c7_i32_105, %c0_i32_106] : memref<16x256xf32, #tpu.memory_space<vmem>> -> memref<1x256xf32, #tpu.memory_space<vmem>>
      %150 = tpu.memref_slice %arg10[%c7_i32_102] : memref<16x!tpu.dma_semaphore, #tpu.memory_space<semaphore_mem>> -> memref<1x!tpu.dma_semaphore, #tpu.memory_space<semaphore_mem>>
      %151 = tpu.memref_squeeze %150 : memref<1x!tpu.dma_semaphore, #tpu.memory_space<semaphore_mem>> -> memref<!tpu.dma_semaphore, #tpu.memory_space<semaphore_mem>>
      tpu.wait_dma2 semaphore(%151 : memref<!tpu.dma_semaphore, #tpu.memory_space<semaphore_mem>>) src(%148 : memref<1x256xf32, #tpu.memory_space<any>>) dst(%149 : memref<1x256xf32, #tpu.memory_space<vmem>>)
      %c8_i32_107 = arith.constant 8 : i32
      %c0_i32_108 = arith.constant 0 : i32
      %c0_i32_109 = arith.constant 0 : i32
      %152 = tpu.memref_slice %arg3[%c0_i32_108, %c0_i32_109] : memref<64x256xf32, #tpu.memory_space<any>> -> memref<1x256xf32, #tpu.memory_space<any>>
      %c8_i32_110 = arith.constant 8 : i32
      %c0_i32_111 = arith.constant 0 : i32
      %153 = tpu.memref_slice %arg9[%c8_i32_110, %c0_i32_111] : memref<16x256xf32, #tpu.memory_space<vmem>> -> memref<1x256xf32, #tpu.memory_space<vmem>>
      %154 = tpu.memref_slice %arg10[%c8_i32_107] : memref<16x!tpu.dma_semaphore, #tpu.memory_space<semaphore_mem>> -> memref<1x!tpu.dma_semaphore, #tpu.memory_space<semaphore_mem>>
      %155 = tpu.memref_squeeze %154 : memref<1x!tpu.dma_semaphore, #tpu.memory_space<semaphore_mem>> -> memref<!tpu.dma_semaphore, #tpu.memory_space<semaphore_mem>>
      tpu.wait_dma2 semaphore(%155 : memref<!tpu.dma_semaphore, #tpu.memory_space<semaphore_mem>>) src(%152 : memref<1x256xf32, #tpu.memory_space<any>>) dst(%153 : memref<1x256xf32, #tpu.memory_space<vmem>>)
      %c9_i32_112 = arith.constant 9 : i32
      %c0_i32_113 = arith.constant 0 : i32
      %c0_i32_114 = arith.constant 0 : i32
      %156 = tpu.memref_slice %arg3[%c0_i32_113, %c0_i32_114] : memref<64x256xf32, #tpu.memory_space<any>> -> memref<1x256xf32, #tpu.memory_space<any>>
      %c9_i32_115 = arith.constant 9 : i32
      %c0_i32_116 = arith.constant 0 : i32
      %157 = tpu.memref_slice %arg9[%c9_i32_115, %c0_i32_116] : memref<16x256xf32, #tpu.memory_space<vmem>> -> memref<1x256xf32, #tpu.memory_space<vmem>>
      %158 = tpu.memref_slice %arg10[%c9_i32_112] : memref<16x!tpu.dma_semaphore, #tpu.memory_space<semaphore_mem>> -> memref<1x!tpu.dma_semaphore, #tpu.memory_space<semaphore_mem>>
      %159 = tpu.memref_squeeze %158 : memref<1x!tpu.dma_semaphore, #tpu.memory_space<semaphore_mem>> -> memref<!tpu.dma_semaphore, #tpu.memory_space<semaphore_mem>>
      tpu.wait_dma2 semaphore(%159 : memref<!tpu.dma_semaphore, #tpu.memory_space<semaphore_mem>>) src(%156 : memref<1x256xf32, #tpu.memory_space<any>>) dst(%157 : memref<1x256xf32, #tpu.memory_space<vmem>>)
      %c10_i32_117 = arith.constant 10 : i32
      %c0_i32_118 = arith.constant 0 : i32
      %c0_i32_119 = arith.constant 0 : i32
      %160 = tpu.memref_slice %arg3[%c0_i32_118, %c0_i32_119] : memref<64x256xf32, #tpu.memory_space<any>> -> memref<1x256xf32, #tpu.memory_space<any>>
      %c10_i32_120 = arith.constant 10 : i32
      %c0_i32_121 = arith.constant 0 : i32
      %161 = tpu.memref_slice %arg9[%c10_i32_120, %c0_i32_121] : memref<16x256xf32, #tpu.memory_space<vmem>> -> memref<1x256xf32, #tpu.memory_space<vmem>>
      %162 = tpu.memref_slice %arg10[%c10_i32_117] : memref<16x!tpu.dma_semaphore, #tpu.memory_space<semaphore_mem>> -> memref<1x!tpu.dma_semaphore, #tpu.memory_space<semaphore_mem>>
      %163 = tpu.memref_squeeze %162 : memref<1x!tpu.dma_semaphore, #tpu.memory_space<semaphore_mem>> -> memref<!tpu.dma_semaphore, #tpu.memory_space<semaphore_mem>>
      tpu.wait_dma2 semaphore(%163 : memref<!tpu.dma_semaphore, #tpu.memory_space<semaphore_mem>>) src(%160 : memref<1x256xf32, #tpu.memory_space<any>>) dst(%161 : memref<1x256xf32, #tpu.memory_space<vmem>>)
      %c11_i32_122 = arith.constant 11 : i32
      %c0_i32_123 = arith.constant 0 : i32
      %c0_i32_124 = arith.constant 0 : i32
      %164 = tpu.memref_slice %arg3[%c0_i32_123, %c0_i32_124] : memref<64x256xf32, #tpu.memory_space<any>> -> memref<1x256xf32, #tpu.memory_space<any>>
      %c11_i32_125 = arith.constant 11 : i32
      %c0_i32_126 = arith.constant 0 : i32
      %165 = tpu.memref_slice %arg9[%c11_i32_125, %c0_i32_126] : memref<16x256xf32, #tpu.memory_space<vmem>> -> memref<1x256xf32, #tpu.memory_space<vmem>>
      %166 = tpu.memref_slice %arg10[%c11_i32_122] : memref<16x!tpu.dma_semaphore, #tpu.memory_space<semaphore_mem>> -> memref<1x!tpu.dma_semaphore, #tpu.memory_space<semaphore_mem>>
      %167 = tpu.memref_squeeze %166 : memref<1x!tpu.dma_semaphore, #tpu.memory_space<semaphore_mem>> -> memref<!tpu.dma_semaphore, #tpu.memory_space<semaphore_mem>>
      tpu.wait_dma2 semaphore(%167 : memref<!tpu.dma_semaphore, #tpu.memory_space<semaphore_mem>>) src(%164 : memref<1x256xf32, #tpu.memory_space<any>>) dst(%165 : memref<1x256xf32, #tpu.memory_space<vmem>>)
      %c12_i32_127 = arith.constant 12 : i32
      %c0_i32_128 = arith.constant 0 : i32
      %c0_i32_129 = arith.constant 0 : i32
      %168 = tpu.memref_slice %arg3[%c0_i32_128, %c0_i32_129] : memref<64x256xf32, #tpu.memory_space<any>> -> memref<1x256xf32, #tpu.memory_space<any>>
      %c12_i32_130 = arith.constant 12 : i32
      %c0_i32_131 = arith.constant 0 : i32
      %169 = tpu.memref_slice %arg9[%c12_i32_130, %c0_i32_131] : memref<16x256xf32, #tpu.memory_space<vmem>> -> memref<1x256xf32, #tpu.memory_space<vmem>>
      %170 = tpu.memref_slice %arg10[%c12_i32_127] : memref<16x!tpu.dma_semaphore, #tpu.memory_space<semaphore_mem>> -> memref<1x!tpu.dma_semaphore, #tpu.memory_space<semaphore_mem>>
      %171 = tpu.memref_squeeze %170 : memref<1x!tpu.dma_semaphore, #tpu.memory_space<semaphore_mem>> -> memref<!tpu.dma_semaphore, #tpu.memory_space<semaphore_mem>>
      tpu.wait_dma2 semaphore(%171 : memref<!tpu.dma_semaphore, #tpu.memory_space<semaphore_mem>>) src(%168 : memref<1x256xf32, #tpu.memory_space<any>>) dst(%169 : memref<1x256xf32, #tpu.memory_space<vmem>>)
      %c13_i32_132 = arith.constant 13 : i32
      %c0_i32_133 = arith.constant 0 : i32
      %c0_i32_134 = arith.constant 0 : i32
      %172 = tpu.memref_slice %arg3[%c0_i32_133, %c0_i32_134] : memref<64x256xf32, #tpu.memory_space<any>> -> memref<1x256xf32, #tpu.memory_space<any>>
      %c13_i32_135 = arith.constant 13 : i32
      %c0_i32_136 = arith.constant 0 : i32
      %173 = tpu.memref_slice %arg9[%c13_i32_135, %c0_i32_136] : memref<16x256xf32, #tpu.memory_space<vmem>> -> memref<1x256xf32, #tpu.memory_space<vmem>>
      %174 = tpu.memref_slice %arg10[%c13_i32_132] : memref<16x!tpu.dma_semaphore, #tpu.memory_space<semaphore_mem>> -> memref<1x!tpu.dma_semaphore, #tpu.memory_space<semaphore_mem>>
      %175 = tpu.memref_squeeze %174 : memref<1x!tpu.dma_semaphore, #tpu.memory_space<semaphore_mem>> -> memref<!tpu.dma_semaphore, #tpu.memory_space<semaphore_mem>>
      tpu.wait_dma2 semaphore(%175 : memref<!tpu.dma_semaphore, #tpu.memory_space<semaphore_mem>>) src(%172 : memref<1x256xf32, #tpu.memory_space<any>>) dst(%173 : memref<1x256xf32, #tpu.memory_space<vmem>>)
      %c14_i32_137 = arith.constant 14 : i32
      %c0_i32_138 = arith.constant 0 : i32
      %c0_i32_139 = arith.constant 0 : i32
      %176 = tpu.memref_slice %arg3[%c0_i32_138, %c0_i32_139] : memref<64x256xf32, #tpu.memory_space<any>> -> memref<1x256xf32, #tpu.memory_space<any>>
      %c14_i32_140 = arith.constant 14 : i32
      %c0_i32_141 = arith.constant 0 : i32
      %177 = tpu.memref_slice %arg9[%c14_i32_140, %c0_i32_141] : memref<16x256xf32, #tpu.memory_space<vmem>> -> memref<1x256xf32, #tpu.memory_space<vmem>>
      %178 = tpu.memref_slice %arg10[%c14_i32_137] : memref<16x!tpu.dma_semaphore, #tpu.memory_space<semaphore_mem>> -> memref<1x!tpu.dma_semaphore, #tpu.memory_space<semaphore_mem>>
      %179 = tpu.memref_squeeze %178 : memref<1x!tpu.dma_semaphore, #tpu.memory_space<semaphore_mem>> -> memref<!tpu.dma_semaphore, #tpu.memory_space<semaphore_mem>>
      tpu.wait_dma2 semaphore(%179 : memref<!tpu.dma_semaphore, #tpu.memory_space<semaphore_mem>>) src(%176 : memref<1x256xf32, #tpu.memory_space<any>>) dst(%177 : memref<1x256xf32, #tpu.memory_space<vmem>>)
      %c15_i32_142 = arith.constant 15 : i32
      %c0_i32_143 = arith.constant 0 : i32
      %c0_i32_144 = arith.constant 0 : i32
      %180 = tpu.memref_slice %arg3[%c0_i32_143, %c0_i32_144] : memref<64x256xf32, #tpu.memory_space<any>> -> memref<1x256xf32, #tpu.memory_space<any>>
      %c15_i32_145 = arith.constant 15 : i32
      %c0_i32_146 = arith.constant 0 : i32
      %181 = tpu.memref_slice %arg9[%c15_i32_145, %c0_i32_146] : memref<16x256xf32, #tpu.memory_space<vmem>> -> memref<1x256xf32, #tpu.memory_space<vmem>>
      %182 = tpu.memref_slice %arg10[%c15_i32_142] : memref<16x!tpu.dma_semaphore, #tpu.memory_space<semaphore_mem>> -> memref<1x!tpu.dma_semaphore, #tpu.memory_space<semaphore_mem>>
      %183 = tpu.memref_squeeze %182 : memref<1x!tpu.dma_semaphore, #tpu.memory_space<semaphore_mem>> -> memref<!tpu.dma_semaphore, #tpu.memory_space<semaphore_mem>>
      tpu.wait_dma2 semaphore(%183 : memref<!tpu.dma_semaphore, #tpu.memory_space<semaphore_mem>>) src(%180 : memref<1x256xf32, #tpu.memory_space<any>>) dst(%181 : memref<1x256xf32, #tpu.memory_space<vmem>>)
    } else {
    }
    %c0 = arith.constant 0 : index
    %c0_1 = arith.constant 0 : index
    %3 = vector.load %arg9[%c0, %c0_1] : memref<16x256xf32, #tpu.memory_space<vmem>>, vector<16x256xf32>
    %4 = arith.truncf %3 : vector<16x256xf32> to vector<16x256xbf16>
    %c0_2 = arith.constant 0 : index
    %c0_3 = arith.constant 0 : index
    %c0_4 = arith.constant 0 : index
    %5 = vector.load %arg4[%c0_2, %c0_3, %c0_4] : memref<1x256x512xbf16, #tpu.memory_space<vmem>>, vector<1x256x512xbf16>
    %6 = vector.shape_cast %5 : vector<1x256x512xbf16> to vector<256x512xbf16>
    %cst = arith.constant dense<0.000000e+00> : vector<16x512xf32>
    %7 = tpu.matmul %4, %6, %cst {dimension_numbers = #tpu.dot_dimension_numbers<[1], [0], [0], [1], [0, 0, 1, 1], [], []>} : vector<16x256xbf16>, vector<256x512xbf16>, vector<16x512xf32> -> vector<16x512xf32>
    %c0_5 = arith.constant 0 : index
    %c0_6 = arith.constant 0 : index
    %c0_7 = arith.constant 0 : index
    %8 = vector.load %arg5[%c0_5, %c0_6, %c0_7] : memref<1x1x512xf32, #tpu.memory_space<vmem>>, vector<1x1x512xf32>
    %9 = vector.shape_cast %8 : vector<1x1x512xf32> to vector<1x512xf32>
    %10 = vector.broadcast %9 : vector<1x512xf32> to vector<16x512xf32>
    %11 = arith.addf %7, %10 : vector<16x512xf32>
    %cst_8 = arith.constant 0.000000e+00 : f32
    %12 = vector.broadcast %cst_8 : f32 to vector<16x512xf32>
    %13 = arith.maximumf %11, %12 : vector<16x512xf32>
    %14 = arith.truncf %13 : vector<16x512xf32> to vector<16x512xbf16>
    %c0_9 = arith.constant 0 : index
    %c0_10 = arith.constant 0 : index
    %c0_11 = arith.constant 0 : index
    %15 = vector.load %arg6[%c0_9, %c0_10, %c0_11] : memref<1x512x256xbf16, #tpu.memory_space<vmem>>, vector<1x512x256xbf16>
    %16 = vector.shape_cast %15 : vector<1x512x256xbf16> to vector<512x256xbf16>
    %cst_12 = arith.constant dense<0.000000e+00> : vector<16x256xf32>
    %17 = tpu.matmul %14, %16, %cst_12 {dimension_numbers = #tpu.dot_dimension_numbers<[1], [0], [0], [1], [0, 0, 1, 1], [], []>} : vector<16x512xbf16>, vector<512x256xbf16>, vector<16x256xf32> -> vector<16x256xf32>
    %c0_i32_13 = arith.constant 0 : i32
    %18 = arith.cmpi eq, %arg1, %c0_i32_13 : i32
    %19 = arith.extui %18 : i1 to i32
    %c0_i32_14 = arith.constant 0 : i32
    %20 = arith.cmpi ne, %19, %c0_i32_14 : i32
    scf.if %20 {
      %c0_17 = arith.constant 0 : index
      %c0_18 = arith.constant 0 : index
      %c0_19 = arith.constant 0 : index
      %24 = vector.load %arg7[%c0_17, %c0_18, %c0_19] : memref<1x1x256xf32, #tpu.memory_space<vmem>>, vector<1x1x256xf32>
      %25 = vector.shape_cast %24 : vector<1x1x256xf32> to vector<1x256xf32>
      %26 = vector.broadcast %25 : vector<1x256xf32> to vector<16x256xf32>
      %27 = arith.addf %17, %26 : vector<16x256xf32>
      %c0_20 = arith.constant 0 : index
      %c0_21 = arith.constant 0 : index
      %c0_22 = arith.constant 0 : index
      %28 = vector.load %arg8[%c0_20, %c0_21, %c0_22] : memref<1x16x256xf32, #tpu.memory_space<vmem>>, vector<1x16x256xf32>
      %29 = vector.shape_cast %28 : vector<1x16x256xf32> to vector<16x256xf32>
      %30 = vector.shape_cast %27 : vector<16x256xf32> to vector<1x16x256xf32>
      tpu.vector_store %arg8[%c0_20, %c0_21, %c0_22], %30 {strides = array<i32>} : memref<1x16x256xf32, #tpu.memory_space<vmem>>, vector<1x16x256xf32>,
    } else {
    }
    %c0_i32_15 = arith.constant 0 : i32
    %21 = arith.cmpi ne, %arg1, %c0_i32_15 : i32
    %22 = arith.extui %21 : i1 to i32
    %c0_i32_16 = arith.constant 0 : i32
    %23 = arith.cmpi ne, %22, %c0_i32_16 : i32
    scf.if %23 {
      %c0_17 = arith.constant 0 : index
      %c0_18 = arith.constant 0 : index
      %c0_19 = arith.constant 0 : index
      %24 = vector.load %arg8[%c0_17, %c0_18, %c0_19] : memref<1x16x256xf32, #tpu.memory_space<vmem>>, vector<1x16x256xf32>
      %25 = vector.shape_cast %24 : vector<1x16x256xf32> to vector<16x256xf32>
      %26 = arith.addf %25, %17 : vector<16x256xf32>
      %c0_20 = arith.constant 0 : index
      %c0_21 = arith.constant 0 : index
      %c0_22 = arith.constant 0 : index
      %27 = vector.load %arg8[%c0_20, %c0_21, %c0_22] : memref<1x16x256xf32, #tpu.memory_space<vmem>>, vector<1x16x256xf32>
      %28 = vector.shape_cast %27 : vector<1x16x256xf32> to vector<16x256xf32>
      %29 = vector.shape_cast %26 : vector<16x256xf32> to vector<1x16x256xf32>
      tpu.vector_store %arg8[%c0_20, %c0_21, %c0_22], %29 {strides = array<i32>} : memref<1x16x256xf32, #tpu.memory_space<vmem>>, vector<1x16x256xf32>,
    } else {
    }
    return
  }
  func.func @transform_1(%arg0: i32, %arg1: i32, %arg2: memref<8x16xi32, #tpu.memory_space<smem>>) -> (i32, i32, i32) {
    %c0_i32 = arith.constant 0 : i32
    %c0_i32_0 = arith.constant 0 : i32
    return %arg0, %c0_i32, %arg1 : i32, i32, i32
  }
  func.func @transform_2(%arg0: i32, %arg1: i32, %arg2: memref<8x16xi32, #tpu.memory_space<smem>>) -> (i32, i32, i32) {
    %c0_i32 = arith.constant 0 : i32
    %c0_i32_0 = arith.constant 0 : i32
    return %arg0, %c0_i32, %arg1 : i32, i32, i32
  }
  func.func @transform_3(%arg0: i32, %arg1: i32, %arg2: memref<8x16xi32, #tpu.memory_space<smem>>) -> (i32, i32, i32) {
    %c0_i32 = arith.constant 0 : i32
    %c0_i32_0 = arith.constant 0 : i32
    return %arg0, %arg1, %c0_i32 : i32, i32, i32
  }
  func.func @transform_4(%arg0: i32, %arg1: i32, %arg2: memref<8x16xi32, #tpu.memory_space<smem>>) -> (i32, i32, i32) {
    %c0_i32 = arith.constant 0 : i32
    %c0_i32_0 = arith.constant 0 : i32
    %c0_i32_1 = arith.constant 0 : i32
    return %arg0, %c0_i32, %c0_i32_0 : i32, i32, i32
  }
  func.func @transform_5(%arg0: i32, %arg1: i32, %arg2: memref<8x16xi32, #tpu.memory_space<smem>>) -> (i32, i32, i32) {
    %c0_i32 = arith.constant 0 : i32
    %c0_i32_0 = arith.constant 0 : i32
    %c0_i32_1 = arith.constant 0 : i32
    return %arg0, %c0_i32, %c0_i32_0 : i32, i32, i32
  }
}

</mosaic_0001>

<bundles_post_ra>
// kernel: _lambda_.8
= control target key start
LH: loop header
LB: loop body
LE: loop exit
PB: predicated region body
PF: predicated region fallthrough
CT: control target
= control target key end

     0   :  { %12 = vsyncpa [#allocation3], 0  ;;  %s1256_s0 = inlined_call_operand.vmem [shape: f32[64,256], index: 0, kind: input, shape index: {}]   ;;  %s1257_s1 = inlined_call_operand.hbm [shape: f32[1,256], index: 1, kind: input, shape index: {}]   ;;  %s1258_s2 = inlined_call_operand.hbm [shape: f32[1,256], index: 2, kind: input, shape index: {}]   ;;  %s1259_s3 = inlined_call_operand.hbm [shape: bf16[256,128], index: 3, kind: input, shape index: {}]   ;;  %s1260_s4 = inlined_call_operand.hbm [shape: f32[1,128], index: 4, kind: input, shape index: {}]   ;;  %s1261_s5 = inlined_call_operand.vmem [shape: f32[64,256], index: 5, kind: output, shape index: {0}]   ;;  %s1262_s6 = inlined_call_operand.vmem [shape: f32[64,128], index: 6, kind: output, shape index: {1}]  }
   0x1   :  { %13 = vsyncpa [#allocation5], 0 }
   0x2   :  { %14 = vsyncpa [#allocation8], 0  ;;  %s1100_s21 = smov 0  }
   0x3 LB: > { %s1059_s22 = smov [#allocation4]   ;;  %s774_s24 = sadd.s32 4294967295, %s1057_s21   ;;  %s1057_s21 = sphi %s1100_s21, %s20_s21  }
   0x4   : > { %s211_s23 = sshll.u32 %s1059_s22, 4  ;;  %p776_p0 = scmp.ge.s32.totalorder %s1057_s21, 1  ;;  %s212_s23 = int_to_ptr.vmem [resolvable:$true] %s211_s23 }
   0x5   : > { %p187_p1 = scmp.lt.s32.totalorder %s1057_s21, 3  ;;  %p1110_p2 = scmp.eq.s32.totalorder %s774_s24, 0 }
   0x6   : > { %s1060_s27 = smov [#allocation2]   ;;  %s1061_s29 = smov [#allocation6]  }
   0x7   : > { %s1266_s25 = scalar_select %p1110_p2, 1, 0 }
   0x8   : > { %p1114_p3 = pnand %p776_p0, %p187_p1  ;;  %s200_s28 = sshll.u32 %s1060_s27, 4  ;;  %s201_s28 = int_to_ptr.vmem [resolvable:$true] %s200_s28 }
   0x9   : > { %s221_s30 = sshll.u32 %s1061_s29, 4  ;;  %s1062_s8 = smov [#allocation7]   ;;  %s1126_s30 = int_to_ptr.vmem [resolvable:$true] %s221_s30 }
   0xa   : > { %s1267_s26 = scalar_select %p1114_p3, 1, 0 }
   0xb   : > { %p876_p4 = pneg %p1114_p3  ;;  %s1128_s9 = sshll.u32 %s1062_s8, 4  ;;  %s236_s9 = int_to_ptr.vmem [resolvable:$true] %s1128_s9 }
   0xc   : > { %s946_s10 = scalar_lea.vmem %s212_s23, 32  ;;  %p954_p10 = scmp.lt.s32.totalorder %s212_s23, %s212_s23 }
   0xd   : > { %p1122_p5 = pnand %p1110_p2, %p876_p4  ;;  %p947_p7 = scmp.ne.s32.totalorder %s212_s23, %s946_s10 }
   0xe   : > { %p955_p11 = scmp.lt.s32.totalorder %s946_s10, %s946_s10 }
   0xf   : > { %p937_p6 = pneg %p1122_p5 }
  0x10   : > { %p956_p12 = por %p955_p11, %p954_p10 }
  0x11   : > { %p949_p8 = pnand %p947_p7, %p937_p6 }
  0x13   : > { %p950_p9 = pneg %p949_p8 }
  0x15   : > { %p957_p13 = pnand %p956_p12, %p950_p9 }
  0x17   : > { %960 = shalt.err (!%p957_p13)
}
  0x18   : > { %882 = dma.hbm_to_vmem [thread:$0]  (!%p1122_p5), %s1258_s2, 32, %s212_s23, [#allocation5]  }
  0x19   : > { %s972_s13 = scalar_lea.vmem %s201_s28, 32  ;;  %p980_p7 = scmp.lt.s32.totalorder %s201_s28, %s201_s28 }
  0x1a   : > { %p973_p0 = scmp.ne.s32.totalorder %s201_s28, %s972_s13  ;;  %p981_p8 = scmp.lt.s32.totalorder %s972_s13, %s972_s13 }
  0x1c   : > { %p975_p1 = pnand %p973_p0, %p937_p6  ;;  %p982_p2 = por %p981_p8, %p980_p7 }
  0x1e   : > { %p976_p4 = pneg %p975_p1 }
  0x20   : > { %p983_p3 = pnand %p982_p2, %p976_p4 }
  0x22   : > { %986 = shalt.err (!%p983_p3)
}
  0x23   : > { %879 = dma.hbm_to_vmem [thread:$0]  (!%p1122_p5), %s1257_s1, 32, %s201_s28, [#allocation3]  }
  0x24   : > { %s998_s16 = scalar_lea.vmem %s1126_s30, 2048  ;;  %p1006_p12 = scmp.lt.s32.totalorder %s1126_s30, %s1126_s30 }
  0x25   : > { %p999_p9 = scmp.ne.s32.totalorder %s1126_s30, %s998_s16  ;;  %p1007_p2 = scmp.lt.s32.totalorder %s998_s16, %s998_s16 }
  0x27   : > { %p1001_p10 = pnand %p999_p9, %p937_p6  ;;  %p1008_p3 = por %p1007_p2, %p1006_p12 }
  0x29   : > { %p1002_p11 = pneg %p1001_p10 }
  0x2b   : > { %p1009_p13 = pnand %p1008_p3, %p1002_p11 }
  0x2d   : > { %1012 = shalt.err (!%p1009_p13)
}
  0x2e   : > { %s1063_s17 = smov 64   ;;  %s1064_s18 = smov 4  }
  0x2f   : > { %885 = dma.hbm_to_vmem [thread:$0]  (!%p1122_p5), %s1259_s3, 2048, %s1126_s30, [#allocation5], %s1063_s17, %s1063_s17, %s1064_s18  }
  0x30   : > { %s1024_s22 = scalar_lea.vmem %s236_s9, 16  ;;  %s1031_s23 = scalar_lea.vmem %s236_s9, 32 }
  0x31   : > { %p1025_p0 = scmp.ne.s32.totalorder %s236_s9, %s1024_s22  ;;  %p1032_p7 = scmp.lt.s32.totalorder %s236_s9, %s236_s9 }
  0x32   : > { %p1033_p8 = scmp.lt.s32.totalorder %s1031_s23, %s1024_s22 }
  0x33   : > { %p1027_p1 = pnand %p1025_p0, %p937_p6 }
  0x34   : > { %p1034_p9 = por %p1033_p8, %p1032_p7 }
  0x35   : > { %p1028_p4 = pneg %p1027_p1 }
  0x37   : > { %p1035_p10 = pnand %p1034_p9, %p1028_p4 }
  0x39   : > { %1038 = shalt.err (!%p1035_p10)
}
  0x3a   : > { %888 = dma.hbm_to_vmem [thread:$0]  (!%p1122_p5), %s1260_s4, 16, %s236_s9, [#allocation8]  }
  0x3b   : > { %p1269_p11 = scmp.ne.s32.totalorder %s1267_s26, 0 }
  0x3c   : > { %p1270_p12 = scmp.ne.s32.totalorder (!%p1269_p11), %s1266_s25, 0 }
  0x3d   : > { %258 = sbr.rel (%p1269_p11) target bundleno = 603 (0x25b), region = 40 }
  0x42   : > { %1044 = dma.done.wait (%p1270_p12), [#allocation3], 32  }
  0x43   : > { %1046 = vsyncadd (%p1270_p12), [#allocation3], 4294967264 }
  0x44   : > { %1048 = dma.done.wait (%p1270_p12), [#allocation5], 2080  }
  0x45   : > { %1050 = vsyncadd (%p1270_p12), [#allocation5], 4294965216 }
  0x46   : > { %1052 = dma.done.wait (%p1270_p12), [#allocation8], 16  }
  0x47   : > { %1054 = vsyncadd (%p1270_p12), [#allocation8], 4294967280  ;;  %s787_s26 = sshll.u32 %s774_s24, 2  ;;  %v911_v12 = vld [vmem:[#allocation6 + $0x78] sm:$0xff]   ;;  %v913_v42 = vld [vmem:[#allocation6 + $0x70] sm:$0xff]   ;;  %v403_v63 = vlaneseq }
  0x48   : > { %p308_p5 = scmp.lt.s32.totalorder %s787_s26, 7  ;;  %816 = vmatprep.subr.bf16.mxu0 %v911_v12  ;;  %844 = vmatprep.subr.bf16.mxu1 %v911_v12  ;;  %v912_v41 = vld [vmem:[#allocation6 + $0x38] sm:$0xff]   ;;  %v914_v43 = vld [vmem:[#allocation6 + $0x30] sm:$0xff]   ;;  %v915_v44 = vld [vmem:[#allocation6 + $0x68] sm:$0xff]  }
  0x49   : > { %817 = vmatpush3.bf16.msra.mxu0 %v912_v41  ;;  %852 = vmatpush3.bf16.msra.mxu1 %v912_v41  ;;  %v916_v45 = vld [vmem:[#allocation6 + $0x28] sm:$0xff]   ;;  %v917_v46 = vld [vmem:[#allocation6 + $0x60] sm:$0xff]   ;;  %v919_v48 = vld [vmem:[#allocation6 + $0x58] sm:$0xff]  }
  0x4a   : > { %s1272_s26 = smov (!%p308_p5, %s787_s26), 7  ;;  %818 = vmatprep.subr.bf16.mxu0 %v913_v42  ;;  %845 = vmatprep.subr.bf16.mxu1 %v913_v42  ;;  %v918_v47 = vld [vmem:[#allocation6 + $0x20] sm:$0xff]   ;;  %v920_v49 = vld [vmem:[#allocation6 + $0x18] sm:$0xff]   ;;  %v921_v50 = vld [vmem:[#allocation6 + $0x50] sm:$0xff]  }
  0x4b   : > { %s814_s29 = sshll.u32 %s1272_s26, 4  ;;  %v922_v51 = vld [vmem:[#allocation6 + $0x10] sm:$0xff]   ;;  %v923_v52 = vld [vmem:[#allocation6 + $0x48] sm:$0xff]   ;;  %v925_v54 = vld [vmem:[#allocation6 + $0x40] sm:$0xff]   ;;  %s794_s10 = sshll.u32 %s1272_s26, 3 }
  0x4c   : > { %s312_s8 = scalar_lea.vmem %s1256_s0, %s814_s29  ;;  %v924_v53 = vld [vmem:[#allocation6 + $0x8] sm:$0xff]   ;;  %v926_v55 = vld [vmem:[#allocation6] sm:$0xff]   ;;  %s1233_s9 = scalar_lea.vmem %s1261_s5, %s814_s29 }
  0x4d   : > { %v328_v0 = vld [vmem:[%s312_s8] sm:$0xff]  ;;  %v329_v1 = vld [vmem:[%s312_s8 + $0x8] sm:$0xff]  ;;  %v330_v5 = vld [vmem:[%s312_s8 + $0x10] sm:$0xff]  ;;  %819 = vmatpush3.bf16.msra.mxu0 %v914_v43  ;;  %853 = vmatpush3.bf16.msra.mxu1 %v914_v43  ;;  %s325_s13 = scalar_lea.vmem %s1262_s6, %s794_s10 }
  0x4e   : > { %v332_v2 = vld [vmem:[%s312_s8 + $0x20] sm:$0xff]  ;;  %v336_v3 = vadd.f32 %v329_v1, %v328_v0  ;;  %v333_v4 = vld [vmem:[%s312_s8 + $0x28] sm:$0xff]  ;;  %v331_v6 = vld [vmem:[%s312_s8 + $0x18] sm:$0xff]  ;;  %820 = vmatprep.subr.bf16.mxu0 %v915_v44  ;;  %846 = vmatprep.subr.bf16.mxu1 %v915_v44 }
  0x4f   : > { %v342_v7 = vadd.f32 %v333_v4, %v332_v2  ;;  %v334_v8 = vld [vmem:[%s312_s8 + $0x30] sm:$0xff]  ;;  %v335_v9 = vld [vmem:[%s312_s8 + $0x38] sm:$0xff]  ;;  %v339_v10 = vadd.f32 %v331_v6, %v330_v5 }
  0x50   : > { %337 = vadd.xlane.f32.xlu0 %v336_v3  ;;  %v345_v11 = vadd.f32 %v335_v9, %v334_v8 }
  0x51   : > { %343 = vadd.xlane.f32.xlu1 %v342_v7  ;;  %821 = vmatpush3.bf16.msra.mxu0 %v916_v45 }
  0x52   : > { %854 = vmatpush3.bf16.msra.mxu1 %v916_v45  ;;  %822 = vmatprep.subr.bf16.mxu0 %v917_v46 }
  0x53   : > { %847 = vmatprep.subr.bf16.mxu1 %v917_v46 }
  0x54   : > { %340 = vadd.xlane.f32.xlu0 %v339_v10 }
  0x55   : > { %346 = vadd.xlane.f32.xlu1 %v345_v11  ;;  %823 = vmatpush3.bf16.msra.mxu0 %v918_v47 }
  0x56   : > { %855 = vmatpush3.bf16.msra.mxu1 %v918_v47  ;;  %824 = vmatprep.subr.bf16.mxu0 %v919_v48  ;;  %v795_v47 = vld [vmem:[#allocation7] ss:$0 sm:$0xff] }
  0x57   : > { %848 = vmatprep.subr.bf16.mxu1 %v919_v48 }
  0x59   : > { %825 = vmatpush3.bf16.msra.mxu0 %v920_v49 }
  0x5a   : > { %856 = vmatpush3.bf16.msra.mxu1 %v920_v49  ;;  %826 = vmatprep.subr.bf16.mxu0 %v921_v50 }
  0x5b   : > { %849 = vmatprep.subr.bf16.mxu1 %v921_v50 }
  0x5d   : > { %827 = vmatpush3.bf16.msra.mxu0 %v922_v51 }
  0x5e   : > { %857 = vmatpush3.bf16.msra.mxu1 %v922_v51  ;;  %828 = vmatprep.subr.bf16.mxu0 %v923_v52 }
  0x5f   : > { %850 = vmatprep.subr.bf16.mxu1 %v923_v52 }
  0x61   : > { %829 = vmatpush3.bf16.msra.mxu0 %v924_v53 }
  0x62   : > { %858 = vmatpush3.bf16.msra.mxu1 %v924_v53  ;;  %830 = vmatprep.subr.bf16.mxu0 %v925_v54 }
  0x63   : > { %851 = vmatprep.subr.bf16.mxu1 %v925_v54 }
  0x65   : > { %831 = vmatpush3.bf16.msra.mxu0 %v926_v55 }
  0x66   : > { %859 = vmatpush3.bf16.msra.mxu1 %v926_v55 }
  0xd9   : > { %v338_v13 = vpop.xlane.xlu0 %337 }
  0xda   : > { %v349_v14 = vmul.f32 0.00390625, %v338_v13  ;;  %v344_v15 = vpop.xlane.xlu1 %343 }
  0xdb   : > { %v351_v16 = vmul.f32 0.00390625, %v344_v15 }
  0xdc   : > { %v1194_v17 = vsub.f32 %v328_v0, %v349_v14  ;;  %v1196_v18 = vsub.f32 %v329_v1, %v349_v14 }
  0xdd   : > { %v1198_v19 = vsub.f32 %v332_v2, %v351_v16  ;;  %v1200_v20 = vsub.f32 %v333_v4, %v351_v16  ;;  %v341_v21 = vpop.xlane.xlu0 %340  ;;  %v404_v4 = vshrl.u32 %v403_v63, 7 }
  0xde   : > { %v350_v22 = vmul.f32 0.00390625, %v341_v21  ;;  %v347_v23 = vpop.xlane.xlu1 %346  ;;  %v361_v24 = vmul.f32 %v1194_v17, %v1194_v17  ;;  %v362_v25 = vmul.f32 %v1196_v18, %v1196_v18 }
  0xdf   : > { %v352_v26 = vmul.f32 0.00390625, %v347_v23  ;;  %v365_v27 = vmul.f32 %v1198_v19, %v1198_v19  ;;  %v366_v28 = vmul.f32 %v1200_v20, %v1200_v20  ;;  %v409_v7 = vsub.s32 1, %v404_v4 }
  0xe0   : > { %v1210_v29 = vsub.f32 %v330_v5, %v350_v22  ;;  %v1212_v30 = vsub.f32 %v331_v6, %v350_v22  ;;  %v369_v31 = vadd.f32 %v362_v25, %v361_v24  ;;  %v405_v6 = vsub.s32 0, %v404_v4 }
  0xe1   : > { %v1214_v32 = vsub.f32 %v334_v8, %v352_v26  ;;  %v1216_v33 = vsub.f32 %v335_v9, %v352_v26  ;;  %v375_v34 = vadd.f32 %v366_v28, %v365_v27  ;;  %v401_v8 = vld [vmem:[#allocation2] sm:$0x3]  ;;  %v421_v9 = vld [vmem:[#allocation4] sm:$0x3] }
  0xe2   : > { %370 = vadd.xlane.f32.xlu0 %v369_v31  ;;  %v363_v35 = vmul.f32 %v1210_v29, %v1210_v29  ;;  %v364_v36 = vmul.f32 %v1212_v30, %v1212_v30  ;;  %v406_v10 = vrot.slane %v401_v8, %v405_v6  ;;  %v410_v11 = vrot.slane %v401_v8, %v409_v7 }
  0xe3   : > { %v367_v37 = vmul.f32 %v1214_v32, %v1214_v32  ;;  %v368_v38 = vmul.f32 %v1216_v33, %v1216_v33  ;;  %v426_v14 = vrot.slane %v421_v9, %v405_v6  ;;  %v430_v15 = vrot.slane %v421_v9, %v409_v7 }
  0xe4   : > { %v372_v39 = vadd.f32 %v364_v36, %v363_v35 }
  0xe5   : > { %v378_v40 = vadd.f32 %v368_v38, %v367_v37 }
  0xe6   : > { %376 = vadd.xlane.f32.xlu0 %v375_v34  ;;  %373 = vadd.xlane.f32.xlu1 %v372_v39 }
  0xea   : > { %379 = vadd.xlane.f32.xlu1 %v378_v40 }
 0x16b   : > { %v371_v56 = vpop.xlane.xlu0 %370 }
 0x16c   : > { %v381_v57 = vmul.f32 0.00390625, %v371_v56 }
 0x16e   : > { %v385_v58 = vadd.f32 1e-05, %v381_v57 }
 0x16f   : > { %v374_v59 = vpop.xlane.xlu1 %373  ;;  %v377_v60 = vpop.xlane.xlu0 %376 }
 0x170   : > { %927 = vrsqrt.f32 %v385_v58  ;;  %v382_v61 = vmul.f32 0.00390625, %v374_v59  ;;  %v383_v62 = vmul.f32 0.00390625, %v377_v60 }
 0x172   : > { %v386_v0 = vadd.f32 1e-05, %v382_v61  ;;  %v387_v1 = vadd.f32 1e-05, %v383_v62 }
 0x173   : > { %v380_v2 = vpop.xlane.xlu1 %379 }
 0x174   : > { %929 = vrsqrt.f32 %v386_v0  ;;  %v384_v3 = vmul.f32 0.00390625, %v380_v2 }
 0x175   : > { %931 = vrsqrt.f32 %v387_v1 }
 0x176   : > { %v388_v5 = vadd.f32 1e-05, %v384_v3 }
 0x178   : > { %933 = vrsqrt.f32 %v388_v5 }
 0x17d   : > { %v928_v12 = vpop.eup %927 }
 0x17e   : > { %v394_v13 = vmul.f32 %v928_v12, %v1196_v18  ;;  %v393_v16 = vmul.f32 %v928_v12, %v1194_v17 }
 0x180   : > { %v414_v21 = vmul.f32 %v410_v11, %v394_v13  ;;  %v413_v22 = vmul.f32 %v406_v10, %v393_v16 }
 0x181   : > { %v930_v23 = vpop.eup %929 }
 0x182   : > { %v932_v24 = vpop.eup %931  ;;  %v396_v25 = vmul.f32 %v930_v23, %v1212_v30  ;;  %v434_v26 = vadd.f32 %v430_v15, %v414_v21  ;;  %v395_v18 = vmul.f32 %v930_v23, %v1210_v29  ;;  %v433_v27 = vadd.f32 %v426_v14, %v413_v22 }
 0x183   : > { %v398_v17 = vmul.f32 %v932_v24, %v1200_v20  ;;  %v397_v28 = vmul.f32 %v932_v24, %v1198_v19 }
 0x184   : > { %v416_v31 = vmul.f32 %v410_v11, %v396_v25  ;;  %442 = vst [vmem:[%s1233_s9 + $0x8] sm:$0xff] %v434_v26  ;;  %v415_v34 = vmul.f32 %v406_v10, %v395_v18  ;;  %441 = vst [vmem:[%s1233_s9] sm:$0xff] %v433_v27 }
 0x185   : > { %v934_v35 = vpop.eup %933  ;;  %v418_v36 = vmul.f32 %v410_v11, %v398_v17  ;;  %v417_v37 = vmul.f32 %v406_v10, %v397_v28 }
 0x186   : > { %v436_v30 = vadd.f32 %v430_v15, %v416_v31  ;;  %v435_v38 = vadd.f32 %v426_v14, %v415_v34  ;;  %v400_v29 = vmul.f32 %v934_v35, %v1216_v33  ;;  %v399_v39 = vmul.f32 %v934_v35, %v1214_v32 }
 0x187   : > { %v438_v20 = vadd.f32 %v430_v15, %v418_v36  ;;  %v437_v19 = vadd.f32 %v426_v14, %v417_v37 }
 0x188   : > { %444 = vst [vmem:[%s1233_s9 + $0x18] sm:$0xff] %v436_v30  ;;  %v450_v40 = vpack.c.bf16 %v436_v30, %v434_v26  ;;  %443 = vst [vmem:[%s1233_s9 + $0x10] sm:$0xff] %v435_v38  ;;  %v449_v41 = vpack.c.bf16 %v435_v38, %v433_v27  ;;  %v420_v42 = vmul.f32 %v410_v11, %v400_v29 }
 0x189   : > { %v419_v43 = vmul.f32 %v406_v10, %v399_v39  ;;  %446 = vst [vmem:[%s1233_s9 + $0x28] sm:$0xff] %v438_v20  ;;  %445 = vst [vmem:[%s1233_s9 + $0x20] sm:$0xff] %v437_v19 }
 0x18a   : > { %620 = vmatprep.mubr.bf16.mxu0 %v450_v40  ;;  %v440_v44 = vadd.f32 %v430_v15, %v420_v42 }
 0x18b   : > { %v439_v45 = vadd.f32 %v426_v14, %v419_v43  ;;  %621 = vmatmul.mubr.bf16.vlgmr.msra.gmra.mxu0 %v449_v41 }
 0x18c   : > { %448 = vst [vmem:[%s1233_s9 + $0x38] sm:$0xff] %v440_v44  ;;  %v452_v33 = vpack.c.bf16 %v440_v44, %v438_v20 }
 0x18d   : > { %447 = vst [vmem:[%s1233_s9 + $0x30] sm:$0xff] %v439_v45  ;;  %v451_v32 = vpack.c.bf16 %v439_v45, %v437_v19 }
 0x18e   : > { %628 = vmatprep.mubr.bf16.mxu1 %v452_v33 }
 0x18f   : > { %629 = vmatmul.mubr.bf16.vlgmr.msra.gmra.mxu1 %v451_v32 }
 0x24b   : > { %v832_v46 = vpop.f32.mrf.mxu0 }
 0x24d   : > { %v833_v48 = vpop.f32.mrf.mxu0 }
 0x24e   : > { %v834_v49 = vadd.f32 %v833_v48, %v832_v46 }
 0x24f   : > { %v835_v50 = vpop.f32.mrf.mxu0  ;;  %v838_v51 = vpop.f32.mrf.mxu1 }
 0x250   : > { %v623_v52 = vadd.f32 %v834_v49, %v795_v47 }
 0x251   : > { %v836_v53 = vpop.f32.mrf.mxu0  ;;  %v839_v54 = vpop.f32.mrf.mxu1 }
 0x252   : > { %637 = vst [vmem:[%s325_s13] sm:$0xff] %v623_v52  ;;  %v837_v55 = vadd.f32 %v836_v53, %v835_v50  ;;  %v840_v56 = vadd.f32 %v839_v54, %v838_v51 }
 0x253   : > { %v841_v57 = vpop.f32.mrf.mxu1 }
 0x254   : > { %v626_v58 = vadd.f32 %v837_v55, %v795_v47  ;;  %v631_v59 = vadd.f32 %v840_v56, %v795_v47 }
 0x255   : > { %v842_v60 = vpop.f32.mrf.mxu1 }
 0x256   : > { %638 = vst [vmem:[%s325_s13 + $0x8] sm:$0xff] %v626_v58  ;;  %v843_v61 = vadd.f32 %v842_v60, %v841_v57  ;;  %639 = vst [vmem:[%s325_s13 + $0x10] sm:$0xff] %v631_v59 }
 0x258   : > { %v634_v62 = vadd.f32 %v843_v61, %v795_v47 }
 0x25a   : > { %640 = vst [vmem:[%s325_s13 + $0x18] sm:$0xff] %v634_v62 }
 0x25b PF: > { %s20_s21 = sadd.s32 1, %s1057_s21  }
 0x25c   : > { %p17_p6 = scmp.ge.s32.totalorder %s20_s21, 4  }
 0x25e   :  { %19 = sbr.rel (!%p17_p6) target bundleno = 3 (0x3), region = 99 }
 0x263   :  { %682 = vsyncpa [#allocation3], 1 }
 0x264   :  { %684 = vsyncpa [#allocation3 + $0x1], 1 }
 0x265   :  { %685 = vsyncpa [#allocation5], 1 }
 0x266   :  { %686 = vsyncpa [#allocation8], 1 }

// kernel: _lambda_.6
= control target key start
LH: loop header
LB: loop body
LE: loop exit
PB: predicated region body
PF: predicated region fallthrough
CT: control target
= control target key end

     0   :  { %s1158_s12 = smov 0   ;;  %s1160_s13 = smov 0   ;;  %s1328_s0 = inlined_call_operand.vmem [shape: bf16[64,768], index: 0, kind: input, shape index: {}, may-alias: {0,1,2}]   ;;  %s1329_s1 = inlined_call_operand.vmem [shape: bf16[64,768], index: 1, kind: input, shape index: {}, may-alias: {0,1,2}]   ;;  %s1330_s2 = inlined_call_operand.vmem [shape: bf16[64,768], index: 2, kind: input, shape index: {}, may-alias: {0,1,2}]   ;;  %s1331_s3 = inlined_call_operand.vmem [shape: bf16[64,256], index: 3, kind: output, shape index: {}]  }
   0x1   :  { %s1162_s14 = smov 0  }
   0x2 LB: > { %s935_s15 = sadd.s32 4294967295, %s1136_s14   ;;  %s1175_s16 = sadd.s32 1, %s1136_s14   ;;  %s1136_s14 = sphi %s1162_s14, %s1335_s14   ;;  %s1132_s13 = sphi %s1160_s13, %s1334_s13   ;;  %s1128_s12 = sphi %s1158_s12, %s1333_s12  }
   0x3   : > { %s17_s17 = ssub.s32 %s1136_s14, %s1175_s16  ;;  %s20_s18 = sadd.s32 1, %s1132_s13 }
   0x4   : > { %p18_p0 = scmp.eq.s32.totalorder %s17_s17, 0  ;;  %p27_p1 = scmp.ne.s32.totalorder %s1132_s13, %s1128_s12 }
   0x5   : > { %p28_p2 = scmp.eq.s32.totalorder %s1136_s14, 0  ;;  %p938_p4 = scmp.ge.s32.totalorder %s1136_s14, 2 }
   0x6   : > { %s1184_s19 = scalar_select %p18_p0, %s1132_s13, %s20_s18  }
   0x7   : > { %p1186_p3 = por %p28_p2, %p27_p1  ;;  %131 = sbr.rel (%p938_p4) target bundleno = 33 (0x21), region = 16 }
   0xc   : > { %134 = sbr.rel (!%p1186_p3) target bundleno = 19 (0x13), region = 20  ;;  %s136_s21 = sand.u32 (%p1186_p3), 1, %s1132_s13  }
   0xd   : > { %s1045_s22 = smul.u32 (%p1186_p3), 96, %s1136_s14  ;;  %s939_s23 = sshll.u32 (%p1186_p3), %s136_s21, 5 }
   0xe   : > { %s138_s27 = scalar_lea.vmem (%p1186_p3), [#allocation2], %s939_s23 }
   0xf   : > { %s142_s26 = scalar_lea.vmem (%p1186_p3), %s1328_s0, %s1045_s22 }
  0x10   : > { %v177_v0 = vld [vmem:[%s142_s26] sm:$0xff] (%p1186_p3)  ;;  %v179_v1 = vld [vmem:[%s142_s26 + $0x18] sm:$0xff] (%p1186_p3)  ;;  %v181_v2 = vld [vmem:[%s142_s26 + $0x30] sm:$0xff] (%p1186_p3) }
  0x11   : > { %178 = vst [vmem:[%s138_s27] sm:$0xff] %v177_v0  ;;  %180 = vst [vmem:[%s138_s27 + $0x8] sm:$0xff] %v179_v1  ;;  %v183_v3 = vld [vmem:[%s142_s26 + $0x48] sm:$0xff] }
  0x12   : > { %182 = vst [vmem:[%s138_s27 + $0x10] sm:$0xff] %v181_v2  ;;  %184 = vst [vmem:[%s138_s27 + $0x18] sm:$0xff] %v183_v3 }
  0x13 PF: > { %190 = sbr.rel (!%p1186_p3) target bundleno = 26 (0x1a), region = 58  ;;  %s192_s28 = sand.u32 (%p1186_p3), 1, %s1132_s13  }
  0x14   : > { %s944_s29 = smul.u32 (%p1186_p3), 96, %s1136_s14  ;;  %s943_s30 = sshll.u32 (%p1186_p3), %s192_s28, 5 }
  0x15   : > { %s194_s7 = scalar_lea.vmem (%p1186_p3), [#allocation3], %s943_s30 }
  0x16   : > { %s863_s6 = scalar_lea.vmem (%p1186_p3), %s1329_s1, %s944_s29 }
  0x17   : > { %v945_v4 = vld [vmem:[%s863_s6 + $0x8] sm:$0xff] (%p1186_p3)  ;;  %v946_v5 = vld [vmem:[%s863_s6 + $0x20] sm:$0xff] (%p1186_p3)  ;;  %v947_v6 = vld [vmem:[%s863_s6 + $0x38] sm:$0xff] (%p1186_p3) }
  0x18   : > { %235 = vst [vmem:[%s194_s7] sm:$0xff] %v945_v4  ;;  %237 = vst [vmem:[%s194_s7 + $0x8] sm:$0xff] %v946_v5  ;;  %v948_v7 = vld [vmem:[%s863_s6 + $0x50] sm:$0xff] }
  0x19   : > { %239 = vst [vmem:[%s194_s7 + $0x10] sm:$0xff] %v947_v6  ;;  %241 = vst [vmem:[%s194_s7 + $0x18] sm:$0xff] %v948_v7 }
  0x1a PF: > { %247 = sbr.rel (!%p1186_p3) target bundleno = 33 (0x21), region = 96  ;;  %s249_s8 = sand.u32 (%p1186_p3), 1, %s1132_s13  }
  0x1b   : > { %s950_s9 = smul.u32 (%p1186_p3), 96, %s1136_s14  ;;  %s949_s10 = sshll.u32 (%p1186_p3), %s249_s8, 5 }
  0x1c   : > { %s251_s21 = scalar_lea.vmem (%p1186_p3), [#allocation4], %s949_s10 }
  0x1d   : > { %s869_s18 = scalar_lea.vmem (%p1186_p3), %s1330_s2, %s950_s9 }
  0x1e   : > { %v951_v8 = vld [vmem:[%s869_s18 + $0x10] sm:$0xff] (%p1186_p3)  ;;  %v952_v9 = vld [vmem:[%s869_s18 + $0x28] sm:$0xff] (%p1186_p3)  ;;  %v953_v10 = vld [vmem:[%s869_s18 + $0x40] sm:$0xff] (%p1186_p3) }
  0x1f   : > { %292 = vst [vmem:[%s251_s21] sm:$0xff] %v951_v8  ;;  %294 = vst [vmem:[%s251_s21 + $0x8] sm:$0xff] %v952_v9  ;;  %v954_v11 = vld [vmem:[%s869_s18 + $0x58] sm:$0xff] }
  0x20   : > { %296 = vst [vmem:[%s251_s21 + $0x10] sm:$0xff] %v953_v10  ;;  %298 = vst [vmem:[%s251_s21 + $0x18] sm:$0xff] %v954_v11 }
  0x21 PF: > { %p955_p5 = scmp.ge.s32.totalorder %s1136_s14, 1  ;;  %p303_p6 = scmp.lt.s32.totalorder %s1136_s14, 3 }
  0x23   : > { %p304_p7 = pnand %p955_p5, %p303_p6 }
  0x24   : > { %s310_s20 = sand.u32 (!%p304_p7), 1, %s1128_s12   ;;  %s959_s25 = sshll.u32 (!%p304_p7), %s935_s15, 2 }
  0x25   : > { %307 = sbr.rel (%p304_p7) target bundleno = 1318 (0x526), region = 134  ;;  %s1215_s22 = sshll.u32 (!%p304_p7), %s310_s20, 5 }
  0x26   : > { %s1218_s23 = scalar_lea.vmem (!%p304_p7), [#allocation3], %s1215_s22  ;;  %s1223_s24 = scalar_lea.vmem (!%p304_p7), [#allocation2], %s1215_s22 }
  0x27   : > { %s1269_s12 = scalar_lea.vmem (!%p304_p7), [#allocation4], %s1215_s22  ;;  %p360_p8 = scmp.lt.s32.totalorder (!%p304_p7), %s959_s25, 7 }
  0x2a   : > { %v1070_v12 = vld [vmem:[%s1218_s23 + $0x10] ss:$8 sps:$4 sm:$0xff]   ;;  %v1071_v13 = vld [vmem:[%s1218_s23] ss:$8 sps:$4 sm:$0xff]   ;;  %v367_v16 = vlaneseq  ;;  %vm471_vm1 = vcmask 261120   ;;  %s1337_s25 = smov (!%p360_p8, %s959_s25), 7 }
  0x2b   : > { %1013 = vmatprep.subr.bf16.mxu0 %v1070_v12  ;;  %v1072_v14 = vld [vmem:[%s1223_s24] ss:$8 sps:$4 sm:$0xff]   ;;  %v1073_v15 = vld [vmem:[%s1223_s24 + $0x10] ss:$8 sps:$4 sm:$0xff]   ;;  %v1076_v60 = vld [vmem:[%s1218_s23 + $0x14] ss:$8 sps:$4 sm:$0xff]  }
  0x2c   : > { %1014 = vmatpush3.bf16.xpose.msra.mxu0 %v1070_v12  ;;  %1017 = vmatprep.mubr.bf16.mxu0 %v1072_v14  ;;  %v1227_v17 = vshrl.u32 %v367_v16, 7  ;;  %v1232_v19 = vand.u32 127, %v367_v16  ;;  %v1074_v58 = vld [vmem:[%s1269_s12 + $0x10] ss:$8 sps:$4 sm:$0xff]   ;;  %v1075_v59 = vld [vmem:[%s1269_s12] ss:$8 sps:$4 sm:$0xff]  }
  0x2d   : > { %1015 = vmatprep.subr.bf16.mxu0 %v1071_v13  ;;  %1021 = vmatprep.subr.bf16.mxu1 %v1074_v58  ;;  %v1078_v10 = vld [vmem:[%s1223_s24 + $0x4] ss:$8 sps:$4 sm:$0xff]   ;;  %s988_s26 = sshll.u32 %s1337_s25, 3 }
  0x2e   : > { %v1230_v18 = vadd.s32 16, %v1227_v17  ;;  %v1237_v21 = vadd.s32 24, %v1227_v17  ;;  %vm374_vm2 = vcmp.le.s32.totalorder %v1232_v19, %v1227_v17  ;;  %v1242_v24 = vadd.s32 8, %v1227_v17  ;;  %1022 = vmatpush3.bf16.msra.mxu1 %v1074_v58  ;;  %v1077_v12 = vld [vmem:[%s1218_s23 + $0x4] ss:$8 sps:$4 sm:$0xff]   ;;  %s1284_s29 = scalar_lea.vmem %s1331_s3, %s988_s26 }
  0x2f   : > { %1023 = vmatprep.subr.bf16.mxu1 %v1075_v59  ;;  %v1080_v58 = vld [vmem:[%s1269_s12 + $0x14] ss:$8 sps:$4 sm:$0xff]  }
  0x30   : > { %vm376_vm0 = vcmp.le.s32.totalorder %v1232_v19, %v1230_v18  ;;  %vm377_vm3 = vcmp.le.s32.totalorder %v1232_v19, %v1237_v21  ;;  %vm375_vm4 = vcmp.le.s32.totalorder %v1232_v19, %v1242_v24 }
  0x32   : > { %1024 = vmatpush3.bf16.msra.mxu1 %v1075_v59  ;;  %v1081_v59 = vld [vmem:[%s1269_s12 + $0x4] ss:$8 sps:$4 sm:$0xff]  }
  0x33   : > { %1029 = vmatprep.subr.bf16.mxu1 %v1076_v60 }
  0x34   : > { %1016 = vmatpush3.bf16.xpose.msra.mxu0 %v1071_v13  ;;  %v1079_v13 = vld [vmem:[%s1223_s24 + $0x14] ss:$8 sps:$4 sm:$0xff]  }
  0x35   : > { %1037 = vmatprep.subr.bf16.mxu0 %v1080_v58 }
  0x3b   : > { %1018 = vmatmul.mubr.bf16.vlgmr.msra.gmra.mxu0 %v1073_v15 }
  0x3c   : > { %1038 = vmatpush3.bf16.msra.mxu0 %v1080_v58 }
  0x3d   : > { %1039 = vmatprep.subr.bf16.mxu0 %v1081_v59 }
  0x40   : > { %1040 = vmatpush3.bf16.msra.mxu0 %v1081_v59 }
  0xfb   : > { %v1019_v20 = vpop.f32.mrf.mxu0 }
  0xfc   : > { %v465_v22 = vmul.f32 0.088388346, %v1019_v20 }
  0xfd   : > { %v448_v23 = vpop.f32.mrf.mxu0 }
  0xfe   : > { %v463_v25 = vmul.f32 0.088388346, %v448_v23  ;;  %v469_v26 = vsel %vm376_vm0, %v465_v22, -inf }
  0xff   : > { %v1020_v27 = vpop.f32.mrf.mxu0  ;;  %v478_v28 = vsel %vm471_vm1, %v469_v26, -inf }
 0x100   : > { %v466_v29 = vmul.f32 0.088388346, %v1020_v27  ;;  %479 = vmax.xlane.f32.xlu1 %v478_v28  ;;  %v467_v30 = vsel %vm374_vm2, %v463_v25, -inf }
 0x101   : > { %v451_v31 = vpop.f32.mrf.mxu0  ;;  %v472_v32 = vsel %vm471_vm1, %v467_v30, -inf }
 0x102   : > { %v464_v33 = vmul.f32 0.088388346, %v451_v31  ;;  %473 = vmax.xlane.f32.xlu0 %v472_v32  ;;  %v470_v34 = vsel %vm377_vm3, %v466_v29, -inf }
 0x103   : > { %v481_v35 = vsel %vm471_vm1, %v470_v34, -inf }
 0x104   : > { %482 = vmax.xlane.f32.xlu1 %v481_v35  ;;  %v468_v36 = vsel %vm375_vm4, %v464_v33, -inf }
 0x105   : > { %v475_v37 = vsel %vm471_vm1, %v468_v36, -inf }
 0x106   : > { %476 = vmax.xlane.f32.xlu0 %v475_v37 }
 0x189   : > { %v480_v38 = vpop.xlane.xlu1 %479 }
 0x18a   : > { %v486_v39 = vsub.f32 %v469_v26, %v480_v38 }
 0x18b   : > { %v474_v40 = vpop.xlane.xlu0 %473 }
 0x18c   : > { %v484_v41 = vsub.f32 %v467_v30, %v474_v40  ;;  %v492_v43 = vmul.f32 1.442695, %v486_v39 }
 0x18d   : > { %v483_v42 = vpop.xlane.xlu1 %482 }
 0x18e   : > { %v488_v44 = vmul.f32 1.442695, %v484_v41  ;;  %v487_v45 = vsub.f32 %v470_v34, %v483_v42 }
 0x18f   : > { %v477_v46 = vpop.xlane.xlu0 %476 }
 0x190   : > { %1082 = vpow2.f32 %v488_v44  ;;  %v485_v47 = vsub.f32 %v468_v36, %v477_v46  ;;  %v494_v48 = vmul.f32 1.442695, %v487_v45 }
 0x191   : > { %1084 = vpow2.f32 %v492_v43 }
 0x192   : > { %v490_v49 = vmul.f32 1.442695, %v485_v47 }
 0x194   : > { %1086 = vpow2.f32 %v490_v49 }
 0x195   : > { %1088 = vpow2.f32 %v494_v48 }
 0x19d   : > { %v1083_v50 = vpop.eup %1082 }
 0x19e   : > { %v496_v51 = vsel %vm471_vm1, %v1083_v50, 0.0  ;;  %v1085_v52 = vpop.eup %1084 }
 0x19f   : > { %497 = vadd.xlane.f32.xlu0 %v496_v51  ;;  %v502_v54 = vsel %vm471_vm1, %v1085_v52, 0.0 }
 0x1a1   : > { %v1087_v53 = vpop.eup %1086 }
 0x1a2   : > { %v499_v55 = vsel %vm471_vm1, %v1087_v53, 0.0  ;;  %v1089_v56 = vpop.eup %1088 }
 0x1a3   : > { %503 = vadd.xlane.f32.xlu0 %v502_v54  ;;  %500 = vadd.xlane.f32.xlu1 %v499_v55  ;;  %v505_v57 = vsel %vm471_vm1, %v1089_v56, 0.0 }
 0x1a7   : > { %506 = vadd.xlane.f32.xlu1 %v505_v57 }
 0x228   : > { %v498_v61 = vpop.xlane.xlu0 %497 }
 0x229   : > { %1090 = vrcp.f32 %v498_v61 }
 0x22c   : > { %v501_v62 = vpop.xlane.xlu1 %500  ;;  %v504_v63 = vpop.xlane.xlu0 %503 }
 0x22d   : > { %1092 = vrcp.f32 %v501_v62 }
 0x22e   : > { %1094 = vrcp.f32 %v504_v63 }
 0x230   : > { %v507_v0 = vpop.xlane.xlu1 %506 }
 0x231   : > { %1096 = vrcp.f32 %v507_v0 }
 0x236   : > { %v1091_v1 = vpop.eup %1090 }
 0x237   : > { %v512_v3 = vmul.f32 %v1091_v1, %v1083_v50 }
 0x23a   : > { %v1093_v2 = vpop.eup %1092 }
 0x23b   : > { %v513_v4 = vmul.f32 %v1093_v2, %v1087_v53  ;;  %v1095_v5 = vpop.eup %1094 }
 0x23c   : > { %v514_v8 = vmul.f32 %v1095_v5, %v1085_v52 }
 0x23d   : > { %v516_v6 = vpack.c.bf16 %v513_v4, %v512_v3 }
 0x23e   : > { %v1097_v7 = vpop.eup %1096 }
 0x23f   : > { %1025 = vmatprep.mubr.msk.bf16.mxu1 %vm471_vm1, %v516_v6  ;;  %v515_v9 = vmul.f32 %v1097_v7, %v1089_v56 }
 0x241   : > { %v517_v11 = vpack.c.bf16 %v515_v9, %v514_v8 }
 0x243   : > { %1026 = vmatmul.mubr.msk.bf16.vlgmr.msra.gmra.mxu1 %vm471_vm1, %v517_v11 }
 0x244   : > { %1030 = vmatpush3.bf16.xpose.msra.mxu1 %v1076_v60  ;;  %1033 = vmatprep.mubr.bf16.mxu1 %v1078_v10 }
 0x245   : > { %1031 = vmatprep.subr.bf16.mxu1 %v1077_v12 }
 0x24c   : > { %1032 = vmatpush3.bf16.xpose.msra.mxu1 %v1077_v12 }
 0x253   : > { %1034 = vmatmul.mubr.bf16.vlgmr.msra.gmra.mxu1 %v1079_v13 }
 0x303   : > { %v1027_v14 = vpop.f32.mrf.mxu1 }
 0x304   : > { %v991_v25 = vpack.c.bf16 %v1027_v14, %v1027_v14 }
 0x305   : > { %v570_v15 = vpop.f32.mrf.mxu1 }
 0x306   : > { %v989_v16 = vpack.c.bf16 %v570_v15, %v570_v15  ;;  %603 = vst [vmem:[%s1284_s29 + $0x10] sm:$0xf] %v991_v25 }
 0x307   : > { %v1028_v20 = vpop.f32.mrf.mxu1 }
 0x308   : > { %601 = vst [vmem:[%s1284_s29] sm:$0xf] %v989_v16  ;;  %v992_v26 = vpack.c.bf16 %v1028_v20, %v1028_v20 }
 0x309   : > { %v573_v22 = vpop.f32.mrf.mxu1 }
 0x30a   : > { %v990_v23 = vpack.c.bf16 %v573_v22, %v573_v22  ;;  %604 = vst [vmem:[%s1284_s29 + $0x18] sm:$0xf] %v992_v26 }
 0x30c   : > { %602 = vst [vmem:[%s1284_s29 + $0x8] sm:$0xf] %v990_v23 }
 0x313   : > { %v1035_v27 = vpop.f32.mrf.mxu1 }
 0x314   : > { %v692_v29 = vmul.f32 0.088388346, %v1035_v27 }
 0x315   : > { %v675_v28 = vpop.f32.mrf.mxu1 }
 0x316   : > { %v690_v30 = vmul.f32 0.088388346, %v675_v28  ;;  %v696_v37 = vsel %vm376_vm0, %v692_v29, -inf }
 0x317   : > { %v1036_v31 = vpop.f32.mrf.mxu1  ;;  %v704_v39 = vsel %vm471_vm1, %v696_v37, -inf }
 0x318   : > { %v694_v32 = vsel %vm374_vm2, %v690_v30, -inf  ;;  %v693_v35 = vmul.f32 0.088388346, %v1036_v31 }
 0x319   : > { %v678_v33 = vpop.f32.mrf.mxu1  ;;  %v698_v34 = vsel %vm471_vm1, %v694_v32, -inf }
 0x31a   : > { %v691_v36 = vmul.f32 0.088388346, %v678_v33  ;;  %699 = vmax.xlane.f32.xlu0 %v698_v34  ;;  %v697_v17 = vsel %vm377_vm3, %v693_v35, -inf }
 0x31b   : > { %v707_v41 = vsel %vm471_vm1, %v697_v17, -inf }
 0x31c   : > { %v695_v38 = vsel %vm375_vm4, %v691_v36, -inf }
 0x31d   : > { %v701_v40 = vsel %vm471_vm1, %v695_v38, -inf }
 0x31e   : > { %705 = vmax.xlane.f32.xlu0 %v704_v39  ;;  %702 = vmax.xlane.f32.xlu1 %v701_v40 }
 0x322   : > { %708 = vmax.xlane.f32.xlu1 %v707_v41 }
 0x3a3   : > { %v700_v42 = vpop.xlane.xlu0 %699 }
 0x3a4   : > { %v710_v18 = vsub.f32 %v694_v32, %v700_v42 }
 0x3a6   : > { %v714_v43 = vmul.f32 1.442695, %v710_v18 }
 0x3a7   : > { %v706_v44 = vpop.xlane.xlu0 %705  ;;  %v703_v45 = vpop.xlane.xlu1 %702 }
 0x3a8   : > { %1098 = vpow2.f32 %v714_v43  ;;  %v712_v24 = vsub.f32 %v696_v37, %v706_v44  ;;  %v711_v46 = vsub.f32 %v695_v38, %v703_v45 }
 0x3aa   : > { %v718_v47 = vmul.f32 1.442695, %v712_v24  ;;  %v716_v48 = vmul.f32 1.442695, %v711_v46 }
 0x3ab   : > { %v709_v49 = vpop.xlane.xlu1 %708 }
 0x3ac   : > { %1100 = vpow2.f32 %v718_v47  ;;  %v713_v50 = vsub.f32 %v697_v17, %v709_v49 }
 0x3ad   : > { %1102 = vpow2.f32 %v716_v48 }
 0x3ae   : > { %v720_v19 = vmul.f32 1.442695, %v713_v50 }
 0x3b0   : > { %1104 = vpow2.f32 %v720_v19 }
 0x3b5   : > { %v1099_v21 = vpop.eup %1098 }
 0x3b6   : > { %v722_v51 = vsel %vm471_vm1, %v1099_v21, 0.0 }
 0x3b7   : > { %723 = vadd.xlane.f32.xlu0 %v722_v51 }
 0x3b9   : > { %v1101_v52 = vpop.eup %1100 }
 0x3ba   : > { %v1103_v53 = vpop.eup %1102  ;;  %v728_v54 = vsel %vm471_vm1, %v1101_v52, 0.0 }
 0x3bb   : > { %729 = vadd.xlane.f32.xlu0 %v728_v54  ;;  %v725_v55 = vsel %vm471_vm1, %v1103_v53, 0.0 }
 0x3bc   : > { %726 = vadd.xlane.f32.xlu1 %v725_v55 }
 0x3bd   : > { %v1105_v56 = vpop.eup %1104 }
 0x3be   : > { %v731_v57 = vsel %vm471_vm1, %v1105_v56, 0.0 }
 0x3c0   : > { %732 = vadd.xlane.f32.xlu1 %v731_v57 }
 0x440   : > { %v724_v60 = vpop.xlane.xlu0 %723 }
 0x441   : > { %1106 = vrcp.f32 %v724_v60 }
 0x444   : > { %v730_v61 = vpop.xlane.xlu0 %729 }
 0x445   : > { %v727_v62 = vpop.xlane.xlu1 %726 }
 0x446   : > { %1108 = vrcp.f32 %v727_v62 }
 0x447   : > { %1110 = vrcp.f32 %v730_v61 }
 0x449   : > { %v733_v63 = vpop.xlane.xlu1 %732 }
 0x44a   : > { %1112 = vrcp.f32 %v733_v63 }
 0x44e   : > { %v1107_v0 = vpop.eup %1106 }
 0x44f   : > { %v738_v2 = vmul.f32 %v1107_v0, %v1099_v21 }
 0x453   : > { %v1109_v1 = vpop.eup %1108 }
 0x454   : > { %v739_v3 = vmul.f32 %v1109_v1, %v1103_v53  ;;  %v1111_v4 = vpop.eup %1110 }
 0x455   : > { %v740_v7 = vmul.f32 %v1111_v4, %v1101_v52 }
 0x456   : > { %v742_v5 = vpack.c.bf16 %v739_v3, %v738_v2 }
 0x457   : > { %v1113_v6 = vpop.eup %1112 }
 0x458   : > { %v741_v8 = vmul.f32 %v1113_v6, %v1105_v56  ;;  %1041 = vmatprep.mubr.msk.bf16.mxu0 %vm471_vm1, %v742_v5 }
 0x45a   : > { %v743_v9 = vpack.c.bf16 %v741_v8, %v740_v7 }
 0x45c   : > { %1042 = vmatmul.mubr.msk.bf16.vlgmr.msra.gmra.mxu0 %vm471_vm1, %v743_v9 }
 0x51c   : > { %v1043_v10 = vpop.f32.mrf.mxu0 }
 0x51d   : > { %v995_v16 = vpack.c.bf16 %v1043_v10, %v1043_v10 }
 0x51e   : > { %v796_v11 = vpop.f32.mrf.mxu0 }
 0x51f   : > { %v993_v12 = vpack.c.bf16 %v796_v11, %v796_v11  ;;  %829 = vst [vmem:[%s1284_s29 + $0x14] sm:$0xf] %v995_v16 }
 0x520   : > { %v1044_v13 = vpop.f32.mrf.mxu0 }
 0x521   : > { %827 = vst [vmem:[%s1284_s29 + $0x4] sm:$0xf] %v993_v12  ;;  %v996_v20 = vpack.c.bf16 %v1044_v13, %v1044_v13 }
 0x522   : > { %v799_v14 = vpop.f32.mrf.mxu0 }
 0x523   : > { %v994_v15 = vpack.c.bf16 %v799_v14, %v799_v14  ;;  %830 = vst [vmem:[%s1284_s29 + $0x1c] sm:$0xf] %v996_v20 }
 0x525   : > { %828 = vst [vmem:[%s1284_s29 + $0xc] sm:$0xf] %v994_v15 }
 0x526 PF: > { %p10_p9 = scmp.ge.s32.totalorder %s1175_s16, 4   ;;  %s1333_s12 = smov %s1132_s13 }
 0x527   : > { %s1334_s13 = smov %s1184_s19  ;;  %s1335_s14 = smov %s1175_s16 }
 0x528   :  { %12 = sbr.rel (!%p10_p9) target bundleno = 2 (0x2), region = 197 }

// kernel: _lambda_.7
= control target key start
LH: loop header
LB: loop body
LE: loop exit
PB: predicated region body
PF: predicated region fallthrough
CT: control target
= control target key end

     0   :  { %8 = vsyncpa [#allocation3], 0  ;;  %s1115_s0 = inlined_call_operand.vmem [shape: bf16[64,256], index: 0, kind: input, shape index: {}]   ;;  %s1116_s1 = inlined_call_operand.hbm [shape: bf16[256,256], index: 1, kind: input, shape index: {}]   ;;  %s1117_s2 = inlined_call_operand.hbm [shape: f32[1,256], index: 2, kind: input, shape index: {}]   ;;  %s1118_s3 = inlined_call_operand.vmem [shape: f32[64,256], index: 3, kind: output, shape index: {}]  }
   0x1   :  { %9 = vsyncpa [#allocation5], 0  ;;  %s1024_s12 = smov 0   ;;  %s1026_s13 = smov 0  }
   0x2   :  { %s1028_s14 = smov 0  }
   0x3 LB: > { %s728_s15 = sadd.s32 4294967295, %s998_s14   ;;  %s34_s16 = sadd.s32 1, %s994_s13  ;;  %s998_s14 = sphi %s1028_s14, %s15_s14   ;;  %s994_s13 = sphi %s1026_s13, %s1123_s13   ;;  %s990_s12 = sphi %s1024_s12, %s1122_s12  }
   0x4   : > { %p36_p0 = scmp.ge.s32.totalorder %s34_s16, 2  ;;  %p730_p1 = scmp.ge.s32.totalorder %s998_s14, 1 }
   0x5   : > { %p149_p2 = scmp.lt.s32.totalorder %s998_s14, 3  ;;  %p1049_p4 = scmp.eq.s32.totalorder %s728_s15, 0 }
   0x6   : > { %s1125_s16 = smov (%p36_p0, %s34_s16), 0  ;;  %s1000_s19 = smov [#allocation2]  }
   0x7   : > { %p1045_p3 = pnand %p730_p1, %p149_p2  ;;  %s167_s20 = sshll.u32 %s1000_s19, 4  ;;  %s168_s20 = int_to_ptr.vmem [resolvable:$true] %s167_s20 }
   0x8   : > { %s1001_s22 = smov [#allocation4]   ;;  %s927_s24 = scalar_lea.vmem %s168_s20, 4096 }
   0x9   : > { %p823_p5 = pneg %p1045_p3  ;;  %s184_s23 = sshll.u32 %s1001_s22, 4  ;;  %s185_s23 = int_to_ptr.vmem [resolvable:$true] %s184_s23 }
   0xa   : > { %p928_p8 = scmp.ne.s32.totalorder %s168_s20, %s927_s24  ;;  %p935_p11 = scmp.lt.s32.totalorder %s168_s20, %s168_s20 }
   0xb   : > { %p1057_p6 = pnand %p1049_p4, %p823_p5  ;;  %p936_p12 = scmp.lt.s32.totalorder %s927_s24, %s927_s24 }
   0xd   : > { %p918_p7 = pneg %p1057_p6  ;;  %p937_p13 = por %p936_p12, %p935_p11 }
   0xf   : > { %p930_p9 = pnand %p928_p8, %p918_p7 }
  0x11   : > { %p931_p10 = pneg %p930_p9 }
  0x13   : > { %p938_p0 = pnand %p937_p13, %p931_p10 }
  0x15   : > { %941 = shalt.err (!%p938_p0)
}
  0x16   : > { %s1002_s25 = smov 128   ;;  %s1003_s26 = smov 8  }
  0x17   : > { %826 = dma.hbm_to_vmem [thread:$0]  (!%p1057_p6), %s1116_s1, 4096, %s168_s20, [#allocation3], %s1002_s25, %s1002_s25, %s1003_s26  }
  0x18   : > { %s953_s29 = scalar_lea.vmem %s185_s23, 32  ;;  %p961_p8 = scmp.lt.s32.totalorder %s185_s23, %s185_s23 }
  0x19   : > { %p954_p1 = scmp.ne.s32.totalorder %s185_s23, %s953_s29  ;;  %p962_p9 = scmp.lt.s32.totalorder %s953_s29, %s953_s29 }
  0x1b   : > { %p956_p2 = pnand %p954_p1, %p918_p7  ;;  %p963_p11 = por %p962_p9, %p961_p8 }
  0x1d   : > { %p957_p5 = pneg %p956_p2 }
  0x1f   : > { %p964_p10 = pnand %p963_p11, %p957_p5 }
  0x21   : > { %967 = shalt.err (!%p964_p10)
}
  0x22   : > { %829 = dma.hbm_to_vmem [thread:$0]  (!%p1057_p6), %s1117_s2, 32, %s185_s23, [#allocation5]  }
  0x23   : > { %212 = sbr.rel (%p1045_p3) target bundleno = 310 (0x136), region = 32 }
  0x28   : > { %981 = dma.done.wait (%p1049_p4), [#allocation3], 4096  }
  0x29   : > { %983 = vsyncadd (%p1049_p4), [#allocation3], 4294963200 }
  0x2a   : > { %985 = dma.done.wait (%p1049_p4), [#allocation5], 32  }
  0x2b   : > { %987 = vsyncadd (%p1049_p4), [#allocation5], 4294967264  ;;  %v862_v0 = vld [vmem:[#allocation2 + $0x74] ss:$8 sps:$4 sm:$0xff]   ;;  %v864_v1 = vld [vmem:[#allocation2 + $0x70] ss:$8 sps:$4 sm:$0xff]   ;;  %v552_v36 = vlaneseq }
  0x2c   : > { %493 = vmatprep.subr.bf16.mxu0 %v862_v0  ;;  %783 = vmatprep.subr.bf16.mxu1 %v862_v0  ;;  %v865_v2 = vld [vmem:[#allocation2 + $0x64] ss:$8 sps:$4 sm:$0xff]   ;;  %v867_v3 = vld [vmem:[#allocation2 + $0x60] ss:$8 sps:$4 sm:$0xff]   ;;  %v868_v4 = vld [vmem:[#allocation2 + $0x54] ss:$8 sps:$4 sm:$0xff]  }
  0x2d   : > { %494 = vmatpush1.bf16.msra.mxu0 %v864_v1  ;;  %799 = vmatpush1.bf16.msra.mxu1 %v864_v1  ;;  %s737_s5 = sshll.u32 %s990_s12, 2  ;;  %v870_v5 = vld [vmem:[#allocation2 + $0x50] ss:$8 sps:$4 sm:$0xff]   ;;  %v871_v6 = vld [vmem:[#allocation2 + $0x44] ss:$8 sps:$4 sm:$0xff]   ;;  %v553_v37 = vshrl.u32 %v552_v36, 7 }
  0x2e   : > { %495 = vmatprep.subr.bf16.mxu0 %v865_v2  ;;  %784 = vmatprep.subr.bf16.mxu1 %v865_v2  ;;  %p252_p3 = scmp.lt.s32.totalorder %s737_s5, 7  ;;  %v873_v7 = vld [vmem:[#allocation2 + $0x40] ss:$8 sps:$4 sm:$0xff]   ;;  %v874_v8 = vld [vmem:[#allocation2 + $0x34] ss:$8 sps:$4 sm:$0xff]  }
  0x2f   : > { %v876_v9 = vld [vmem:[#allocation2 + $0x30] ss:$8 sps:$4 sm:$0xff]   ;;  %v877_v10 = vld [vmem:[#allocation2 + $0x24] ss:$8 sps:$4 sm:$0xff]   ;;  %v879_v11 = vld [vmem:[#allocation2 + $0x20] ss:$8 sps:$4 sm:$0xff]  }
  0x30   : > { %s1127_s5 = smov (!%p252_p3, %s737_s5), 7  ;;  %v880_v12 = vld [vmem:[#allocation2 + $0x14] ss:$8 sps:$4 sm:$0xff]   ;;  %v882_v14 = vld [vmem:[#allocation2 + $0x10] ss:$8 sps:$4 sm:$0xff]   ;;  %v554_v38 = vsub.s32 0, %v553_v37 }
  0x31   : > { %496 = vmatpush1.bf16.msra.mxu0 %v867_v3  ;;  %800 = vmatpush1.bf16.msra.mxu1 %v867_v3  ;;  %s781_s6 = sshll.u32 %s1127_s5, 3  ;;  %v883_v16 = vld [vmem:[#allocation2 + $0x4] ss:$8 sps:$4 sm:$0xff]   ;;  %v885_v17 = vld [vmem:[#allocation2] ss:$8 sps:$4 sm:$0xff]   ;;  %v558_v40 = vsub.s32 1, %v553_v37 }
  0x32   : > { %497 = vmatprep.subr.bf16.mxu0 %v868_v4  ;;  %785 = vmatprep.subr.bf16.mxu1 %v868_v4  ;;  %s1096_s9 = scalar_lea.vmem %s1115_s0, %s781_s6  ;;  %v886_v18 = vld [vmem:[#allocation2 + $0xf4] ss:$8 sps:$4 sm:$0xff]   ;;  %v888_v19 = vld [vmem:[#allocation2 + $0xf0] ss:$8 sps:$4 sm:$0xff]   ;;  %v889_v20 = vld [vmem:[#allocation2 + $0xe4] ss:$8 sps:$4 sm:$0xff]  }
  0x33   : > { %v912_v13 = vld [vmem:[%s1096_s9 + $0x4] ss:$8 sps:$4 sm:$0xff]   ;;  %v915_v15 = vld [vmem:[%s1096_s9 + $0x14] ss:$8 sps:$4 sm:$0xff]   ;;  %v891_v21 = vld [vmem:[#allocation2 + $0xe0] ss:$8 sps:$4 sm:$0xff]  }
  0x34   : > { %525 = vmatprep.mubr.bf16.mxu0 %v912_v13  ;;  %535 = vmatprep.mubr.bf16.mxu1 %v915_v15  ;;  %v892_v22 = vld [vmem:[#allocation2 + $0xd4] ss:$8 sps:$4 sm:$0xff]   ;;  %v894_v23 = vld [vmem:[#allocation2 + $0xd0] ss:$8 sps:$4 sm:$0xff]   ;;  %v895_v24 = vld [vmem:[#allocation2 + $0xc4] ss:$8 sps:$4 sm:$0xff]  }
  0x35   : > { %498 = vmatpush1.bf16.msra.mxu0 %v870_v5  ;;  %801 = vmatpush1.bf16.msra.mxu1 %v870_v5  ;;  %v897_v25 = vld [vmem:[#allocation2 + $0xc0] ss:$8 sps:$4 sm:$0xff]   ;;  %v898_v26 = vld [vmem:[#allocation2 + $0xb4] ss:$8 sps:$4 sm:$0xff]   ;;  %v900_v27 = vld [vmem:[#allocation2 + $0xb0] ss:$8 sps:$4 sm:$0xff]  }
  0x36   : > { %499 = vmatprep.subr.bf16.mxu0 %v871_v6  ;;  %786 = vmatprep.subr.bf16.mxu1 %v871_v6  ;;  %v901_v28 = vld [vmem:[#allocation2 + $0xa4] ss:$8 sps:$4 sm:$0xff]   ;;  %v903_v29 = vld [vmem:[#allocation2 + $0xa0] ss:$8 sps:$4 sm:$0xff]   ;;  %v904_v30 = vld [vmem:[#allocation2 + $0x94] ss:$8 sps:$4 sm:$0xff]  }
  0x37   : > { %v906_v31 = vld [vmem:[#allocation2 + $0x90] ss:$8 sps:$4 sm:$0xff]   ;;  %v907_v32 = vld [vmem:[#allocation2 + $0x84] ss:$8 sps:$4 sm:$0xff]   ;;  %v909_v33 = vld [vmem:[#allocation2 + $0x80] ss:$8 sps:$4 sm:$0xff]  }
  0x38   : > { %v910_v34 = vld [vmem:[%s1096_s9] ss:$8 sps:$4 sm:$0xff]   ;;  %v913_v35 = vld [vmem:[%s1096_s9 + $0x10] ss:$8 sps:$4 sm:$0xff]   ;;  %s782_s10 = sshll.u32 %s1127_s5, 4 }
  0x39   : > { %500 = vmatpush1.bf16.msra.mxu0 %v873_v7  ;;  %802 = vmatpush1.bf16.msra.mxu1 %v873_v7  ;;  %v550_v39 = vld [vmem:[#allocation4] sm:$0x3]  ;;  %s274_s15 = scalar_lea.vmem %s1118_s3, %s782_s10 }
  0x3a   : > { %501 = vmatprep.subr.bf16.mxu0 %v874_v8  ;;  %787 = vmatprep.subr.bf16.mxu1 %v874_v8  ;;  %v555_v41 = vrot.slane %v550_v39, %v554_v38  ;;  %v559_v42 = vrot.slane %v550_v39, %v558_v40 }
  0x3d   : > { %502 = vmatpush1.bf16.msra.mxu0 %v876_v9  ;;  %803 = vmatpush1.bf16.msra.mxu1 %v876_v9 }
  0x3e   : > { %503 = vmatprep.subr.bf16.mxu0 %v877_v10  ;;  %788 = vmatprep.subr.bf16.mxu1 %v877_v10 }
  0x41   : > { %504 = vmatpush1.bf16.msra.mxu0 %v879_v11  ;;  %804 = vmatpush1.bf16.msra.mxu1 %v879_v11 }
  0x42   : > { %505 = vmatprep.subr.bf16.mxu0 %v880_v12  ;;  %789 = vmatprep.subr.bf16.mxu1 %v880_v12 }
  0x45   : > { %506 = vmatpush1.bf16.msra.mxu0 %v882_v14  ;;  %805 = vmatpush1.bf16.msra.mxu1 %v882_v14 }
  0x46   : > { %507 = vmatprep.subr.bf16.mxu0 %v883_v16  ;;  %790 = vmatprep.subr.bf16.mxu1 %v883_v16 }
  0x49   : > { %508 = vmatpush1.bf16.msra.mxu0 %v885_v17  ;;  %806 = vmatpush1.bf16.msra.mxu1 %v885_v17 }
  0x4a   : > { %509 = vmatprep.subr.bf16.mxu0 %v886_v18  ;;  %791 = vmatprep.subr.bf16.mxu1 %v886_v18 }
  0x4d   : > { %510 = vmatpush2.bf16.msra.mxu0 %v888_v19  ;;  %807 = vmatpush2.bf16.msra.mxu1 %v888_v19 }
  0x4e   : > { %511 = vmatprep.subr.bf16.mxu0 %v889_v20  ;;  %792 = vmatprep.subr.bf16.mxu1 %v889_v20 }
  0x51   : > { %512 = vmatpush2.bf16.msra.mxu0 %v891_v21  ;;  %808 = vmatpush2.bf16.msra.mxu1 %v891_v21 }
  0x52   : > { %513 = vmatprep.subr.bf16.mxu0 %v892_v22  ;;  %793 = vmatprep.subr.bf16.mxu1 %v892_v22 }
  0x55   : > { %514 = vmatpush2.bf16.msra.mxu0 %v894_v23  ;;  %809 = vmatpush2.bf16.msra.mxu1 %v894_v23 }
  0x56   : > { %515 = vmatprep.subr.bf16.mxu0 %v895_v24  ;;  %794 = vmatprep.subr.bf16.mxu1 %v895_v24 }
  0x59   : > { %516 = vmatpush2.bf16.msra.mxu0 %v897_v25  ;;  %810 = vmatpush2.bf16.msra.mxu1 %v897_v25 }
  0x5a   : > { %517 = vmatprep.subr.bf16.mxu0 %v898_v26  ;;  %795 = vmatprep.subr.bf16.mxu1 %v898_v26 }
  0x5d   : > { %518 = vmatpush2.bf16.msra.mxu0 %v900_v27  ;;  %811 = vmatpush2.bf16.msra.mxu1 %v900_v27 }
  0x5e   : > { %519 = vmatprep.subr.bf16.mxu0 %v901_v28  ;;  %796 = vmatprep.subr.bf16.mxu1 %v901_v28 }
  0x61   : > { %520 = vmatpush2.bf16.msra.mxu0 %v903_v29  ;;  %812 = vmatpush2.bf16.msra.mxu1 %v903_v29 }
  0x62   : > { %521 = vmatprep.subr.bf16.mxu0 %v904_v30  ;;  %797 = vmatprep.subr.bf16.mxu1 %v904_v30 }
  0x65   : > { %522 = vmatpush2.bf16.msra.mxu0 %v906_v31  ;;  %813 = vmatpush2.bf16.msra.mxu1 %v906_v31 }
  0x66   : > { %523 = vmatprep.subr.bf16.mxu0 %v907_v32  ;;  %798 = vmatprep.subr.bf16.mxu1 %v907_v32 }
  0x69   : > { %524 = vmatpush2.bf16.msra.mxu0 %v909_v33  ;;  %814 = vmatpush2.bf16.msra.mxu1 %v909_v33 }
  0x6c   : > { %526 = vmatmul.mubr.bf16.vlgmr.msra.gmra.mxu0 %v910_v34  ;;  %536 = vmatmul.mubr.bf16.vlgmr.msra.gmra.mxu1 %v913_v35 }
 0x12c   : > { %v527_v43 = vpop.f32.mrf.mxu0  ;;  %v537_v44 = vpop.f32.mrf.mxu1 }
 0x12d   : > { %v562_v45 = vadd.f32 %v555_v41, %v527_v43  ;;  %v566_v52 = vadd.f32 %v555_v41, %v537_v44 }
 0x12e   : > { %v529_v46 = vpop.f32.mrf.mxu0  ;;  %v539_v47 = vpop.f32.mrf.mxu1 }
 0x12f   : > { %570 = vst [vmem:[%s274_s15] sm:$0xff] %v562_v45  ;;  %v563_v48 = vadd.f32 %v559_v42, %v529_v46  ;;  %v567_v57 = vadd.f32 %v559_v42, %v539_v47  ;;  %574 = vst [vmem:[%s274_s15 + $0x20] sm:$0xff] %v566_v52 }
 0x130   : > { %v531_v49 = vpop.f32.mrf.mxu0  ;;  %v541_v50 = vpop.f32.mrf.mxu1 }
 0x131   : > { %571 = vst [vmem:[%s274_s15 + $0x8] sm:$0xff] %v563_v48  ;;  %v564_v51 = vadd.f32 %v555_v41, %v531_v49  ;;  %v568_v55 = vadd.f32 %v555_v41, %v541_v50  ;;  %575 = vst [vmem:[%s274_s15 + $0x28] sm:$0xff] %v567_v57 }
 0x132   : > { %v533_v53 = vpop.f32.mrf.mxu0  ;;  %v543_v54 = vpop.f32.mrf.mxu1 }
 0x133   : > { %572 = vst [vmem:[%s274_s15 + $0x10] sm:$0xff] %v564_v51  ;;  %v565_v56 = vadd.f32 %v559_v42, %v533_v53  ;;  %576 = vst [vmem:[%s274_s15 + $0x30] sm:$0xff] %v568_v55  ;;  %v569_v58 = vadd.f32 %v559_v42, %v543_v54 }
 0x135   : > { %573 = vst [vmem:[%s274_s15 + $0x18] sm:$0xff] %v565_v56  ;;  %577 = vst [vmem:[%s274_s15 + $0x38] sm:$0xff] %v569_v58 }
 0x136 PF: > { %s15_s14 = sadd.s32 1, %s998_s14   ;;  %s1122_s12 = smov %s994_s13 }
 0x137   : > { %p12_p4 = scmp.ge.s32.totalorder %s15_s14, 4   ;;  %s1123_s13 = smov %s1125_s16 }
 0x139   :  { %14 = sbr.rel (!%p12_p4) target bundleno = 3 (0x3), region = 81 }
 0x13e   :  { %639 = vsyncpa [#allocation3], 1 }
 0x13f   :  { %641 = vsyncpa [#allocation3 + $0x1], 1 }
 0x140   :  { %642 = vsyncpa [#allocation5], 1 }

// kernel: _lambda_.5
= control target key start
LH: loop header
LB: loop body
LE: loop exit
PB: predicated region body
PF: predicated region fallthrough
CT: control target
= control target key end

     0   :  { %10 = vsyncpa [#allocation3], 0  ;;  %s2221_s0 = inlined_call_operand.hbm [shape: f32[64,256], index: 0, kind: input, shape index: {}]   ;;  %s2222_s1 = inlined_call_operand.hbm [shape: f32[1,256], index: 1, kind: input, shape index: {}]   ;;  %s2223_s2 = inlined_call_operand.hbm [shape: f32[1,256], index: 2, kind: input, shape index: {}]   ;;  %s2224_s3 = inlined_call_operand.hbm [shape: bf16[256,768], index: 3, kind: input, shape index: {}]   ;;  %s2225_s4 = inlined_call_operand.vmem [shape: f32[1,768], index: 4, kind: input, shape index: {}]   ;;  %s2226_s5 = inlined_call_operand.vmem [shape: bf16[64,768], index: 5, kind: output, shape index: {}]  }
   0x1   :  { %12 = vsyncpa [#allocation3 + $0x1], 0 }
   0x2   :  { %13 = vsyncpa [#allocation5], 0 }
   0x3   :  { %14 = vsyncpa [#allocation8], 0  ;;  %s1945_s18 = smov 0   ;;  %s1947_s19 = smov 0  }
   0x4   :  { %s1949_s20 = smov 0   ;;  %s1951_s21 = smov 0  }
   0x5 LB: > { %s1356_s22 = sadd.s32 4294967295, %s1905_s21   ;;  %p40_p0 = scmp.ne.s32.totalorder %s1897_s19, %s1893_s18  ;;  %s1905_s21 = sphi %s1951_s21, %s2242_s21   ;;  %s1901_s20 = sphi %s1949_s20, %s2241_s20   ;;  %s1897_s19 = sphi %s1947_s19, %s2240_s19   ;;  %s1893_s18 = sphi %s1945_s18, %s2239_s18  }
   0x6   : > { %p1967_p1 = scmp.eq.s32.totalorder %s1356_s22, 0  ;;  %p1358_p2 = scmp.ge.s32.totalorder %s1905_s21, 1 }
   0x7   : > { %p161_p3 = scmp.lt.s32.totalorder %s1905_s21, 3  ;;  %s1907_s26 = smov [#allocation4]  }
   0x8   : > { %s2231_s23 = scalar_select %p1967_p1, 1, 0 }
   0x9   : > { %p1975_p4 = por %p1967_p1, %p40_p0  ;;  %p1979_p5 = pnand %p1358_p2, %p161_p3 }
   0xa   : > { %s174_s27 = sshll.u32 %s1907_s26, 4  ;;  %s1908_s28 = smov [#allocation6]   ;;  %s175_s27 = int_to_ptr.vmem [resolvable:$true] %s174_s27 }
   0xb   : > { %s2232_s24 = scalar_select %p1975_p4, 1, 0 }
   0xc   : > { %s2233_s25 = scalar_select %p1979_p5, 1, 0 }
   0xd   : > { %p1545_p6 = pneg %p1979_p5  ;;  %s185_s29 = sshll.u32 %s1908_s28, 4  ;;  %s186_s29 = int_to_ptr.vmem [resolvable:$true] %s185_s29 }
   0xe   : > { %s1909_s6 = smov [#allocation7]   ;;  %s1768_s8 = scalar_lea.vmem %s175_s27, 32 }
   0xf   : > { %p1987_p7 = pnand %p1545_p6, %p1967_p1  ;;  %s195_s7 = sshll.u32 %s1909_s6, 4  ;;  %s1991_s7 = int_to_ptr.vmem [resolvable:$true] %s195_s7 }
  0x10   : > { %p1769_p9 = scmp.ne.s32.totalorder %s175_s27, %s1768_s8  ;;  %p1776_p12 = scmp.lt.s32.totalorder %s175_s27, %s175_s27 }
  0x11   : > { %p1759_p8 = pneg %p1987_p7  ;;  %p1777_p13 = scmp.lt.s32.totalorder %s1768_s8, %s1768_s8 }
  0x13   : > { %p1771_p10 = pnand %p1769_p9, %p1759_p8  ;;  %p1778_p0 = por %p1777_p13, %p1776_p12 }
  0x15   : > { %p1772_p11 = pneg %p1771_p10 }
  0x17   : > { %p1779_p2 = pnand %p1778_p0, %p1772_p11 }
  0x19   : > { %1782 = shalt.err (!%p1779_p2)
}
  0x1a   : > { %1548 = dma.hbm_to_vmem [thread:$0]  (!%p1987_p7), %s2222_s1, 32, %s175_s27, [#allocation5]  }
  0x1b   : > { %s1794_s11 = scalar_lea.vmem %s186_s29, 32  ;;  %p1802_p9 = scmp.lt.s32.totalorder %s186_s29, %s186_s29 }
  0x1c   : > { %p1795_p3 = scmp.ne.s32.totalorder %s186_s29, %s1794_s11  ;;  %p1803_p10 = scmp.lt.s32.totalorder %s1794_s11, %s1794_s11 }
  0x1e   : > { %p1797_p6 = pnand %p1795_p3, %p1759_p8  ;;  %p1804_p4 = por %p1803_p10, %p1802_p9 }
  0x20   : > { %p1798_p1 = pneg %p1797_p6 }
  0x22   : > { %p1805_p5 = pnand %p1804_p4, %p1798_p1 }
  0x24   : > { %1808 = shalt.err (!%p1805_p5)
}
  0x25   : > { %1551 = dma.hbm_to_vmem [thread:$0]  (!%p1987_p7), %s2223_s2, 32, %s186_s29, [#allocation5]  }
  0x26   : > { %s1820_s14 = scalar_lea.vmem %s1991_s7, 12288  ;;  %p1828_p0 = scmp.lt.s32.totalorder %s1991_s7, %s1991_s7 }
  0x27   : > { %p1821_p11 = scmp.ne.s32.totalorder %s1991_s7, %s1820_s14  ;;  %p1829_p1 = scmp.lt.s32.totalorder %s1820_s14, %s1820_s14 }
  0x29   : > { %p1823_p12 = pnand %p1821_p11, %p1759_p8  ;;  %p1830_p4 = por %p1829_p1, %p1828_p0 }
  0x2b   : > { %p1824_p13 = pneg %p1823_p12 }
  0x2d   : > { %p1831_p5 = pnand %p1830_p4, %p1824_p13 }
  0x2f   : > { %1834 = shalt.err (!%p1831_p5)
}
  0x30   : > { %s1910_s15 = smov 384   ;;  %s1911_s16 = smov 24  }
  0x31   : > { %1554 = dma.hbm_to_vmem [thread:$0]  (!%p1987_p7), %s2224_s3, 12288, %s1991_s7, [#allocation8], %s1910_s15, %s1910_s15, %s1911_s16  }
  0x32   : > { %s2025_s26 = sadd.s32 1, %s1905_s21   ;;  %s27_s28 = sadd.s32 1, %s1901_s20 }
  0x33   : > { %s24_s27 = ssub.s32 %s1905_s21, %s2025_s26  ;;  %p34_p2 = scmp.ne.s32.totalorder %s1901_s20, %s1897_s19 }
  0x34   : > { %p25_p8 = scmp.eq.s32.totalorder %s24_s27, 0  ;;  %p35_p3 = scmp.eq.s32.totalorder %s1905_s21, 0 }
  0x35   : > { %p1562_p6 = scmp.lt.s32.totalorder %s1905_s21, 2  ;;  %s212_s6 = sand.u32 1, %s1901_s20  }
  0x36   : > { %s2035_s29 = scalar_select %p25_p8, %s1901_s20, %s27_s28  }
  0x37   : > { %p36_p9 = por %p35_p3, %p34_p2  ;;  %s1363_s8 = sshll.u32 %s212_s6, 6 }
  0x38   : > { %s1485_s9 = sshll.u32 %s1905_s21, 10  ;;  %s216_s7 = scalar_lea.vmem [#allocation2], %s1363_s8 }
  0x39   : > { %s2042_s11 = scalar_lea.hbm %s2221_s0, %s1485_s9  ;;  %s224_s12 = sshll.u32 %s216_s7, 4  ;;  %s2044_s12 = int_to_ptr.vmem [resolvable:$true] %s224_s12 }
  0x3a   : > { %p2046_p7 = pnand %p1562_p6, %p36_p9  ;;  %s2050_s14 = scalar_lea.sflag [#allocation3], %s212_s6 }
  0x3b   : > { %s1835_s15 = scalar_lea.hbm %s2042_s11, 1024  ;;  %s1840_s18 = scalar_lea.hbm %s2221_s0, 2048 }
  0x3c   : > { %p1836_p10 = scmp.ne.s32.totalorder %s2042_s11, %s1835_s15  ;;  %p1837_p11 = pneg %p2046_p7 }
  0x3d   : > { %p1841_p0 = scmp.lt.s32.totalorder %s2042_s11, %s2221_s0  ;;  %p1842_p1 = scmp.lt.s32.totalorder %s1840_s18, %s1835_s15 }
  0x3e   : > { %p1838_p12 = pnand %p1837_p11, %p1836_p10 }
  0x3f   : > { %p1843_p4 = por %p1842_p1, %p1841_p0 }
  0x40   : > { %p1839_p13 = pneg %p1838_p12 }
  0x42   : > { %p1844_p5 = pnand %p1843_p4, %p1839_p13 }
  0x44   : > { %1847 = shalt.err (!%p1844_p5)
}
  0x45   : > { %s1848_s6 = scalar_lea.vmem %s2044_s12, 1024  ;;  %s1912_s8 = smov [#allocation2]  }
  0x46   : > { %p1849_p8 = scmp.ne.s32.totalorder %s2044_s12, %s1848_s6  ;;  %s1853_s9 = sshll.u32 %s1912_s8, 4  ;;  %s1854_s9 = int_to_ptr.vmem [resolvable:$false] %s1853_s9 }
  0x47   : > { %s1855_s30 = scalar_lea.vmem %s1854_s9, 2048  ;;  %p1856_p6 = scmp.lt.s32.totalorder %s2044_s12, %s1854_s9 }
  0x48   : > { %p1851_p2 = pnand %p1849_p8, %p1837_p11  ;;  %p1857_p9 = scmp.lt.s32.totalorder %s1855_s30, %s1848_s6 }
  0x4a   : > { %p1852_p3 = pneg %p1851_p2  ;;  %p1858_p10 = por %p1857_p9, %p1856_p6 }
  0x4c   : > { %p1859_p12 = pnand %p1858_p10, %p1852_p3 }
  0x4e   : > { %1862 = shalt.err (!%p1859_p12)
}
  0x4f   : > { %s1913_s10 = smov 256   ;;  %s1914_s7 = smov 16  }
  0x50   : > { %1558 = dma.hbm_to_vmem [thread:$0]  (!%p2046_p7), %s2042_s11, 1024, %s2044_s12, %s2050_s14, %s1913_s10, %s1913_s10, %s1914_s7  }
  0x51   : > { %p2236_p11 = scmp.ne.s32.totalorder %s2233_s25, 0 }
  0x52   : > { %s238_s15 = sand.u32 (!%p2236_p11), 1, %s1897_s19   ;;  %p2237_p13 = scmp.ne.s32.totalorder (!%p2236_p11), %s2232_s24, 0 }
  0x53   : > { %236 = sbr.rel (%p2236_p11) target bundleno = 680 (0x2a8), region = 40  ;;  %s1368_s16 = sshll.u32 (!%p2236_p11), %s238_s15, 6 }
  0x54   : > { %s239_s17 = scalar_lea.sflag (!%p2236_p11), [#allocation3], %s238_s15  ;;  %s242_s18 = scalar_lea.vmem (!%p2236_p11), [#allocation2], %s1368_s16 }
  0x58   : > { %1880 = dma.done.wait (%p2237_p13), %s239_s17, 1024  }
  0x59   : > { %1882 = vsyncadd (%p2237_p13), %s239_s17, 4294966272  ;;  %p2238_p0 = scmp.ne.s32.totalorder %s2231_s23, 0 }
  0x5b   : > { %1884 = dma.done.wait (%p2238_p0), [#allocation5], 64  }
  0x5c   : > { %1886 = vsyncadd (%p2238_p0), [#allocation5], 4294967232 }
  0x5d   : > { %1888 = dma.done.wait (%p2238_p0), [#allocation8], 12288  }
  0x5e   : > { %1890 = vsyncadd (%p2238_p0), [#allocation8], 4294955008  ;;  %v2086_v0 = vld [vmem:[%s242_s18] sm:$0xff]  ;;  %v2088_v1 = vld [vmem:[%s242_s18 + $0x8] sm:$0xff]  ;;  %s1372_s23 = sshll.u32 %s1356_s22, 2 }
  0x5f   : > { %v2090_v2 = vld [vmem:[%s242_s18 + $0x20] sm:$0xff]  ;;  %v298_v3 = vadd.f32 %v2088_v1, %v2086_v0  ;;  %v2094_v4 = vld [vmem:[%s242_s18 + $0x28] sm:$0xff]  ;;  %v2096_v5 = vld [vmem:[%s242_s18 + $0x10] sm:$0xff]  ;;  %p284_p7 = scmp.lt.s32.totalorder %s1372_s23, 7 }
  0x60   : > { %v2098_v6 = vld [vmem:[%s242_s18 + $0x18] sm:$0xff]  ;;  %v304_v7 = vadd.f32 %v2094_v4, %v2090_v2  ;;  %v2102_v8 = vld [vmem:[%s242_s18 + $0x30] sm:$0xff]  ;;  %v1611_v16 = vld [vmem:[#allocation7 + $0x124] ss:$24 sps:$4 sm:$0xff]  }
  0x61   : > { %v2104_v9 = vld [vmem:[%s242_s18 + $0x38] sm:$0xff]  ;;  %299 = vadd.xlane.f32.xlu0 %v298_v3  ;;  %v301_v10 = vadd.f32 %v2098_v6, %v2096_v5  ;;  %v1609_v14 = vld [vmem:[#allocation7 + $0x150] ss:$24 sps:$4 sm:$0xff]   ;;  %v1613_v17 = vld [vmem:[#allocation7 + $0x12c] ss:$24 sps:$4 sm:$0xff]   ;;  %s2244_s23 = smov (!%p284_p7, %s1372_s23), 7 }
  0x62   : > { %305 = vadd.xlane.f32.xlu1 %v304_v7  ;;  %v307_v11 = vadd.f32 %v2104_v9, %v2102_v8  ;;  %v1605_v12 = vld [vmem:[#allocation7 + $0x154] ss:$24 sps:$4 sm:$0xff]   ;;  %v1610_v15 = vld [vmem:[#allocation7 + $0x158] ss:$24 sps:$4 sm:$0xff]   ;;  %v1616_v19 = vld [vmem:[#allocation7 + $0x128] ss:$24 sps:$4 sm:$0xff]  }
  0x63   : > { %v1607_v13 = vld [vmem:[#allocation7 + $0x15c] ss:$24 sps:$4 sm:$0xff]   ;;  %1015 = vmatprep.subr.bf16.mxu0 %v1605_v12  ;;  %v1615_v18 = vld [vmem:[#allocation7 + $0x120] ss:$24 sps:$4 sm:$0xff]   ;;  %v1621_v22 = vld [vmem:[#allocation7 + $0xf0] ss:$24 sps:$4 sm:$0xff]  }
  0x64   : > { %1068 = vmatprep.subr.bf16.mxu1 %v1607_v13  ;;  %1016 = vmatpush1.bf16.msra.mxu0 %v1609_v14  ;;  %v1617_v20 = vld [vmem:[#allocation7 + $0xf4] ss:$24 sps:$4 sm:$0xff]   ;;  %v1622_v23 = vld [vmem:[#allocation7 + $0xf8] ss:$24 sps:$4 sm:$0xff]   ;;  %v1623_v24 = vld [vmem:[#allocation7 + $0xc4] ss:$24 sps:$4 sm:$0xff]  }
  0x65   : > { %302 = vadd.xlane.f32.xlu0 %v301_v10  ;;  %1069 = vmatpush1.bf16.msra.mxu1 %v1610_v15  ;;  %v1619_v21 = vld [vmem:[#allocation7 + $0xfc] ss:$24 sps:$4 sm:$0xff]   ;;  %v1625_v25 = vld [vmem:[#allocation7 + $0xcc] ss:$24 sps:$4 sm:$0xff]   ;;  %v1627_v26 = vld [vmem:[#allocation7 + $0xc0] ss:$24 sps:$4 sm:$0xff]  }
  0x66   : > { %308 = vadd.xlane.f32.xlu1 %v307_v11  ;;  %1017 = vmatprep.subr.bf16.mxu0 %v1611_v16  ;;  %v1628_v27 = vld [vmem:[#allocation7 + $0xc8] ss:$24 sps:$4 sm:$0xff]   ;;  %v1629_v28 = vld [vmem:[#allocation7 + $0x94] ss:$24 sps:$4 sm:$0xff]   ;;  %v1634_v31 = vld [vmem:[#allocation7 + $0x98] ss:$24 sps:$4 sm:$0xff]  }
  0x67   : > { %1070 = vmatprep.subr.bf16.mxu1 %v1613_v17  ;;  %v1631_v29 = vld [vmem:[#allocation7 + $0x9c] ss:$24 sps:$4 sm:$0xff]   ;;  %v1633_v30 = vld [vmem:[#allocation7 + $0x90] ss:$24 sps:$4 sm:$0xff]   ;;  %v1637_v33 = vld [vmem:[#allocation7 + $0x6c] ss:$24 sps:$4 sm:$0xff]  }
  0x68   : > { %1018 = vmatpush1.bf16.msra.mxu0 %v1615_v18  ;;  %v1635_v32 = vld [vmem:[#allocation7 + $0x64] ss:$24 sps:$4 sm:$0xff]   ;;  %v1639_v34 = vld [vmem:[#allocation7 + $0x60] ss:$24 sps:$4 sm:$0xff]   ;;  %v1641_v36 = vld [vmem:[#allocation7 + $0x34] ss:$24 sps:$4 sm:$0xff]  }
  0x69   : > { %1071 = vmatpush1.bf16.msra.mxu1 %v1616_v19  ;;  %1019 = vmatprep.subr.bf16.mxu0 %v1617_v20  ;;  %v1640_v35 = vld [vmem:[#allocation7 + $0x68] ss:$24 sps:$4 sm:$0xff]   ;;  %v1643_v37 = vld [vmem:[#allocation7 + $0x3c] ss:$24 sps:$4 sm:$0xff]   ;;  %v1646_v39 = vld [vmem:[#allocation7 + $0x38] ss:$24 sps:$4 sm:$0xff]  }
  0x6a   : > { %1072 = vmatprep.subr.bf16.mxu1 %v1619_v21  ;;  %v1645_v38 = vld [vmem:[#allocation7 + $0x30] ss:$24 sps:$4 sm:$0xff]   ;;  %v1647_v40 = vld [vmem:[#allocation7 + $0x4] ss:$24 sps:$4 sm:$0xff]   ;;  %v1651_v42 = vld [vmem:[#allocation7] ss:$24 sps:$4 sm:$0xff]  }
  0x6b   : > { %v1649_v41 = vld [vmem:[#allocation7 + $0xc] ss:$24 sps:$4 sm:$0xff]   ;;  %v1652_v43 = vld [vmem:[#allocation7 + $0x8] ss:$24 sps:$4 sm:$0xff]   ;;  %v1655_v45 = vld [vmem:[#allocation7 + $0x2dc] ss:$24 sps:$4 sm:$0xff]  }
  0x6c   : > { %1020 = vmatpush1.bf16.msra.mxu0 %v1621_v22  ;;  %v1653_v44 = vld [vmem:[#allocation7 + $0x2d4] ss:$24 sps:$4 sm:$0xff]   ;;  %v1657_v46 = vld [vmem:[#allocation7 + $0x2d0] ss:$24 sps:$4 sm:$0xff]   ;;  %v1663_v14 = vld [vmem:[#allocation7 + $0x2a0] ss:$24 sps:$4 sm:$0xff]  }
  0x6d   : > { %1073 = vmatpush1.bf16.msra.mxu1 %v1622_v23  ;;  %1021 = vmatprep.subr.bf16.mxu0 %v1623_v24  ;;  %v1658_v47 = vld [vmem:[#allocation7 + $0x2d8] ss:$24 sps:$4 sm:$0xff]   ;;  %v1661_v13 = vld [vmem:[#allocation7 + $0x2ac] ss:$24 sps:$4 sm:$0xff]   ;;  %v1664_v15 = vld [vmem:[#allocation7 + $0x2a8] ss:$24 sps:$4 sm:$0xff]  }
  0x6e   : > { %1074 = vmatprep.subr.bf16.mxu1 %v1625_v25  ;;  %v1665_v16 = vld [vmem:[#allocation7 + $0x274] ss:$24 sps:$4 sm:$0xff]   ;;  %v1669_v18 = vld [vmem:[#allocation7 + $0x270] ss:$24 sps:$4 sm:$0xff]   ;;  %v1671_v20 = vld [vmem:[#allocation7 + $0x244] ss:$24 sps:$4 sm:$0xff]  }
  0x6f   : > { %v1667_v17 = vld [vmem:[#allocation7 + $0x27c] ss:$24 sps:$4 sm:$0xff]   ;;  %v1670_v19 = vld [vmem:[#allocation7 + $0x278] ss:$24 sps:$4 sm:$0xff]   ;;  %v1673_v21 = vld [vmem:[#allocation7 + $0x24c] ss:$24 sps:$4 sm:$0xff]  }
  0x70   : > { %1022 = vmatpush1.bf16.msra.mxu0 %v1627_v26  ;;  %v1675_v22 = vld [vmem:[#allocation7 + $0x240] ss:$24 sps:$4 sm:$0xff]   ;;  %v1677_v24 = vld [vmem:[#allocation7 + $0x214] ss:$24 sps:$4 sm:$0xff]   ;;  %v1681_v26 = vld [vmem:[#allocation7 + $0x210] ss:$24 sps:$4 sm:$0xff]  }
  0x71   : > { %1075 = vmatpush1.bf16.msra.mxu1 %v1628_v27  ;;  %1023 = vmatprep.subr.bf16.mxu0 %v1629_v28  ;;  %v1676_v23 = vld [vmem:[#allocation7 + $0x248] ss:$24 sps:$4 sm:$0xff]   ;;  %v1679_v25 = vld [vmem:[#allocation7 + $0x21c] ss:$24 sps:$4 sm:$0xff]   ;;  %v1682_v27 = vld [vmem:[#allocation7 + $0x218] ss:$24 sps:$4 sm:$0xff]  }
  0x72   : > { %1076 = vmatprep.subr.bf16.mxu1 %v1631_v29  ;;  %v1683_v28 = vld [vmem:[#allocation7 + $0x1e4] ss:$24 sps:$4 sm:$0xff]   ;;  %s1530_s21 = smul.u32 24, %s2244_s23 }
  0x73   : > { %v1685_v29 = vld [vmem:[#allocation7 + $0x1ec] ss:$24 sps:$4 sm:$0xff]  }
  0x74   : > { %1024 = vmatpush1.bf16.msra.mxu0 %v1633_v30  ;;  %v1687_v30 = vld [vmem:[#allocation7 + $0x1e0] ss:$24 sps:$4 sm:$0xff]   ;;  %s2192_s12 = scalar_lea.vmem %s2226_s5, %s1530_s21 }
  0x75   : > { %1077 = vmatpush1.bf16.msra.mxu1 %v1634_v31  ;;  %1025 = vmatprep.subr.bf16.mxu0 %v1635_v32  ;;  %v1688_v31 = vld [vmem:[#allocation7 + $0x1e8] ss:$24 sps:$4 sm:$0xff]   ;;  %v1689_v32 = vld [vmem:[#allocation7 + $0x1b4] ss:$24 sps:$4 sm:$0xff]  }
  0x76   : > { %1078 = vmatprep.subr.bf16.mxu1 %v1637_v33  ;;  %v1691_v33 = vld [vmem:[#allocation7 + $0x1bc] ss:$24 sps:$4 sm:$0xff]  }
  0x78   : > { %1026 = vmatpush1.bf16.msra.mxu0 %v1639_v34  ;;  %v1693_v34 = vld [vmem:[#allocation7 + $0x1b0] ss:$24 sps:$4 sm:$0xff]  }
  0x79   : > { %1079 = vmatpush1.bf16.msra.mxu1 %v1640_v35  ;;  %1027 = vmatprep.subr.bf16.mxu0 %v1641_v36  ;;  %v1694_v35 = vld [vmem:[#allocation7 + $0x1b8] ss:$24 sps:$4 sm:$0xff]   ;;  %v1695_v36 = vld [vmem:[#allocation7 + $0x184] ss:$24 sps:$4 sm:$0xff]  }
  0x7a   : > { %1080 = vmatprep.subr.bf16.mxu1 %v1643_v37  ;;  %v1697_v37 = vld [vmem:[#allocation7 + $0x18c] ss:$24 sps:$4 sm:$0xff]  }
  0x7c   : > { %1028 = vmatpush1.bf16.msra.mxu0 %v1645_v38  ;;  %v1699_v38 = vld [vmem:[#allocation7 + $0x180] ss:$24 sps:$4 sm:$0xff]  }
  0x7d   : > { %1081 = vmatpush1.bf16.msra.mxu1 %v1646_v39  ;;  %1029 = vmatprep.subr.bf16.mxu0 %v1647_v40  ;;  %v1700_v39 = vld [vmem:[#allocation7 + $0x188] ss:$24 sps:$4 sm:$0xff]   ;;  %v1703_v40 = vld [vmem:[#allocation7 + $0x164] ss:$24 sps:$4 sm:$0xff]  }
  0x7e   : > { %1082 = vmatprep.subr.bf16.mxu1 %v1649_v41 }
  0x80   : > { %1030 = vmatpush1.bf16.msra.mxu0 %v1651_v42 }
  0x81   : > { %1083 = vmatpush1.bf16.msra.mxu1 %v1652_v43  ;;  %1031 = vmatprep.subr.bf16.mxu0 %v1653_v44 }
  0x82   : > { %1084 = vmatprep.subr.bf16.mxu1 %v1655_v45 }
  0x84   : > { %1032 = vmatpush2.bf16.msra.mxu0 %v1657_v46 }
  0x85   : > { %1085 = vmatpush2.bf16.msra.mxu1 %v1658_v47 }
  0x86   : > { %1086 = vmatprep.subr.bf16.mxu1 %v1661_v13 }
  0x89   : > { %1087 = vmatpush2.bf16.msra.mxu1 %v1664_v15 }
  0x8a   : > { %1088 = vmatprep.subr.bf16.mxu1 %v1667_v17 }
  0x8d   : > { %1089 = vmatpush2.bf16.msra.mxu1 %v1670_v19 }
  0x8e   : > { %1090 = vmatprep.subr.bf16.mxu1 %v1673_v21 }
  0x91   : > { %1091 = vmatpush2.bf16.msra.mxu1 %v1676_v23 }
  0x92   : > { %1092 = vmatprep.subr.bf16.mxu1 %v1679_v25 }
  0x95   : > { %1093 = vmatpush2.bf16.msra.mxu1 %v1682_v27 }
  0x96   : > { %1094 = vmatprep.subr.bf16.mxu1 %v1685_v29 }
  0x99   : > { %1095 = vmatpush2.bf16.msra.mxu1 %v1688_v31  ;;  %v1709_v31 = vld [vmem:[#allocation7 + $0x104] ss:$24 sps:$4 sm:$0xff]  }
  0x9a   : > { %1096 = vmatprep.subr.bf16.mxu1 %v1691_v33 }
  0x9d   : > { %1097 = vmatpush2.bf16.msra.mxu1 %v1694_v35 }
  0x9e   : > { %1098 = vmatprep.subr.bf16.mxu1 %v1697_v37  ;;  %v1710_v37 = vld [vmem:[#allocation7 + $0xd0] ss:$24 sps:$4 sm:$0xff]  }
  0xa1   : > { %1099 = vmatpush2.bf16.msra.mxu1 %v1700_v39  ;;  %v1713_v39 = vld [vmem:[#allocation7 + $0xa0] ss:$24 sps:$4 sm:$0xff]  }
  0xa2   : > { %1498 = vmatprep.subr.bf16.mxu1 %v1703_v40 }
  0xea   : > { %v300_v48 = vpop.xlane.xlu0 %299 }
  0xeb   : > { %v311_v49 = vmul.f32 0.00390625, %v300_v48  ;;  %v306_v50 = vpop.xlane.xlu1 %305  ;;  %v365_v48 = vlaneseq }
  0xec   : > { %v313_v51 = vmul.f32 0.00390625, %v306_v50 }
  0xed   : > { %v2111_v52 = vsub.f32 %v2086_v0, %v311_v49  ;;  %v2114_v53 = vsub.f32 %v2088_v1, %v311_v49 }
  0xee   : > { %v2117_v54 = vsub.f32 %v2090_v2, %v313_v51  ;;  %v2120_v55 = vsub.f32 %v2094_v4, %v313_v51  ;;  %v303_v56 = vpop.xlane.xlu0 %302 }
  0xef   : > { %v312_v57 = vmul.f32 0.00390625, %v303_v56  ;;  %v309_v58 = vpop.xlane.xlu1 %308  ;;  %v323_v59 = vmul.f32 %v2111_v52, %v2111_v52  ;;  %v324_v60 = vmul.f32 %v2114_v53, %v2114_v53 }
  0xf0   : > { %v314_v61 = vmul.f32 0.00390625, %v309_v58  ;;  %v327_v62 = vmul.f32 %v2117_v54, %v2117_v54  ;;  %v328_v63 = vmul.f32 %v2120_v55, %v2120_v55 }
  0xf1   : > { %v2131_v0 = vsub.f32 %v2096_v5, %v312_v57  ;;  %v2134_v1 = vsub.f32 %v2098_v6, %v312_v57  ;;  %v331_v2 = vadd.f32 %v324_v60, %v323_v59  ;;  %v2150_v57 = vshrl.u32 %v365_v48, 7  ;;  %v1730_v48 = vld [vmem:[#allocation7 + $0x2b4] ss:$24 sps:$4 sm:$0xff]  }
  0xf2   : > { %v2137_v3 = vsub.f32 %v2102_v8, %v314_v61  ;;  %v2140_v4 = vsub.f32 %v2104_v9, %v314_v61  ;;  %v337_v7 = vadd.f32 %v328_v63, %v327_v62  ;;  %v1659_v9 = vld [vmem:[#allocation7 + $0x2a4] ss:$24 sps:$4 sm:$0xff]  }
  0xf3   : > { %332 = vadd.xlane.f32.xlu0 %v331_v2  ;;  %v325_v10 = vmul.f32 %v2131_v0, %v2131_v0  ;;  %v326_v11 = vmul.f32 %v2134_v1, %v2134_v1  ;;  %1033 = vmatprep.subr.bf16.mxu0 %v1659_v9  ;;  %v2153_v59 = vsub.s32 1, %v2150_v57  ;;  %v2156_v60 = vsub.s32 0, %v2150_v57  ;;  %v363_v61 = vld [vmem:[#allocation4] sm:$0x3] }
  0xf4   : > { %v329_v5 = vmul.f32 %v2137_v3, %v2137_v3  ;;  %v330_v6 = vmul.f32 %v2140_v4, %v2140_v4  ;;  %1034 = vmatpush2.bf16.msra.mxu0 %v1663_v14 }
  0xf5   : > { %v334_v12 = vadd.f32 %v326_v11, %v325_v10  ;;  %1035 = vmatprep.subr.bf16.mxu0 %v1665_v16  ;;  %v372_v63 = vrot.slane %v363_v61, %v2153_v59  ;;  %v368_v2 = vrot.slane %v363_v61, %v2156_v60  ;;  %v383_v10 = vld [vmem:[#allocation6] sm:$0x3] }
  0xf6   : > { %v340_v8 = vadd.f32 %v330_v6, %v329_v5  ;;  %v388_v9 = vrot.slane %v383_v10, %v2156_v60  ;;  %v1739_v61 = vld [vmem:[#allocation7 + $0x224] ss:$24 sps:$4 sm:$0xff]  }
  0xf7   : > { %338 = vadd.xlane.f32.xlu0 %v337_v7  ;;  %335 = vadd.xlane.f32.xlu1 %v334_v12  ;;  %v392_v12 = vrot.slane %v383_v10, %v2153_v59  ;;  %v1743_v10 = vld [vmem:[#allocation7 + $0x1c0] ss:$24 sps:$4 sm:$0xff]  }
  0xf8   : > { %1036 = vmatpush2.bf16.msra.mxu0 %v1669_v18 }
  0xf9   : > { %1037 = vmatprep.subr.bf16.mxu0 %v1671_v20 }
  0xfb   : > { %341 = vadd.xlane.f32.xlu1 %v340_v8 }
  0xfc   : > { %1038 = vmatpush2.bf16.msra.mxu0 %v1675_v22 }
  0xfd   : > { %1039 = vmatprep.subr.bf16.mxu0 %v1677_v24 }
 0x100   : > { %1040 = vmatpush2.bf16.msra.mxu0 %v1681_v26 }
 0x101   : > { %1041 = vmatprep.subr.bf16.mxu0 %v1683_v28 }
 0x104   : > { %1042 = vmatpush2.bf16.msra.mxu0 %v1687_v30 }
 0x105   : > { %1043 = vmatprep.subr.bf16.mxu0 %v1689_v32 }
 0x108   : > { %1044 = vmatpush2.bf16.msra.mxu0 %v1693_v34  ;;  %v1707_v34 = vld [vmem:[#allocation7 + $0x100] ss:$24 sps:$4 sm:$0xff]  }
 0x109   : > { %1045 = vmatprep.subr.bf16.mxu0 %v1695_v36  ;;  %v1712_v36 = vld [vmem:[#allocation7 + $0xd4] ss:$24 sps:$4 sm:$0xff]  }
 0x10c   : > { %1046 = vmatpush2.bf16.msra.mxu0 %v1699_v38  ;;  %v1715_v38 = vld [vmem:[#allocation7 + $0xa4] ss:$24 sps:$4 sm:$0xff]  }
 0x10d   : > { %1121 = vmatprep.subr.bf16.mxu0 %v1703_v40  ;;  %v1718_v40 = vld [vmem:[#allocation7 + $0x74] ss:$24 sps:$4 sm:$0xff]  }
 0x17c   : > { %v333_v41 = vpop.xlane.xlu0 %332 }
 0x17d   : > { %v343_v42 = vmul.f32 0.00390625, %v333_v41  ;;  %v1716_v41 = vld [vmem:[#allocation7 + $0x70] ss:$24 sps:$4 sm:$0xff]  }
 0x17f   : > { %v347_v43 = vadd.f32 1e-05, %v343_v42  ;;  %v1721_v42 = vld [vmem:[#allocation7 + $0x44] ss:$24 sps:$4 sm:$0xff]  }
 0x180   : > { %v336_v44 = vpop.xlane.xlu1 %335  ;;  %v339_v45 = vpop.xlane.xlu0 %338 }
 0x181   : > { %1749 = vrsqrt.f32 %v347_v43  ;;  %v344_v46 = vmul.f32 0.00390625, %v336_v44  ;;  %v345_v47 = vmul.f32 0.00390625, %v339_v45  ;;  %v1719_v43 = vld [vmem:[#allocation7 + $0x40] ss:$24 sps:$4 sm:$0xff]   ;;  %v1724_v44 = vld [vmem:[#allocation7 + $0x14] ss:$24 sps:$4 sm:$0xff]  }
 0x182   : > { %v1722_v45 = vld [vmem:[#allocation7 + $0x10] ss:$24 sps:$4 sm:$0xff]  }
 0x183   : > { %v348_v49 = vadd.f32 1e-05, %v344_v46  ;;  %v349_v50 = vadd.f32 1e-05, %v345_v47  ;;  %v1727_v46 = vld [vmem:[#allocation7 + $0x2e4] ss:$24 sps:$4 sm:$0xff]  }
 0x184   : > { %v342_v51 = vpop.xlane.xlu1 %341  ;;  %v1725_v47 = vld [vmem:[#allocation7 + $0x2e0] ss:$24 sps:$4 sm:$0xff]  }
 0x185   : > { %1751 = vrsqrt.f32 %v348_v49  ;;  %v346_v56 = vmul.f32 0.00390625, %v342_v51  ;;  %v1728_v49 = vld [vmem:[#allocation7 + $0x2b0] ss:$24 sps:$4 sm:$0xff]   ;;  %v1731_v51 = vld [vmem:[#allocation7 + $0x280] ss:$24 sps:$4 sm:$0xff]  }
 0x186   : > { %1753 = vrsqrt.f32 %v349_v50  ;;  %v1733_v50 = vld [vmem:[#allocation7 + $0x284] ss:$24 sps:$4 sm:$0xff]  }
 0x187   : > { %v350_v58 = vadd.f32 1e-05, %v346_v56  ;;  %v1736_v56 = vld [vmem:[#allocation7 + $0x254] ss:$24 sps:$4 sm:$0xff]  }
 0x189   : > { %1755 = vrsqrt.f32 %v350_v58  ;;  %v1734_v58 = vld [vmem:[#allocation7 + $0x250] ss:$24 sps:$4 sm:$0xff]  }
 0x18e   : > { %v1750_v62 = vpop.eup %1749 }
 0x18f   : > { %v356_v7 = vmul.f32 %v1750_v62, %v2114_v53  ;;  %v355_v11 = vmul.f32 %v1750_v62, %v2111_v52  ;;  %v1737_v62 = vld [vmem:[#allocation7 + $0x220] ss:$24 sps:$4 sm:$0xff]  }
 0x191   : > { %v376_v6 = vmul.f32 %v372_v63, %v356_v7  ;;  %v375_v8 = vmul.f32 %v368_v2, %v355_v11  ;;  %v1745_v7 = vld [vmem:[#allocation7 + $0x1c4] ss:$24 sps:$4 sm:$0xff]   ;;  %v1748_v11 = vld [vmem:[#allocation7 + $0x194] ss:$24 sps:$4 sm:$0xff]  }
 0x192   : > { %v1752_v5 = vpop.eup %1751 }
 0x193   : > { %v1754_v13 = vpop.eup %1753  ;;  %v358_v14 = vmul.f32 %v1752_v5, %v2134_v1  ;;  %v357_v15 = vmul.f32 %v1752_v5, %v2131_v0  ;;  %v396_v19 = vadd.f32 %v392_v12, %v376_v6  ;;  %v395_v20 = vadd.f32 %v388_v9, %v375_v8  ;;  %v1701_v1 = vld [vmem:[#allocation7 + $0x160] ss:$24 sps:$4 sm:$0xff]   ;;  %v1746_v5 = vld [vmem:[#allocation7 + $0x190] ss:$24 sps:$4 sm:$0xff]  }
 0x194   : > { %v360_v16 = vmul.f32 %v1754_v13, %v2120_v55  ;;  %v359_v25 = vmul.f32 %v1754_v13, %v2117_v54  ;;  %v1706_v55 = vld [vmem:[#allocation7 + $0x134] ss:$24 sps:$4 sm:$0xff]   ;;  %v1704_v54 = vld [vmem:[#allocation7 + $0x130] ss:$24 sps:$4 sm:$0xff]   ;;  %v515_v6 = vsub.s32 2, %v2150_v57 }
 0x195   : > { %v378_v17 = vmul.f32 %v372_v63, %v358_v14  ;;  %v377_v18 = vmul.f32 %v368_v2, %v357_v15  ;;  %v503_v8 = vld [vmem:[%s2225_s4] sm:$0x3f] }
 0x196   : > { %v1756_v53 = vpop.eup %1755  ;;  %v380_v52 = vmul.f32 %v372_v63, %v360_v16  ;;  %v516_v13 = vrot.slane %v503_v8, %v515_v6  ;;  %v512_v14 = vrot.slane %v503_v8, %v2153_v59 }
 0x197   : > { %v398_v21 = vadd.f32 %v392_v12, %v378_v17  ;;  %v397_v22 = vadd.f32 %v388_v9, %v377_v18  ;;  %v362_v23 = vmul.f32 %v1756_v53, %v2140_v4  ;;  %v361_v24 = vmul.f32 %v1756_v53, %v2137_v3 }
 0x198   : > { %v400_v29 = vadd.f32 %v392_v12, %v380_v52  ;;  %v379_v4 = vmul.f32 %v368_v2, %v359_v25 }
 0x199   : > { %v404_v26 = vpack.c.bf16 %v398_v21, %v396_v19  ;;  %v2170_v27 = vpack.c.bf16 %v397_v22, %v395_v20  ;;  %v382_v0 = vmul.f32 %v372_v63, %v362_v23  ;;  %v381_v28 = vmul.f32 %v368_v2, %v361_v24  ;;  %v1742_v63 = vld [vmem:[#allocation7 + $0x1f4] ss:$24 sps:$4 sm:$0xff]   ;;  %v1740_v2 = vld [vmem:[#allocation7 + $0x1f0] ss:$24 sps:$4 sm:$0xff]  }
 0x19a   : > { %v399_v33 = vadd.f32 %v388_v9, %v379_v4 }
 0x19b   : > { %1047 = vmatprep.mubr.bf16.mxu0 %v404_v26  ;;  %1100 = vmatprep.mubr.bf16.mxu1 %v404_v26  ;;  %v402_v30 = vadd.f32 %v392_v12, %v382_v0  ;;  %v401_v32 = vadd.f32 %v388_v9, %v381_v28  ;;  %v519_v12 = vsub.s32 3, %v2150_v57  ;;  %v508_v9 = vrot.slane %v503_v8, %v2156_v60 }
 0x19c   : > { %1048 = vmatmul.mubr.bf16.vlgmr.msra.gmra.mxu0 %v2170_v27  ;;  %1101 = vmatmul.mubr.bf16.vlgmr.msra.gmra.mxu1 %v2170_v27 }
 0x19d   : > { %1122 = vmatpush1.bf16.msra.mxu0 %v1701_v1  ;;  %1514 = vmatpush1.bf16.msra.mxu1 %v1701_v1  ;;  %v406_v3 = vpack.c.bf16 %v402_v30, %v400_v29  ;;  %v2174_v35 = vpack.c.bf16 %v401_v32, %v399_v33  ;;  %v520_v15 = vrot.slane %v503_v8, %v519_v12 }
 0x19e   : > { %1123 = vmatprep.subr.bf16.mxu0 %v1706_v55  ;;  %1499 = vmatprep.subr.bf16.mxu1 %v1706_v55 }
 0x19f   : > { %1057 = vmatprep.mubr.bf16.mxu0 %v406_v3  ;;  %1110 = vmatprep.mubr.bf16.mxu1 %v406_v3 }
 0x1a1   : > { %1124 = vmatpush1.bf16.msra.mxu0 %v1704_v54  ;;  %1515 = vmatpush1.bf16.msra.mxu1 %v1704_v54 }
 0x1a2   : > { %1125 = vmatprep.subr.bf16.mxu0 %v1709_v31  ;;  %1500 = vmatprep.subr.bf16.mxu1 %v1709_v31 }
 0x1a4   : > { %1058 = vmatmul.mubr.bf16.gmra.mxu0 %v2174_v35  ;;  %1111 = vmatmul.mubr.bf16.gmra.mxu1 %v2174_v35 }
 0x1a5   : > { %1126 = vmatpush1.bf16.msra.mxu0 %v1707_v34  ;;  %1516 = vmatpush1.bf16.msra.mxu1 %v1707_v34 }
 0x1a6   : > { %1153 = vmatprep.mubr.bf16.mxu0 %v404_v26  ;;  %1163 = vmatprep.mubr.bf16.mxu1 %v406_v3 }
 0x1a7   : > { %1127 = vmatprep.subr.bf16.mxu0 %v1712_v36  ;;  %1501 = vmatprep.subr.bf16.mxu1 %v1712_v36 }
 0x1a9   : > { %1128 = vmatpush1.bf16.msra.mxu0 %v1710_v37  ;;  %1517 = vmatpush1.bf16.msra.mxu1 %v1710_v37 }
 0x1aa   : > { %1129 = vmatprep.subr.bf16.mxu0 %v1715_v38  ;;  %1502 = vmatprep.subr.bf16.mxu1 %v1715_v38 }
 0x1ad   : > { %1130 = vmatpush1.bf16.msra.mxu0 %v1713_v39  ;;  %1518 = vmatpush1.bf16.msra.mxu1 %v1713_v39 }
 0x1ae   : > { %1131 = vmatprep.subr.bf16.mxu0 %v1718_v40  ;;  %1503 = vmatprep.subr.bf16.mxu1 %v1718_v40 }
 0x1b1   : > { %1132 = vmatpush1.bf16.msra.mxu0 %v1716_v41  ;;  %1519 = vmatpush1.bf16.msra.mxu1 %v1716_v41 }
 0x1b2   : > { %1133 = vmatprep.subr.bf16.mxu0 %v1721_v42  ;;  %1504 = vmatprep.subr.bf16.mxu1 %v1721_v42 }
 0x1b5   : > { %1134 = vmatpush1.bf16.msra.mxu0 %v1719_v43  ;;  %1520 = vmatpush1.bf16.msra.mxu1 %v1719_v43 }
 0x1b6   : > { %1135 = vmatprep.subr.bf16.mxu0 %v1724_v44  ;;  %1505 = vmatprep.subr.bf16.mxu1 %v1724_v44 }
 0x1b9   : > { %1136 = vmatpush1.bf16.msra.mxu0 %v1722_v45  ;;  %1521 = vmatpush1.bf16.msra.mxu1 %v1722_v45 }
 0x1ba   : > { %1137 = vmatprep.subr.bf16.mxu0 %v1727_v46  ;;  %1506 = vmatprep.subr.bf16.mxu1 %v1727_v46  ;;  %v523_v46 = vsub.s32 4, %v2150_v57 }
 0x1bd   : > { %1138 = vmatpush2.bf16.msra.mxu0 %v1725_v47  ;;  %1522 = vmatpush2.bf16.msra.mxu1 %v1725_v47  ;;  %v527_v47 = vsub.s32 5, %v2150_v57 }
 0x1be   : > { %1139 = vmatprep.subr.bf16.mxu0 %v1730_v48  ;;  %1507 = vmatprep.subr.bf16.mxu1 %v1730_v48  ;;  %v524_v48 = vrot.slane %v503_v8, %v523_v46 }
 0x1c1   : > { %1140 = vmatpush2.bf16.msra.mxu0 %v1728_v49  ;;  %1523 = vmatpush2.bf16.msra.mxu1 %v1728_v49  ;;  %v528_v49 = vrot.slane %v503_v8, %v527_v47 }
 0x1c2   : > { %1141 = vmatprep.subr.bf16.mxu0 %v1733_v50  ;;  %1508 = vmatprep.subr.bf16.mxu1 %v1733_v50 }
 0x1c5   : > { %1142 = vmatpush2.bf16.msra.mxu0 %v1731_v51  ;;  %1524 = vmatpush2.bf16.msra.mxu1 %v1731_v51 }
 0x1c6   : > { %1143 = vmatprep.subr.bf16.mxu0 %v1736_v56  ;;  %1509 = vmatprep.subr.bf16.mxu1 %v1736_v56 }
 0x1c9   : > { %1144 = vmatpush2.bf16.msra.mxu0 %v1734_v58  ;;  %1525 = vmatpush2.bf16.msra.mxu1 %v1734_v58 }
 0x1ca   : > { %1145 = vmatprep.subr.bf16.mxu0 %v1739_v61  ;;  %1510 = vmatprep.subr.bf16.mxu1 %v1739_v61 }
 0x1cd   : > { %1146 = vmatpush2.bf16.msra.mxu0 %v1737_v62  ;;  %1526 = vmatpush2.bf16.msra.mxu1 %v1737_v62 }
 0x1ce   : > { %1147 = vmatprep.subr.bf16.mxu0 %v1742_v63  ;;  %1511 = vmatprep.subr.bf16.mxu1 %v1742_v63 }
 0x1d1   : > { %1148 = vmatpush2.bf16.msra.mxu0 %v1740_v2  ;;  %1527 = vmatpush2.bf16.msra.mxu1 %v1740_v2 }
 0x1d2   : > { %1149 = vmatprep.subr.bf16.mxu0 %v1745_v7  ;;  %1512 = vmatprep.subr.bf16.mxu1 %v1745_v7 }
 0x1d5   : > { %1150 = vmatpush2.bf16.msra.mxu0 %v1743_v10  ;;  %1528 = vmatpush2.bf16.msra.mxu1 %v1743_v10 }
 0x1d6   : > { %1151 = vmatprep.subr.bf16.mxu0 %v1748_v11  ;;  %1513 = vmatprep.subr.bf16.mxu1 %v1748_v11 }
 0x1d9   : > { %1152 = vmatpush2.bf16.msra.mxu0 %v1746_v5  ;;  %1529 = vmatpush2.bf16.msra.mxu1 %v1746_v5 }
 0x1dc   : > { %1154 = vmatmul.mubr.bf16.vlgmr.msra.gmra.mxu0 %v2170_v27  ;;  %1164 = vmatmul.mubr.bf16.vlgmr.msra.gmra.mxu1 %v2174_v35 }
 0x25c   : > { %v1049_v16 = vpop.f32.mrf.mxu0  ;;  %v1102_v17 = vpop.f32.mrf.mxu1 }
 0x25d   : > { %v1050_v19 = vadd.f32 %v1049_v16, %v508_v9  ;;  %v1103_v20 = vadd.f32 %v1102_v17, %v516_v13 }
 0x25e   : > { %v1051_v18 = vpop.f32.mrf.mxu0  ;;  %v1104_v53 = vpop.f32.mrf.mxu1 }
 0x25f   : > { %v1052_v52 = vadd.f32 %v1051_v18, %v512_v14  ;;  %v1105_v21 = vadd.f32 %v1104_v53, %v520_v15 }
 0x260   : > { %v1053_v60 = vpop.f32.mrf.mxu0  ;;  %v1106_v22 = vpop.f32.mrf.mxu1 }
 0x261   : > { %v1486_v59 = vpack.c.bf16 %v1052_v52, %v1050_v19  ;;  %v1487_v23 = vpack.c.bf16 %v1105_v21, %v1103_v20  ;;  %v1054_v26 = vadd.f32 %v1053_v60, %v508_v9  ;;  %v1107_v1 = vadd.f32 %v1106_v22, %v516_v13 }
 0x262   : > { %v1055_v24 = vpop.f32.mrf.mxu0  ;;  %v1108_v25 = vpop.f32.mrf.mxu1 }
 0x263   : > { %1246 = vst [vmem:[%s2192_s12] sm:$0xff] %v1486_v59  ;;  %1247 = vst [vmem:[%s2192_s12 + $0x8] sm:$0xff] %v1487_v23  ;;  %v1056_v27 = vadd.f32 %v1055_v24, %v512_v14  ;;  %v1109_v0 = vadd.f32 %v1108_v25, %v520_v15 }
 0x264   : > { %v1059_v55 = vpop.f32.mrf.mxu0  ;;  %v1112_v28 = vpop.f32.mrf.mxu1 }
 0x265   : > { %v1489_v29 = vpack.c.bf16 %v1056_v27, %v1054_v26  ;;  %v1490_v30 = vpack.c.bf16 %v1109_v0, %v1107_v1  ;;  %v1060_v54 = vadd.f32 %v1059_v55, %v508_v9  ;;  %v1113_v31 = vadd.f32 %v1112_v28, %v516_v13 }
 0x266   : > { %v1061_v4 = vpop.f32.mrf.mxu0  ;;  %v1114_v3 = vpop.f32.mrf.mxu1 }
 0x267   : > { %1249 = vst [vmem:[%s2192_s12 + $0x18] sm:$0xff] %v1489_v29  ;;  %1250 = vst [vmem:[%s2192_s12 + $0x20] sm:$0xff] %v1490_v30  ;;  %v1062_v32 = vadd.f32 %v1061_v4, %v512_v14  ;;  %v1115_v33 = vadd.f32 %v1114_v3, %v520_v15 }
 0x268   : > { %v1063_v34 = vpop.f32.mrf.mxu0  ;;  %v1116_v35 = vpop.f32.mrf.mxu1 }
 0x269   : > { %v1492_v36 = vpack.c.bf16 %v1062_v32, %v1060_v54  ;;  %v1493_v37 = vpack.c.bf16 %v1115_v33, %v1113_v31  ;;  %v1064_v40 = vadd.f32 %v1063_v34, %v508_v9  ;;  %v1117_v41 = vadd.f32 %v1116_v35, %v516_v13 }
 0x26a   : > { %v1065_v38 = vpop.f32.mrf.mxu0  ;;  %v1118_v39 = vpop.f32.mrf.mxu1 }
 0x26b   : > { %1252 = vst [vmem:[%s2192_s12 + $0x30] sm:$0xff] %v1492_v36  ;;  %1253 = vst [vmem:[%s2192_s12 + $0x38] sm:$0xff] %v1493_v37  ;;  %v1066_v42 = vadd.f32 %v1065_v38, %v512_v14  ;;  %v1119_v43 = vadd.f32 %v1118_v39, %v520_v15 }
 0x26d   : > { %v1495_v44 = vpack.c.bf16 %v1066_v42, %v1064_v40  ;;  %v1496_v45 = vpack.c.bf16 %v1119_v43, %v1117_v41 }
 0x26f   : > { %1255 = vst [vmem:[%s2192_s12 + $0x48] sm:$0xff] %v1495_v44  ;;  %1256 = vst [vmem:[%s2192_s12 + $0x50] sm:$0xff] %v1496_v45 }
 0x29c   : > { %v1155_v50 = vpop.f32.mrf.mxu0  ;;  %v1165_v51 = vpop.f32.mrf.mxu1 }
 0x29d   : > { %v1156_v61 = vadd.f32 %v1155_v50, %v524_v48  ;;  %v1166_v8 = vadd.f32 %v1165_v51, %v524_v48 }
 0x29e   : > { %v1157_v56 = vpop.f32.mrf.mxu0  ;;  %v1167_v58 = vpop.f32.mrf.mxu1 }
 0x29f   : > { %v1158_v62 = vadd.f32 %v1157_v56, %v528_v49  ;;  %v1168_v10 = vadd.f32 %v1167_v58, %v528_v49 }
 0x2a0   : > { %v1159_v63 = vpop.f32.mrf.mxu0  ;;  %v1169_v2 = vpop.f32.mrf.mxu1 }
 0x2a1   : > { %v1488_v7 = vpack.c.bf16 %v1158_v62, %v1156_v61  ;;  %v1160_v6 = vadd.f32 %v1159_v63, %v524_v48  ;;  %v1170_v9 = vadd.f32 %v1169_v2, %v524_v48  ;;  %v1494_v14 = vpack.c.bf16 %v1168_v10, %v1166_v8 }
 0x2a2   : > { %v1161_v11 = vpop.f32.mrf.mxu0  ;;  %v1171_v5 = vpop.f32.mrf.mxu1 }
 0x2a3   : > { %1248 = vst [vmem:[%s2192_s12 + $0x10] sm:$0xff] %v1488_v7  ;;  %v1162_v57 = vadd.f32 %v1161_v11, %v528_v49  ;;  %v1172_v12 = vadd.f32 %v1171_v5, %v528_v49  ;;  %1254 = vst [vmem:[%s2192_s12 + $0x40] sm:$0xff] %v1494_v14 }
 0x2a5   : > { %v1491_v13 = vpack.c.bf16 %v1162_v57, %v1160_v6  ;;  %v1497_v15 = vpack.c.bf16 %v1172_v12, %v1170_v9 }
 0x2a7   : > { %1251 = vst [vmem:[%s2192_s12 + $0x28] sm:$0xff] %v1491_v13  ;;  %1257 = vst [vmem:[%s2192_s12 + $0x58] sm:$0xff] %v1497_v15 }
 0x2a8 PF: > { %p17_p1 = scmp.ge.s32.totalorder %s2025_s26, 4   ;;  %s2239_s18 = smov %s1897_s19 }
 0x2a9   : > { %s2240_s19 = smov %s1901_s20  ;;  %s2241_s20 = smov %s2035_s29 }
 0x2aa   : > { %s2242_s21 = smov %s2025_s26  ;;  %19 = sbr.rel (!%p17_p1) target bundleno = 5 (0x5), region = 92 }
 0x2af   :  { %1282 = vsyncpa [#allocation3], 1 }
 0x2b0   :  { %1284 = vsyncpa [#allocation3 + $0x1], 1 }
 0x2b1   :  { %1285 = vsyncpa [#allocation5], 1 }
 0x2b2   :  { %1286 = vsyncpa [#allocation8], 1 }

// kernel: _lambda_.9
= control target key start
LH: loop header
LB: loop body
LE: loop exit
PB: predicated region body
PF: predicated region fallthrough
CT: control target
= control target key end

     0   :  { %s3951_s0 = inlined_call_operand.vmem [shape: s32[8,16], index: 0, kind: input, shape index: {}]   ;;  %s3952_s1 = inlined_call_operand.vmem [shape: f32[64,256], index: 1, kind: input, shape index: {}]   ;;  %s3953_s2 = inlined_call_operand.vmem [shape: bf16[8,256,1024], index: 2, kind: input, shape index: {}]   ;;  %s3954_s3 = inlined_call_operand.vmem [shape: f32[8,1,1024], index: 3, kind: input, shape index: {}]   ;;  %s3955_s4 = inlined_call_operand.vmem [shape: bf16[8,1024,256], index: 4, kind: input, shape index: {}]   ;;  %s3956_s5 = inlined_call_operand.vmem [shape: f32[8,1,256], index: 5, kind: input, shape index: {}]   ;;  %s3957_s6 = inlined_call_operand.vmem [shape: f32[8,16,256], index: 6, kind: output, shape index: {}]  }
   0x1   :  { %3961 = sst [smem:[#allocation43_spill]] %s3953_s2  ;;  %s11_s23 = sshll.u32 %s3951_s0, 4  ;;  %s12_s23 = int_to_ptr.vmem [resolvable:$true] %s11_s23 }
   0x2   :  { %s3348_s24 = scalar_lea.vmem %s12_s23, 128  ;;  %p3353_p1 = scmp.lt.s32.totalorder %s12_s23, %s12_s23 }
   0x3   :  { %p3349_p0 = scmp.ne.s32.totalorder %s12_s23, %s3348_s24  ;;  %p3354_p2 = scmp.lt.s32.totalorder %s3348_s24, %s3348_s24 }
   0x5   :  { %p3355_p3 = por %p3354_p2, %p3353_p1 }
   0x7   :  { %p3356_p4 = pnand %p3355_p3, %p3349_p0 }
   0x9   :  { %3359 = shalt.err (!%p3356_p4)  }
   0xa   :  { %s3450_s25 = smov [#allocation5]  }
   0xb   :  { %14 = dma.vmem_to_smem %s12_s23, 128, %s3450_s25, [#allocation4] }
   0xc   :  { %3388 = dma.done.wait [#allocation4], 128 }
   0xd   :  { %3389 = vsyncadd [#allocation4], 4294967168 }
   0xe   :  { %16 = sfence }
   0xf   :  { %s3489_s26 = smov 0   ;;  %s3491_s27 = smov 0  }
  0x10   :  { %s3493_s28 = smov 0   ;;  %s3495_s0 = smov 0  }
  0x11   :  { %s3497_s29 = smov 0   ;;  %s3499_s30 = smov 0  }
  0x12   :  { %s3501_s7 = smov 0  }
  0x13 LB: > { %3962 = sst [smem:[#allocation40_spill]] %s3444_s30  ;;  %s31_s8 = sadd.s32 1, %s3440_s29  ;;  %s3448_s7 = sphi %s3501_s7, %s22_s7   ;;  %s3444_s30 = sphi %s3499_s30, %s3969_s30   ;;  %s3440_s29 = sphi %s3497_s29, %s3973_s29   ;;  %s3436_s0 = sphi %s3495_s0, %s3967_s0   ;;  %s3432_s28 = sphi %s3493_s28, %s3972_s28   ;;  %s3428_s27 = sphi %s3491_s27, %s3971_s27   ;;  %s3424_s26 = sphi %s3489_s26, %s3970_s26  }
  0x14   : > { %p32_p5 = scmp.ge.s32.totalorder %s31_s8, 2  ;;  %s34_s9 = sadd.s32 1, %s3444_s30 }
  0x15   : > { %p50_p6 = scmp.ne.s32.totalorder %s3428_s27, %s3424_s26  ;;  %p51_p7 = scmp.eq.s32.totalorder %s3448_s7, 0 }
  0x16   : > { %s3975_s8 = smov (%p32_p5, %s31_s8), 0  ;;  %s3977_s9 = smov (!%p32_p5, %s34_s9), %s3444_s30 }
  0x17   : > { %3963 = sst [smem:[#allocation41_spill]] %s3975_s8  ;;  %p52_p8 = por %p51_p7, %p50_p6 }
  0x18   : > { %p36_p9 = scmp.ge.s32.totalorder %s3977_s9, 8  ;;  %s39_s10 = ssub.s32 %s3440_s29, %s3975_s8 }
  0x19   : > { %s43_s13 = sadd.s32 1, %s3428_s27  ;;  %p2916_p11 = scmp.ge.s32.totalorder %s3448_s7, 16 }
  0x1a   : > { %s3979_s9 = smov (%p36_p9, %s3977_s9), 0 }
  0x1b   : > { %3964 = sst [smem:[#allocation42_spill]] %s3979_s9  ;;  %s38_s11 = ssub.s32 %s3444_s30, %s3979_s9 }
  0x1c   : > { %s40_s12 = sor.u32 %s39_s10, %s38_s11  ;;  %184 = sbr.rel (%p2916_p11) target bundleno = 75 (0x4b), region = 16 }
  0x1d   : > { %p41_p10 = scmp.eq.s32.totalorder %s40_s12, 0 }
  0x1f   : > { %s3540_s14 = scalar_select %p41_p10, %s3428_s27, %s43_s13  }
  0x21   : > { %187 = sbr.rel (!%p52_p8) target bundleno = 75 (0x4b), region = 20  ;;  %s189_s15 = sand.u32 (%p52_p8), 1, %s3428_s27  }
  0x22   : > { %s2918_s16 = sshll.u32 (%p52_p8), %s3440_s29, 2  ;;  %s2917_s17 = sshll.u32 (%p52_p8), %s189_s15, 9 }
  0x23   : > { %s2919_s18 = sshll.u32 (%p52_p8), %s3444_s30, 8  ;;  %s3965_s2 = sld [smem:[#allocation43_spill]] (%p52_p8) }
  0x24   : > { %s194_s19 = sadd.s32 (%p52_p8), %s2919_s18, %s2918_s16  ;;  %s3554_s24 = scalar_lea.vmem (%p52_p8), [#allocation6], %s2917_s17 }
  0x25   : > { %s2920_s20 = sshll.u32 (%p52_p8), %s194_s19, 2 }
  0x29   : > { %s3549_s23 = scalar_lea.vmem %s3965_s2, %s2920_s20 }
  0x2a   : > { %v209_v0 = vld [vmem:[%s3549_s23] sm:$0xff]  ;;  %v211_v1 = vld [vmem:[%s3549_s23 + $0x8] sm:$0xff] }
  0x2b   : > { %v213_v2 = vld [vmem:[%s3549_s23 + $0x20] sm:$0xff]  ;;  %210 = vst [vmem:[%s3554_s24] sm:$0xff] %v209_v0  ;;  %212 = vst [vmem:[%s3554_s24 + $0x8] sm:$0xff] %v211_v1  ;;  %v215_v3 = vld [vmem:[%s3549_s23 + $0x28] sm:$0xff] }
  0x2c   : > { %214 = vst [vmem:[%s3554_s24 + $0x10] sm:$0xff] %v213_v2  ;;  %v217_v4 = vld [vmem:[%s3549_s23 + $0x40] sm:$0xff]  ;;  %v219_v5 = vld [vmem:[%s3549_s23 + $0x48] sm:$0xff]  ;;  %216 = vst [vmem:[%s3554_s24 + $0x18] sm:$0xff] %v215_v3 }
  0x2d   : > { %218 = vst [vmem:[%s3554_s24 + $0x20] sm:$0xff] %v217_v4  ;;  %220 = vst [vmem:[%s3554_s24 + $0x28] sm:$0xff] %v219_v5  ;;  %v221_v6 = vld [vmem:[%s3549_s23 + $0x60] sm:$0xff]  ;;  %v223_v7 = vld [vmem:[%s3549_s23 + $0x68] sm:$0xff] }
  0x2e   : > { %v225_v8 = vld [vmem:[%s3549_s23 + $0x80] sm:$0xff]  ;;  %222 = vst [vmem:[%s3554_s24 + $0x30] sm:$0xff] %v221_v6  ;;  %224 = vst [vmem:[%s3554_s24 + $0x38] sm:$0xff] %v223_v7  ;;  %v227_v9 = vld [vmem:[%s3549_s23 + $0x88] sm:$0xff] }
  0x2f   : > { %226 = vst [vmem:[%s3554_s24 + $0x40] sm:$0xff] %v225_v8  ;;  %v229_v10 = vld [vmem:[%s3549_s23 + $0xa0] sm:$0xff]  ;;  %v231_v11 = vld [vmem:[%s3549_s23 + $0xa8] sm:$0xff]  ;;  %228 = vst [vmem:[%s3554_s24 + $0x48] sm:$0xff] %v227_v9 }
  0x30   : > { %230 = vst [vmem:[%s3554_s24 + $0x50] sm:$0xff] %v229_v10  ;;  %232 = vst [vmem:[%s3554_s24 + $0x58] sm:$0xff] %v231_v11  ;;  %v233_v12 = vld [vmem:[%s3549_s23 + $0xc0] sm:$0xff]  ;;  %v235_v13 = vld [vmem:[%s3549_s23 + $0xc8] sm:$0xff] }
  0x31   : > { %v237_v14 = vld [vmem:[%s3549_s23 + $0xe0] sm:$0xff]  ;;  %234 = vst [vmem:[%s3554_s24 + $0x60] sm:$0xff] %v233_v12  ;;  %236 = vst [vmem:[%s3554_s24 + $0x68] sm:$0xff] %v235_v13  ;;  %v239_v15 = vld [vmem:[%s3549_s23 + $0xe8] sm:$0xff] }
  0x32   : > { %238 = vst [vmem:[%s3554_s24 + $0x70] sm:$0xff] %v237_v14  ;;  %v241_v16 = vld [vmem:[%s3549_s23 + $0x100] sm:$0xff]  ;;  %v243_v17 = vld [vmem:[%s3549_s23 + $0x108] sm:$0xff]  ;;  %240 = vst [vmem:[%s3554_s24 + $0x78] sm:$0xff] %v239_v15 }
  0x33   : > { %242 = vst [vmem:[%s3554_s24 + $0x80] sm:$0xff] %v241_v16  ;;  %244 = vst [vmem:[%s3554_s24 + $0x88] sm:$0xff] %v243_v17  ;;  %v245_v18 = vld [vmem:[%s3549_s23 + $0x120] sm:$0xff]  ;;  %v247_v19 = vld [vmem:[%s3549_s23 + $0x128] sm:$0xff] }
  0x34   : > { %v249_v20 = vld [vmem:[%s3549_s23 + $0x140] sm:$0xff]  ;;  %246 = vst [vmem:[%s3554_s24 + $0x90] sm:$0xff] %v245_v18  ;;  %248 = vst [vmem:[%s3554_s24 + $0x98] sm:$0xff] %v247_v19  ;;  %v251_v21 = vld [vmem:[%s3549_s23 + $0x148] sm:$0xff] }
  0x35   : > { %250 = vst [vmem:[%s3554_s24 + $0xa0] sm:$0xff] %v249_v20  ;;  %v253_v22 = vld [vmem:[%s3549_s23 + $0x160] sm:$0xff]  ;;  %v255_v23 = vld [vmem:[%s3549_s23 + $0x168] sm:$0xff]  ;;  %252 = vst [vmem:[%s3554_s24 + $0xa8] sm:$0xff] %v251_v21 }
  0x36   : > { %254 = vst [vmem:[%s3554_s24 + $0xb0] sm:$0xff] %v253_v22  ;;  %256 = vst [vmem:[%s3554_s24 + $0xb8] sm:$0xff] %v255_v23  ;;  %v257_v24 = vld [vmem:[%s3549_s23 + $0x180] sm:$0xff]  ;;  %v259_v25 = vld [vmem:[%s3549_s23 + $0x188] sm:$0xff] }
  0x37   : > { %v261_v26 = vld [vmem:[%s3549_s23 + $0x1a0] sm:$0xff]  ;;  %258 = vst [vmem:[%s3554_s24 + $0xc0] sm:$0xff] %v257_v24  ;;  %260 = vst [vmem:[%s3554_s24 + $0xc8] sm:$0xff] %v259_v25  ;;  %v263_v27 = vld [vmem:[%s3549_s23 + $0x1a8] sm:$0xff] }
  0x38   : > { %262 = vst [vmem:[%s3554_s24 + $0xd0] sm:$0xff] %v261_v26  ;;  %v265_v28 = vld [vmem:[%s3549_s23 + $0x1c0] sm:$0xff]  ;;  %v267_v29 = vld [vmem:[%s3549_s23 + $0x1c8] sm:$0xff]  ;;  %264 = vst [vmem:[%s3554_s24 + $0xd8] sm:$0xff] %v263_v27 }
  0x39   : > { %266 = vst [vmem:[%s3554_s24 + $0xe0] sm:$0xff] %v265_v28  ;;  %268 = vst [vmem:[%s3554_s24 + $0xe8] sm:$0xff] %v267_v29  ;;  %v269_v30 = vld [vmem:[%s3549_s23 + $0x1e0] sm:$0xff]  ;;  %v271_v31 = vld [vmem:[%s3549_s23 + $0x1e8] sm:$0xff] }
  0x3a   : > { %v273_v32 = vld [vmem:[%s3549_s23 + $0x200] sm:$0xff]  ;;  %270 = vst [vmem:[%s3554_s24 + $0xf0] sm:$0xff] %v269_v30  ;;  %272 = vst [vmem:[%s3554_s24 + $0xf8] sm:$0xff] %v271_v31  ;;  %v275_v33 = vld [vmem:[%s3549_s23 + $0x208] sm:$0xff] }
  0x3b   : > { %274 = vst [vmem:[%s3554_s24 + $0x100] sm:$0xff] %v273_v32  ;;  %v277_v34 = vld [vmem:[%s3549_s23 + $0x220] sm:$0xff]  ;;  %v279_v35 = vld [vmem:[%s3549_s23 + $0x228] sm:$0xff]  ;;  %276 = vst [vmem:[%s3554_s24 + $0x108] sm:$0xff] %v275_v33 }
  0x3c   : > { %278 = vst [vmem:[%s3554_s24 + $0x110] sm:$0xff] %v277_v34  ;;  %280 = vst [vmem:[%s3554_s24 + $0x118] sm:$0xff] %v279_v35  ;;  %v281_v36 = vld [vmem:[%s3549_s23 + $0x240] sm:$0xff]  ;;  %v283_v37 = vld [vmem:[%s3549_s23 + $0x248] sm:$0xff] }
  0x3d   : > { %v285_v38 = vld [vmem:[%s3549_s23 + $0x260] sm:$0xff]  ;;  %282 = vst [vmem:[%s3554_s24 + $0x120] sm:$0xff] %v281_v36  ;;  %284 = vst [vmem:[%s3554_s24 + $0x128] sm:$0xff] %v283_v37  ;;  %v287_v39 = vld [vmem:[%s3549_s23 + $0x268] sm:$0xff] }
  0x3e   : > { %286 = vst [vmem:[%s3554_s24 + $0x130] sm:$0xff] %v285_v38  ;;  %v289_v40 = vld [vmem:[%s3549_s23 + $0x280] sm:$0xff]  ;;  %v291_v41 = vld [vmem:[%s3549_s23 + $0x288] sm:$0xff]  ;;  %288 = vst [vmem:[%s3554_s24 + $0x138] sm:$0xff] %v287_v39 }
  0x3f   : > { %290 = vst [vmem:[%s3554_s24 + $0x140] sm:$0xff] %v289_v40  ;;  %292 = vst [vmem:[%s3554_s24 + $0x148] sm:$0xff] %v291_v41  ;;  %v293_v42 = vld [vmem:[%s3549_s23 + $0x2a0] sm:$0xff]  ;;  %v295_v43 = vld [vmem:[%s3549_s23 + $0x2a8] sm:$0xff] }
  0x40   : > { %v297_v44 = vld [vmem:[%s3549_s23 + $0x2c0] sm:$0xff]  ;;  %294 = vst [vmem:[%s3554_s24 + $0x150] sm:$0xff] %v293_v42  ;;  %296 = vst [vmem:[%s3554_s24 + $0x158] sm:$0xff] %v295_v43  ;;  %v299_v45 = vld [vmem:[%s3549_s23 + $0x2c8] sm:$0xff] }
  0x41   : > { %298 = vst [vmem:[%s3554_s24 + $0x160] sm:$0xff] %v297_v44  ;;  %v301_v46 = vld [vmem:[%s3549_s23 + $0x2e0] sm:$0xff]  ;;  %v303_v47 = vld [vmem:[%s3549_s23 + $0x2e8] sm:$0xff]  ;;  %300 = vst [vmem:[%s3554_s24 + $0x168] sm:$0xff] %v299_v45 }
  0x42   : > { %302 = vst [vmem:[%s3554_s24 + $0x170] sm:$0xff] %v301_v46  ;;  %304 = vst [vmem:[%s3554_s24 + $0x178] sm:$0xff] %v303_v47  ;;  %v305_v48 = vld [vmem:[%s3549_s23 + $0x300] sm:$0xff]  ;;  %v307_v49 = vld [vmem:[%s3549_s23 + $0x308] sm:$0xff] }
  0x43   : > { %v309_v50 = vld [vmem:[%s3549_s23 + $0x320] sm:$0xff]  ;;  %306 = vst [vmem:[%s3554_s24 + $0x180] sm:$0xff] %v305_v48  ;;  %308 = vst [vmem:[%s3554_s24 + $0x188] sm:$0xff] %v307_v49  ;;  %v311_v51 = vld [vmem:[%s3549_s23 + $0x328] sm:$0xff] }
  0x44   : > { %310 = vst [vmem:[%s3554_s24 + $0x190] sm:$0xff] %v309_v50  ;;  %v313_v52 = vld [vmem:[%s3549_s23 + $0x340] sm:$0xff]  ;;  %v315_v53 = vld [vmem:[%s3549_s23 + $0x348] sm:$0xff]  ;;  %312 = vst [vmem:[%s3554_s24 + $0x198] sm:$0xff] %v311_v51 }
  0x45   : > { %314 = vst [vmem:[%s3554_s24 + $0x1a0] sm:$0xff] %v313_v52  ;;  %316 = vst [vmem:[%s3554_s24 + $0x1a8] sm:$0xff] %v315_v53  ;;  %v317_v54 = vld [vmem:[%s3549_s23 + $0x360] sm:$0xff]  ;;  %v319_v55 = vld [vmem:[%s3549_s23 + $0x368] sm:$0xff] }
  0x46   : > { %v321_v56 = vld [vmem:[%s3549_s23 + $0x380] sm:$0xff]  ;;  %318 = vst [vmem:[%s3554_s24 + $0x1b0] sm:$0xff] %v317_v54  ;;  %320 = vst [vmem:[%s3554_s24 + $0x1b8] sm:$0xff] %v319_v55  ;;  %v323_v57 = vld [vmem:[%s3549_s23 + $0x388] sm:$0xff] }
  0x47   : > { %322 = vst [vmem:[%s3554_s24 + $0x1c0] sm:$0xff] %v321_v56  ;;  %v325_v58 = vld [vmem:[%s3549_s23 + $0x3a0] sm:$0xff]  ;;  %v327_v59 = vld [vmem:[%s3549_s23 + $0x3a8] sm:$0xff]  ;;  %324 = vst [vmem:[%s3554_s24 + $0x1c8] sm:$0xff] %v323_v57 }
  0x48   : > { %326 = vst [vmem:[%s3554_s24 + $0x1d0] sm:$0xff] %v325_v58  ;;  %328 = vst [vmem:[%s3554_s24 + $0x1d8] sm:$0xff] %v327_v59  ;;  %v329_v60 = vld [vmem:[%s3549_s23 + $0x3c0] sm:$0xff]  ;;  %v331_v61 = vld [vmem:[%s3549_s23 + $0x3c8] sm:$0xff] }
  0x49   : > { %v333_v62 = vld [vmem:[%s3549_s23 + $0x3e0] sm:$0xff]  ;;  %330 = vst [vmem:[%s3554_s24 + $0x1e0] sm:$0xff] %v329_v60  ;;  %332 = vst [vmem:[%s3554_s24 + $0x1e8] sm:$0xff] %v331_v61  ;;  %v335_v63 = vld [vmem:[%s3549_s23 + $0x3e8] sm:$0xff] }
  0x4a   : > { %334 = vst [vmem:[%s3554_s24 + $0x1f0] sm:$0xff] %v333_v62  ;;  %336 = vst [vmem:[%s3554_s24 + $0x1f8] sm:$0xff] %v335_v63 }
  0x4b PF: > { %p2921_p12 = scmp.ge.s32.totalorder %s3448_s7, 1  ;;  %p374_p13 = scmp.lt.s32.totalorder %s3448_s7, 17 }
  0x4d   : > { %p375_p0 = pnand %p2921_p12, %p374_p13 }
  0x4e   : > { %s381_s25 = sand.u32 (!%p375_p0), 1, %s3424_s26   ;;  %s2923_s10 = sshll.u32 (!%p375_p0), %s3432_s28, 2 }
  0x4f   : > { %378 = sbr.rel (%p375_p0) target bundleno = 823 (0x337), region = 55  ;;  %s2922_s11 = sshll.u32 (!%p375_p0), %s381_s25, 9 }
  0x50   : > { %p430_p1 = scmp.lt.s32.totalorder (!%p375_p0), %s3436_s0, 7  ;;  %p432_p2 = scmp.lt.s32.totalorder (!%p375_p0), %s2923_s10, 7 }
  0x51   : > { %s2925_s15 = sshll.u32 (!%p375_p0), %s3432_s28, 6  ;;  %s3709_s19 = scalar_lea.vmem (!%p375_p0), [#allocation6], %s2922_s11 }
  0x52   : > { %p441_p3 = scmp.lt.s32.totalorder (!%p375_p0), %s2925_s15, 127  ;;  %p2932_p4 = scmp.ne.s32.totalorder (!%p375_p0), %s3432_s28, 0 }
  0x54   : > { %s431_s12 = scalar_select %p430_p1, %s3436_s0, 7 }
  0x55   : > { %s3981_s10 = smov (!%p432_p2, %s2923_s10), 7  ;;  %s3983_s15 = smov (!%p441_p3, %s2925_s15), 127 }
  0x56   : > { %s2924_s13 = sshll.u32 %s431_s12, 3  ;;  %s2927_s20 = sshll.u32 %s431_s12, 8 }
  0x57   : > { %s3688_s16 = sadd.s32 %s2924_s13, %s3981_s10  ;;  %s2929_s21 = sshll.u32 %s431_s12, 1 }
  0x58   : > { %s3098_s26 = sshll.u32 %s431_s12, 5  ;;  %s2926_s22 = sshll.u32 %s3983_s15, 1 }
  0x59   : > { %s3697_s25 = scalar_lea.vmem %s3956_s5, %s2929_s21  ;;  %s445_s2 = sadd.s32 %s2927_s20, %s2926_s22 }
  0x5a   : > { %s3702_s13 = scalar_lea.vmem %s3957_s6, %s3098_s26  ;;  %s2928_s8 = sshll.u32 %s445_s2, 2 }
  0x5b   : > { %s3707_s18 = scalar_lea.vmem %s3955_s4, %s2928_s8  ;;  %461 = sbr.rel (%p2932_p4) target bundleno = 333 (0x14d), region = 63 }
  0x5c   : > { %s3715_s12 = sshll.u32 (!%p2932_p4), %s3436_s0, 7 }
  0x5d   : > { %s463_s9 = sld [smem:[#allocation5 + %s3715_s12]] (!%p2932_p4) }
  0x63   : > { %s464_s15 = sshrl.u32 %s463_s9, 3  ;;  %s465_s20 = sand.u32 7, %s463_s9  }
  0x64   : > { %s2934_s2 = sshll.u32 %s464_s15, 4 }
  0x65   : > { %s467_s21 = sadd.s32 %s2934_s2, %s465_s20 }
  0x66   : > { %s468_s8 = scalar_lea.vmem %s3952_s1, %s467_s21 }
  0x67   : > { %v487_v0 = vld [vmem:[%s468_s8] sm:$0x1]  ;;  %v489_v1 = vld [vmem:[%s468_s8 + $0x8] sm:$0x1] }
  0x68   : > { %488 = vst [vmem:[#allocation2] sm:$0x1] %v487_v0  ;;  %490 = vst [vmem:[#allocation2 + $0x8] sm:$0x1] %v489_v1 }
  0x69   : > { %518 = vsyncadd [#allocation3], 32  ;;  %s519_s11 = sadd.s32 1, %s3715_s12 }
  0x6a   : > { %s520_s22 = sld [smem:[#allocation5 + %s519_s11]] }
  0x70   : > { %s521_s0 = sshrl.u32 %s520_s22, 3  ;;  %s522_s23 = sand.u32 7, %s520_s22  }
  0x71   : > { %s2935_s24 = sshll.u32 %s521_s0, 4 }
  0x72   : > { %s524_s10 = sadd.s32 %s2935_s24, %s522_s23 }
  0x73   : > { %s525_s15 = scalar_lea.vmem %s3952_s1, %s524_s10 }
  0x74   : > { %v546_v2 = vld [vmem:[%s525_s15] sm:$0x1]  ;;  %v548_v3 = vld [vmem:[%s525_s15 + $0x8] sm:$0x1] }
  0x75   : > { %547 = vst [vmem:[#allocation2 + $0x1] sm:$0x1] %v546_v2  ;;  %549 = vst [vmem:[#allocation2 + $0x9] sm:$0x1] %v548_v3 }
  0x76   : > { %577 = vsyncadd [#allocation3 + $0x1], 32  ;;  %s578_s20 = sadd.s32 2, %s3715_s12 }
  0x77   : > { %s579_s2 = sld [smem:[#allocation5 + %s578_s20]] }
  0x7d   : > { %s580_s21 = sshrl.u32 %s579_s2, 3  ;;  %s581_s26 = sand.u32 7, %s579_s2  }
  0x7e   : > { %s2936_s30 = sshll.u32 %s580_s21, 4 }
  0x7f   : > { %s583_s8 = sadd.s32 %s2936_s30, %s581_s26 }
  0x80   : > { %s584_s0 = scalar_lea.vmem %s3952_s1, %s583_s8 }
  0x81   : > { %v605_v4 = vld [vmem:[%s584_s0] sm:$0x1]  ;;  %v607_v5 = vld [vmem:[%s584_s0 + $0x8] sm:$0x1] }
  0x82   : > { %606 = vst [vmem:[#allocation2 + $0x2] sm:$0x1] %v605_v4  ;;  %608 = vst [vmem:[#allocation2 + $0xa] sm:$0x1] %v607_v5 }
  0x83   : > { %636 = vsyncadd [#allocation3 + $0x2], 32  ;;  %s637_s23 = sadd.s32 3, %s3715_s12 }
  0x84   : > { %s638_s24 = sld [smem:[#allocation5 + %s637_s23]] }
  0x8a   : > { %s639_s10 = sshrl.u32 %s638_s24, 3  ;;  %s640_s17 = sand.u32 7, %s638_s24  }
  0x8b   : > { %s2937_s9 = sshll.u32 %s639_s10, 4 }
  0x8c   : > { %s642_s15 = sadd.s32 %s2937_s9, %s640_s17 }
  0x8d   : > { %s643_s21 = scalar_lea.vmem %s3952_s1, %s642_s15 }
  0x8e   : > { %v664_v6 = vld [vmem:[%s643_s21] sm:$0x1]  ;;  %v666_v7 = vld [vmem:[%s643_s21 + $0x8] sm:$0x1] }
  0x8f   : > { %665 = vst [vmem:[#allocation2 + $0x3] sm:$0x1] %v664_v6  ;;  %667 = vst [vmem:[#allocation2 + $0xb] sm:$0x1] %v666_v7 }
  0x90   : > { %695 = vsyncadd [#allocation3 + $0x3], 32  ;;  %s696_s26 = sadd.s32 4, %s3715_s12 }
  0x91   : > { %s697_s30 = sld [smem:[#allocation5 + %s696_s26]] }
  0x97   : > { %s698_s8 = sshrl.u32 %s697_s30, 3  ;;  %s699_s11 = sand.u32 7, %s697_s30  }
  0x98   : > { %s2938_s22 = sshll.u32 %s698_s8, 4 }
  0x99   : > { %s701_s0 = sadd.s32 %s2938_s22, %s699_s11 }
  0x9a   : > { %s702_s10 = scalar_lea.vmem %s3952_s1, %s701_s0 }
  0x9b   : > { %v723_v8 = vld [vmem:[%s702_s10] sm:$0x1]  ;;  %v725_v9 = vld [vmem:[%s702_s10 + $0x8] sm:$0x1] }
  0x9c   : > { %724 = vst [vmem:[#allocation2 + $0x4] sm:$0x1] %v723_v8  ;;  %726 = vst [vmem:[#allocation2 + $0xc] sm:$0x1] %v725_v9 }
  0x9d   : > { %754 = vsyncadd [#allocation3 + $0x4], 32  ;;  %s755_s17 = sadd.s32 5, %s3715_s12 }
  0x9e   : > { %s756_s9 = sld [smem:[#allocation5 + %s755_s17]] }
  0xa4   : > { %s757_s15 = sshrl.u32 %s756_s9, 3  ;;  %s758_s20 = sand.u32 7, %s756_s9  }
  0xa5   : > { %s2939_s2 = sshll.u32 %s757_s15, 4 }
  0xa6   : > { %s760_s21 = sadd.s32 %s2939_s2, %s758_s20 }
  0xa7   : > { %s761_s8 = scalar_lea.vmem %s3952_s1, %s760_s21 }
  0xa8   : > { %v782_v10 = vld [vmem:[%s761_s8] sm:$0x1]  ;;  %v784_v11 = vld [vmem:[%s761_s8 + $0x8] sm:$0x1] }
  0xa9   : > { %783 = vst [vmem:[#allocation2 + $0x5] sm:$0x1] %v782_v10  ;;  %785 = vst [vmem:[#allocation2 + $0xd] sm:$0x1] %v784_v11 }
  0xaa   : > { %813 = vsyncadd [#allocation3 + $0x5], 32  ;;  %s814_s11 = sadd.s32 6, %s3715_s12 }
  0xab   : > { %s815_s22 = sld [smem:[#allocation5 + %s814_s11]] }
  0xb1   : > { %s816_s0 = sshrl.u32 %s815_s22, 3  ;;  %s817_s23 = sand.u32 7, %s815_s22  }
  0xb2   : > { %s2940_s24 = sshll.u32 %s816_s0, 4 }
  0xb3   : > { %s819_s10 = sadd.s32 %s2940_s24, %s817_s23 }
  0xb4   : > { %s820_s15 = scalar_lea.vmem %s3952_s1, %s819_s10 }
  0xb5   : > { %v841_v12 = vld [vmem:[%s820_s15] sm:$0x1]  ;;  %v843_v13 = vld [vmem:[%s820_s15 + $0x8] sm:$0x1] }
  0xb6   : > { %842 = vst [vmem:[#allocation2 + $0x6] sm:$0x1] %v841_v12  ;;  %844 = vst [vmem:[#allocation2 + $0xe] sm:$0x1] %v843_v13 }
  0xb7   : > { %872 = vsyncadd [#allocation3 + $0x6], 32  ;;  %s873_s20 = sadd.s32 7, %s3715_s12 }
  0xb8   : > { %s874_s2 = sld [smem:[#allocation5 + %s873_s20]] }
  0xbe   : > { %s875_s21 = sshrl.u32 %s874_s2, 3  ;;  %s876_s26 = sand.u32 7, %s874_s2  }
  0xbf   : > { %s2941_s30 = sshll.u32 %s875_s21, 4 }
  0xc0   : > { %s878_s8 = sadd.s32 %s2941_s30, %s876_s26 }
  0xc1   : > { %s879_s0 = scalar_lea.vmem %s3952_s1, %s878_s8 }
  0xc2   : > { %v900_v14 = vld [vmem:[%s879_s0] sm:$0x1]  ;;  %v902_v15 = vld [vmem:[%s879_s0 + $0x8] sm:$0x1] }
  0xc3   : > { %901 = vst [vmem:[#allocation2 + $0x7] sm:$0x1] %v900_v14  ;;  %903 = vst [vmem:[#allocation2 + $0xf] sm:$0x1] %v902_v15 }
  0xc4   : > { %931 = vsyncadd [#allocation3 + $0x7], 32  ;;  %s932_s23 = sadd.s32 8, %s3715_s12 }
  0xc5   : > { %s933_s24 = sld [smem:[#allocation5 + %s932_s23]] }
  0xcb   : > { %s934_s10 = sshrl.u32 %s933_s24, 3  ;;  %s935_s17 = sand.u32 7, %s933_s24  }
  0xcc   : > { %s2942_s9 = sshll.u32 %s934_s10, 4 }
  0xcd   : > { %s937_s15 = sadd.s32 %s2942_s9, %s935_s17 }
  0xce   : > { %s938_s21 = scalar_lea.vmem %s3952_s1, %s937_s15 }
  0xcf   : > { %v959_v16 = vld [vmem:[%s938_s21] sm:$0x1]  ;;  %v961_v17 = vld [vmem:[%s938_s21 + $0x8] sm:$0x1] }
  0xd0   : > { %960 = vst [vmem:[#allocation2 + $0x10] sm:$0x1] %v959_v16  ;;  %962 = vst [vmem:[#allocation2 + $0x18] sm:$0x1] %v961_v17 }
  0xd1   : > { %990 = vsyncadd [#allocation3 + $0x8], 32  ;;  %s991_s26 = sadd.s32 9, %s3715_s12 }
  0xd2   : > { %s992_s30 = sld [smem:[#allocation5 + %s991_s26]] }
  0xd8   : > { %s993_s8 = sshrl.u32 %s992_s30, 3  ;;  %s994_s11 = sand.u32 7, %s992_s30  }
  0xd9   : > { %s2943_s22 = sshll.u32 %s993_s8, 4 }
  0xda   : > { %s996_s0 = sadd.s32 %s2943_s22, %s994_s11 }
  0xdb   : > { %s997_s10 = scalar_lea.vmem %s3952_s1, %s996_s0 }
  0xdc   : > { %v1018_v18 = vld [vmem:[%s997_s10] sm:$0x1]  ;;  %v1020_v19 = vld [vmem:[%s997_s10 + $0x8] sm:$0x1] }
  0xdd   : > { %1019 = vst [vmem:[#allocation2 + $0x11] sm:$0x1] %v1018_v18  ;;  %1021 = vst [vmem:[#allocation2 + $0x19] sm:$0x1] %v1020_v19 }
  0xde   : > { %1049 = vsyncadd [#allocation3 + $0x9], 32  ;;  %s1050_s17 = sadd.s32 10, %s3715_s12 }
  0xdf   : > { %s1051_s9 = sld [smem:[#allocation5 + %s1050_s17]] }
  0xe5   : > { %s1052_s15 = sshrl.u32 %s1051_s9, 3  ;;  %s1053_s20 = sand.u32 7, %s1051_s9  }
  0xe6   : > { %s2944_s2 = sshll.u32 %s1052_s15, 4 }
  0xe7   : > { %s1055_s21 = sadd.s32 %s2944_s2, %s1053_s20 }
  0xe8   : > { %s1056_s8 = scalar_lea.vmem %s3952_s1, %s1055_s21 }
  0xe9   : > { %v1077_v20 = vld [vmem:[%s1056_s8] sm:$0x1]  ;;  %v1079_v21 = vld [vmem:[%s1056_s8 + $0x8] sm:$0x1] }
  0xea   : > { %1078 = vst [vmem:[#allocation2 + $0x12] sm:$0x1] %v1077_v20  ;;  %1080 = vst [vmem:[#allocation2 + $0x1a] sm:$0x1] %v1079_v21 }
  0xeb   : > { %1108 = vsyncadd [#allocation3 + $0xa], 32  ;;  %s1109_s11 = sadd.s32 11, %s3715_s12 }
  0xec   : > { %s1110_s22 = sld [smem:[#allocation5 + %s1109_s11]] }
  0xf2   : > { %s1111_s0 = sshrl.u32 %s1110_s22, 3  ;;  %s1112_s23 = sand.u32 7, %s1110_s22  }
  0xf3   : > { %s2945_s24 = sshll.u32 %s1111_s0, 4 }
  0xf4   : > { %s1114_s10 = sadd.s32 %s2945_s24, %s1112_s23 }
  0xf5   : > { %s1115_s15 = scalar_lea.vmem %s3952_s1, %s1114_s10 }
  0xf6   : > { %v1136_v22 = vld [vmem:[%s1115_s15] sm:$0x1]  ;;  %v1138_v23 = vld [vmem:[%s1115_s15 + $0x8] sm:$0x1] }
  0xf7   : > { %1137 = vst [vmem:[#allocation2 + $0x13] sm:$0x1] %v1136_v22  ;;  %1139 = vst [vmem:[#allocation2 + $0x1b] sm:$0x1] %v1138_v23 }
  0xf8   : > { %1167 = vsyncadd [#allocation3 + $0xb], 32  ;;  %s1168_s20 = sadd.s32 12, %s3715_s12 }
  0xf9   : > { %s1169_s2 = sld [smem:[#allocation5 + %s1168_s20]] }
  0xff   : > { %s1170_s21 = sshrl.u32 %s1169_s2, 3  ;;  %s1171_s26 = sand.u32 7, %s1169_s2  }
 0x100   : > { %s2946_s30 = sshll.u32 %s1170_s21, 4 }
 0x101   : > { %s1173_s8 = sadd.s32 %s2946_s30, %s1171_s26 }
 0x102   : > { %s1174_s0 = scalar_lea.vmem %s3952_s1, %s1173_s8 }
 0x103   : > { %v1195_v24 = vld [vmem:[%s1174_s0] sm:$0x1]  ;;  %v1197_v25 = vld [vmem:[%s1174_s0 + $0x8] sm:$0x1] }
 0x104   : > { %1196 = vst [vmem:[#allocation2 + $0x14] sm:$0x1] %v1195_v24  ;;  %1198 = vst [vmem:[#allocation2 + $0x1c] sm:$0x1] %v1197_v25 }
 0x105   : > { %1226 = vsyncadd [#allocation3 + $0xc], 32  ;;  %s1227_s23 = sadd.s32 13, %s3715_s12 }
 0x106   : > { %s1228_s24 = sld [smem:[#allocation5 + %s1227_s23]] }
 0x10c   : > { %s1229_s10 = sshrl.u32 %s1228_s24, 3  ;;  %s1230_s17 = sand.u32 7, %s1228_s24  }
 0x10d   : > { %s2947_s9 = sshll.u32 %s1229_s10, 4 }
 0x10e   : > { %s1232_s15 = sadd.s32 %s2947_s9, %s1230_s17 }
 0x10f   : > { %s1233_s21 = scalar_lea.vmem %s3952_s1, %s1232_s15 }
 0x110   : > { %v1254_v26 = vld [vmem:[%s1233_s21] sm:$0x1]  ;;  %v1256_v27 = vld [vmem:[%s1233_s21 + $0x8] sm:$0x1] }
 0x111   : > { %1255 = vst [vmem:[#allocation2 + $0x15] sm:$0x1] %v1254_v26  ;;  %1257 = vst [vmem:[#allocation2 + $0x1d] sm:$0x1] %v1256_v27 }
 0x112   : > { %1285 = vsyncadd [#allocation3 + $0xd], 32  ;;  %s1286_s26 = sadd.s32 14, %s3715_s12 }
 0x113   : > { %s1287_s30 = sld [smem:[#allocation5 + %s1286_s26]] }
 0x119   : > { %s1288_s8 = sshrl.u32 %s1287_s30, 3  ;;  %s1289_s11 = sand.u32 7, %s1287_s30  }
 0x11a   : > { %s2948_s22 = sshll.u32 %s1288_s8, 4 }
 0x11b   : > { %s1291_s0 = sadd.s32 %s2948_s22, %s1289_s11 }
 0x11c   : > { %s1292_s10 = scalar_lea.vmem %s3952_s1, %s1291_s0 }
 0x11d   : > { %v1313_v28 = vld [vmem:[%s1292_s10] sm:$0x1]  ;;  %v1315_v29 = vld [vmem:[%s1292_s10 + $0x8] sm:$0x1] }
 0x11e   : > { %1314 = vst [vmem:[#allocation2 + $0x16] sm:$0x1] %v1313_v28  ;;  %1316 = vst [vmem:[#allocation2 + $0x1e] sm:$0x1] %v1315_v29 }
 0x11f   : > { %1344 = vsyncadd [#allocation3 + $0xe], 32  ;;  %s1345_s17 = sadd.s32 15, %s3715_s12 }
 0x120   : > { %s1346_s9 = sld [smem:[#allocation5 + %s1345_s17]] }
 0x126   : > { %s1347_s15 = sshrl.u32 %s1346_s9, 3  ;;  %s1348_s20 = sand.u32 7, %s1346_s9  }
 0x127   : > { %s2949_s2 = sshll.u32 %s1347_s15, 4 }
 0x128   : > { %s1350_s21 = sadd.s32 %s2949_s2, %s1348_s20 }
 0x129   : > { %s1351_s8 = scalar_lea.vmem %s3952_s1, %s1350_s21 }
 0x12a   : > { %v1372_v30 = vld [vmem:[%s1351_s8] sm:$0x1]  ;;  %v1374_v31 = vld [vmem:[%s1351_s8 + $0x8] sm:$0x1] }
 0x12b   : > { %1373 = vst [vmem:[#allocation2 + $0x17] sm:$0x1] %v1372_v30  ;;  %1375 = vst [vmem:[#allocation2 + $0x1f] sm:$0x1] %v1374_v31 }
 0x12c   : > { %1403 = vsyncadd [#allocation3 + $0xf], 32 }
 0x12d   : > { %3390 = dma.done.wait [#allocation3], 32 }
 0x12e   : > { %3391 = vsyncadd [#allocation3], 4294967264 }
 0x12f   : > { %3392 = dma.done.wait [#allocation3 + $0x1], 32 }
 0x130   : > { %3393 = vsyncadd [#allocation3 + $0x1], 4294967264 }
 0x131   : > { %3394 = dma.done.wait [#allocation3 + $0x2], 32 }
 0x132   : > { %3395 = vsyncadd [#allocation3 + $0x2], 4294967264 }
 0x133   : > { %3396 = dma.done.wait [#allocation3 + $0x3], 32 }
 0x134   : > { %3397 = vsyncadd [#allocation3 + $0x3], 4294967264 }
 0x135   : > { %3398 = dma.done.wait [#allocation3 + $0x4], 32 }
 0x136   : > { %3399 = vsyncadd [#allocation3 + $0x4], 4294967264 }
 0x137   : > { %3400 = dma.done.wait [#allocation3 + $0x5], 32 }
 0x138   : > { %3401 = vsyncadd [#allocation3 + $0x5], 4294967264 }
 0x139   : > { %3402 = dma.done.wait [#allocation3 + $0x6], 32 }
 0x13a   : > { %3403 = vsyncadd [#allocation3 + $0x6], 4294967264 }
 0x13b   : > { %3404 = dma.done.wait [#allocation3 + $0x7], 32 }
 0x13c   : > { %3405 = vsyncadd [#allocation3 + $0x7], 4294967264 }
 0x13d   : > { %3406 = dma.done.wait [#allocation3 + $0x8], 32 }
 0x13e   : > { %3407 = vsyncadd [#allocation3 + $0x8], 4294967264 }
 0x13f   : > { %3408 = dma.done.wait [#allocation3 + $0x9], 32 }
 0x140   : > { %3409 = vsyncadd [#allocation3 + $0x9], 4294967264 }
 0x141   : > { %3410 = dma.done.wait [#allocation3 + $0xa], 32 }
 0x142   : > { %3411 = vsyncadd [#allocation3 + $0xa], 4294967264 }
 0x143   : > { %3412 = dma.done.wait [#allocation3 + $0xb], 32 }
 0x144   : > { %3413 = vsyncadd [#allocation3 + $0xb], 4294967264 }
 0x145   : > { %3414 = dma.done.wait [#allocation3 + $0xc], 32 }
 0x146   : > { %3415 = vsyncadd [#allocation3 + $0xc], 4294967264 }
 0x147   : > { %3416 = dma.done.wait [#allocation3 + $0xd], 32 }
 0x148   : > { %3417 = vsyncadd [#allocation3 + $0xd], 4294967264 }
 0x149   : > { %3418 = dma.done.wait [#allocation3 + $0xe], 32 }
 0x14a   : > { %3419 = vsyncadd [#allocation3 + $0xe], 4294967264 }
 0x14b   : > { %3420 = dma.done.wait [#allocation3 + $0xf], 32 }
 0x14c   : > { %3421 = vsyncadd [#allocation3 + $0xf], 4294967264 }
 0x14d PF: > { %v3156_v32 = vld [vmem:[%s3709_s19 + $0xe4] ss:$16 sps:$4 sm:$0xff]   ;;  %v3158_v33 = vld [vmem:[%s3709_s19 + $0xec] ss:$16 sps:$4 sm:$0xff]   ;;  %v3160_v34 = vld [vmem:[%s3709_s19 + $0xe0] ss:$16 sps:$4 sm:$0xff]   ;;  %s3966_s11 = scalar_lea.vmem %s3954_s3, %s3688_s16 }
 0x14e   : > { %1849 = vmatprep.subr.bf16.mxu0 %v3156_v32  ;;  %v3161_v35 = vld [vmem:[%s3709_s19 + $0xe8] ss:$16 sps:$4 sm:$0xff]   ;;  %1892 = vmatprep.subr.bf16.mxu1 %v3158_v33  ;;  %v3162_v36 = vld [vmem:[%s3709_s19 + $0xc4] ss:$16 sps:$4 sm:$0xff]   ;;  %v3164_v37 = vld [vmem:[%s3709_s19 + $0xcc] ss:$16 sps:$4 sm:$0xff]  }
 0x14f   : > { %1850 = vmatpush1.bf16.msra.mxu0 %v3160_v34  ;;  %1893 = vmatpush1.bf16.msra.mxu1 %v3161_v35  ;;  %v3166_v38 = vld [vmem:[%s3709_s19 + $0xc0] ss:$16 sps:$4 sm:$0xff]   ;;  %v3167_v39 = vld [vmem:[%s3709_s19 + $0xc8] ss:$16 sps:$4 sm:$0xff]   ;;  %v3168_v40 = vld [vmem:[%s3709_s19 + $0xa4] ss:$16 sps:$4 sm:$0xff]  }
 0x150   : > { %1851 = vmatprep.subr.bf16.mxu0 %v3162_v36  ;;  %1894 = vmatprep.subr.bf16.mxu1 %v3164_v37  ;;  %v3170_v41 = vld [vmem:[%s3709_s19 + $0xac] ss:$16 sps:$4 sm:$0xff]   ;;  %v3172_v42 = vld [vmem:[%s3709_s19 + $0xa0] ss:$16 sps:$4 sm:$0xff]   ;;  %v3173_v43 = vld [vmem:[%s3709_s19 + $0xa8] ss:$16 sps:$4 sm:$0xff]  }
 0x151   : > { %v3174_v44 = vld [vmem:[%s3709_s19 + $0x84] ss:$16 sps:$4 sm:$0xff]   ;;  %v3176_v45 = vld [vmem:[%s3709_s19 + $0x8c] ss:$16 sps:$4 sm:$0xff]   ;;  %v3178_v46 = vld [vmem:[%s3709_s19 + $0x80] ss:$16 sps:$4 sm:$0xff]  }
 0x152   : > { %v3179_v47 = vld [vmem:[%s3709_s19 + $0x88] ss:$16 sps:$4 sm:$0xff]   ;;  %v3180_v48 = vld [vmem:[%s3709_s19 + $0x64] ss:$16 sps:$4 sm:$0xff]   ;;  %v3182_v49 = vld [vmem:[%s3709_s19 + $0x6c] ss:$16 sps:$4 sm:$0xff]  }
 0x153   : > { %1852 = vmatpush1.bf16.msra.mxu0 %v3166_v38  ;;  %1895 = vmatpush1.bf16.msra.mxu1 %v3167_v39  ;;  %v3184_v50 = vld [vmem:[%s3709_s19 + $0x60] ss:$16 sps:$4 sm:$0xff]   ;;  %v3185_v51 = vld [vmem:[%s3709_s19 + $0x68] ss:$16 sps:$4 sm:$0xff]   ;;  %v3186_v52 = vld [vmem:[%s3709_s19 + $0x44] ss:$16 sps:$4 sm:$0xff]  }
 0x154   : > { %1853 = vmatprep.subr.bf16.mxu0 %v3168_v40  ;;  %1896 = vmatprep.subr.bf16.mxu1 %v3170_v41  ;;  %v3188_v53 = vld [vmem:[%s3709_s19 + $0x4c] ss:$16 sps:$4 sm:$0xff]   ;;  %v3190_v54 = vld [vmem:[%s3709_s19 + $0x40] ss:$16 sps:$4 sm:$0xff]   ;;  %v3191_v55 = vld [vmem:[%s3709_s19 + $0x48] ss:$16 sps:$4 sm:$0xff]  }
 0x155   : > { %v3192_v56 = vld [vmem:[%s3709_s19 + $0x24] ss:$16 sps:$4 sm:$0xff]   ;;  %v3194_v57 = vld [vmem:[%s3709_s19 + $0x2c] ss:$16 sps:$4 sm:$0xff]   ;;  %v3196_v58 = vld [vmem:[%s3709_s19 + $0x20] ss:$16 sps:$4 sm:$0xff]  }
 0x156   : > { %v3197_v59 = vld [vmem:[%s3709_s19 + $0x28] ss:$16 sps:$4 sm:$0xff]   ;;  %v3198_v60 = vld [vmem:[%s3709_s19 + $0x4] ss:$16 sps:$4 sm:$0xff]   ;;  %v3200_v61 = vld [vmem:[%s3709_s19 + $0xc] ss:$16 sps:$4 sm:$0xff]  }
 0x157   : > { %1854 = vmatpush1.bf16.msra.mxu0 %v3172_v42  ;;  %1897 = vmatpush1.bf16.msra.mxu1 %v3173_v43  ;;  %v3202_v62 = vld [vmem:[%s3709_s19] ss:$16 sps:$4 sm:$0xff]   ;;  %v3203_v63 = vld [vmem:[%s3709_s19 + $0x8] ss:$16 sps:$4 sm:$0xff]   ;;  %v3204_v0 = vld [vmem:[%s3709_s19 + $0x1e4] ss:$16 sps:$4 sm:$0xff]  }
 0x158   : > { %1855 = vmatprep.subr.bf16.mxu0 %v3174_v44  ;;  %1898 = vmatprep.subr.bf16.mxu1 %v3176_v45  ;;  %v3206_v1 = vld [vmem:[%s3709_s19 + $0x1ec] ss:$16 sps:$4 sm:$0xff]   ;;  %v3208_v2 = vld [vmem:[%s3709_s19 + $0x1e0] ss:$16 sps:$4 sm:$0xff]   ;;  %v3209_v3 = vld [vmem:[%s3709_s19 + $0x1e8] ss:$16 sps:$4 sm:$0xff]  }
 0x159   : > { %v3210_v4 = vld [vmem:[%s3709_s19 + $0x1c4] ss:$16 sps:$4 sm:$0xff]   ;;  %v3212_v5 = vld [vmem:[%s3709_s19 + $0x1cc] ss:$16 sps:$4 sm:$0xff]   ;;  %v3214_v6 = vld [vmem:[%s3709_s19 + $0x1c0] ss:$16 sps:$4 sm:$0xff]  }
 0x15a   : > { %v3215_v7 = vld [vmem:[%s3709_s19 + $0x1c8] ss:$16 sps:$4 sm:$0xff]   ;;  %v3216_v8 = vld [vmem:[%s3709_s19 + $0x1a4] ss:$16 sps:$4 sm:$0xff]   ;;  %v3218_v9 = vld [vmem:[%s3709_s19 + $0x1ac] ss:$16 sps:$4 sm:$0xff]  }
 0x15b   : > { %1856 = vmatpush1.bf16.msra.mxu0 %v3178_v46  ;;  %1899 = vmatpush1.bf16.msra.mxu1 %v3179_v47  ;;  %v3220_v10 = vld [vmem:[%s3709_s19 + $0x1a0] ss:$16 sps:$4 sm:$0xff]   ;;  %v3221_v11 = vld [vmem:[%s3709_s19 + $0x1a8] ss:$16 sps:$4 sm:$0xff]   ;;  %v3222_v12 = vld [vmem:[%s3709_s19 + $0x184] ss:$16 sps:$4 sm:$0xff]  }
 0x15c   : > { %1857 = vmatprep.subr.bf16.mxu0 %v3180_v48  ;;  %1900 = vmatprep.subr.bf16.mxu1 %v3182_v49  ;;  %v3224_v13 = vld [vmem:[%s3709_s19 + $0x18c] ss:$16 sps:$4 sm:$0xff]   ;;  %v3226_v15 = vld [vmem:[%s3709_s19 + $0x180] ss:$16 sps:$4 sm:$0xff]   ;;  %v3227_v16 = vld [vmem:[%s3709_s19 + $0x188] ss:$16 sps:$4 sm:$0xff]  }
 0x15d   : > { %v1438_v14 = vld [vmem:[#allocation2 + $0x8] sm:$0xff]  ;;  %v1440_v17 = vld [vmem:[#allocation2 + $0x18] sm:$0xff]  ;;  %v3228_v18 = vld [vmem:[%s3709_s19 + $0x164] ss:$16 sps:$4 sm:$0xff]  }
 0x15e   : > { %v1442_v19 = vpack.c.bf16 %v1440_v17, %v1438_v14  ;;  %v3230_v20 = vld [vmem:[%s3709_s19 + $0x16c] ss:$16 sps:$4 sm:$0xff]   ;;  %v3232_v21 = vld [vmem:[%s3709_s19 + $0x160] ss:$16 sps:$4 sm:$0xff]   ;;  %v3233_v22 = vld [vmem:[%s3709_s19 + $0x168] ss:$16 sps:$4 sm:$0xff]  }
 0x15f   : > { %1858 = vmatpush1.bf16.msra.mxu0 %v3184_v50  ;;  %1901 = vmatpush1.bf16.msra.mxu1 %v3185_v51  ;;  %v3234_v23 = vld [vmem:[%s3709_s19 + $0x144] ss:$16 sps:$4 sm:$0xff]   ;;  %v3236_v24 = vld [vmem:[%s3709_s19 + $0x14c] ss:$16 sps:$4 sm:$0xff]   ;;  %v3238_v25 = vld [vmem:[%s3709_s19 + $0x140] ss:$16 sps:$4 sm:$0xff]  }
 0x160   : > { %1859 = vmatprep.subr.bf16.mxu0 %v3186_v52  ;;  %1902 = vmatprep.subr.bf16.mxu1 %v3188_v53  ;;  %v3239_v26 = vld [vmem:[%s3709_s19 + $0x148] ss:$16 sps:$4 sm:$0xff]   ;;  %v3240_v27 = vld [vmem:[%s3709_s19 + $0x124] ss:$16 sps:$4 sm:$0xff]   ;;  %v3242_v28 = vld [vmem:[%s3709_s19 + $0x12c] ss:$16 sps:$4 sm:$0xff]  }
 0x161   : > { %1881 = vmatprep.mubr.bf16.mxu0 %v1442_v19  ;;  %1924 = vmatprep.mubr.bf16.mxu1 %v1442_v19  ;;  %v3244_v29 = vld [vmem:[%s3709_s19 + $0x120] ss:$16 sps:$4 sm:$0xff]   ;;  %v3245_v30 = vld [vmem:[%s3709_s19 + $0x128] ss:$16 sps:$4 sm:$0xff]   ;;  %v3246_v31 = vld [vmem:[%s3709_s19 + $0x104] ss:$16 sps:$4 sm:$0xff]  }
 0x162   : > { %v3248_v32 = vld [vmem:[%s3709_s19 + $0x10c] ss:$16 sps:$4 sm:$0xff]   ;;  %v3250_v33 = vld [vmem:[%s3709_s19 + $0x100] ss:$16 sps:$4 sm:$0xff]   ;;  %v3251_v34 = vld [vmem:[%s3709_s19 + $0x108] ss:$16 sps:$4 sm:$0xff]  }
 0x163   : > { %1860 = vmatpush1.bf16.msra.mxu0 %v3190_v54  ;;  %1903 = vmatpush1.bf16.msra.mxu1 %v3191_v55  ;;  %v1437_v35 = vld [vmem:[#allocation2] sm:$0xff]  ;;  %v1439_v36 = vld [vmem:[#allocation2 + $0x10] sm:$0xff] }
 0x164   : > { %1861 = vmatprep.subr.bf16.mxu0 %v3192_v56  ;;  %1904 = vmatprep.subr.bf16.mxu1 %v3194_v57  ;;  %v3254_v37 = vld [vmem:[%s3707_s18 + $0x74] ss:$8 sps:$4 sm:$0xff]   ;;  %v1441_v39 = vpack.c.bf16 %v1439_v36, %v1437_v35  ;;  %v3252_v40 = vld [vmem:[%s3707_s18 + $0x70] ss:$8 sps:$4 sm:$0xff]   ;;  %v3260_v42 = vld [vmem:[%s3707_s18 + $0x64] ss:$8 sps:$4 sm:$0xff]  }
 0x165   : > { %v3257_v38 = vld [vmem:[%s3707_s18 + $0x174] ss:$8 sps:$4 sm:$0xff]   ;;  %v3255_v41 = vld [vmem:[%s3707_s18 + $0x170] ss:$8 sps:$4 sm:$0xff]   ;;  %v3263_v43 = vld [vmem:[%s3707_s18 + $0x164] ss:$8 sps:$4 sm:$0xff]  }
 0x166   : > { %v3258_v44 = vld [vmem:[%s3707_s18 + $0x60] ss:$8 sps:$4 sm:$0xff]   ;;  %v3266_v46 = vld [vmem:[%s3707_s18 + $0x54] ss:$8 sps:$4 sm:$0xff]   ;;  %v3264_v48 = vld [vmem:[%s3707_s18 + $0x50] ss:$8 sps:$4 sm:$0xff]  }
 0x167   : > { %1862 = vmatpush1.bf16.msra.mxu0 %v3196_v58  ;;  %1905 = vmatpush1.bf16.msra.mxu1 %v3197_v59  ;;  %v3261_v45 = vld [vmem:[%s3707_s18 + $0x160] ss:$8 sps:$4 sm:$0xff]   ;;  %v3269_v47 = vld [vmem:[%s3707_s18 + $0x154] ss:$8 sps:$4 sm:$0xff]   ;;  %v3267_v49 = vld [vmem:[%s3707_s18 + $0x150] ss:$8 sps:$4 sm:$0xff]  }
 0x168   : > { %1863 = vmatprep.subr.bf16.mxu0 %v3198_v60  ;;  %1906 = vmatprep.subr.bf16.mxu1 %v3200_v61  ;;  %v3272_v50 = vld [vmem:[%s3707_s18 + $0x44] ss:$8 sps:$4 sm:$0xff]   ;;  %v3270_v52 = vld [vmem:[%s3707_s18 + $0x40] ss:$8 sps:$4 sm:$0xff]   ;;  %v3278_v54 = vld [vmem:[%s3707_s18 + $0x34] ss:$8 sps:$4 sm:$0xff]  }
 0x169   : > { %v3275_v51 = vld [vmem:[%s3707_s18 + $0x144] ss:$8 sps:$4 sm:$0xff]   ;;  %v3273_v53 = vld [vmem:[%s3707_s18 + $0x140] ss:$8 sps:$4 sm:$0xff]   ;;  %v3281_v55 = vld [vmem:[%s3707_s18 + $0x134] ss:$8 sps:$4 sm:$0xff]  }
 0x16a   : > { %v3276_v56 = vld [vmem:[%s3707_s18 + $0x30] ss:$8 sps:$4 sm:$0xff]   ;;  %v3284_v58 = vld [vmem:[%s3707_s18 + $0x24] ss:$8 sps:$4 sm:$0xff]   ;;  %v3282_v60 = vld [vmem:[%s3707_s18 + $0x20] ss:$8 sps:$4 sm:$0xff]  }
 0x16b   : > { %1864 = vmatpush1.bf16.msra.mxu0 %v3202_v62  ;;  %1907 = vmatpush1.bf16.msra.mxu1 %v3203_v63  ;;  %v3279_v57 = vld [vmem:[%s3707_s18 + $0x130] ss:$8 sps:$4 sm:$0xff]   ;;  %v3287_v59 = vld [vmem:[%s3707_s18 + $0x124] ss:$8 sps:$4 sm:$0xff]   ;;  %v3285_v61 = vld [vmem:[%s3707_s18 + $0x120] ss:$8 sps:$4 sm:$0xff]  }
 0x16c   : > { %1865 = vmatprep.subr.bf16.mxu0 %v3204_v0  ;;  %1908 = vmatprep.subr.bf16.mxu1 %v3206_v1  ;;  %v3290_v62 = vld [vmem:[%s3707_s18 + $0x14] ss:$8 sps:$4 sm:$0xff]   ;;  %v3288_v0 = vld [vmem:[%s3707_s18 + $0x10] ss:$8 sps:$4 sm:$0xff]   ;;  %v3323_v19 = vld [vmem:[%s3707_s18 + $0x1c4] ss:$8 sps:$4 sm:$0xff]  }
 0x16d   : > { %v3293_v63 = vld [vmem:[%s3707_s18 + $0x114] ss:$8 sps:$4 sm:$0xff]   ;;  %v3291_v1 = vld [vmem:[%s3707_s18 + $0x110] ss:$8 sps:$4 sm:$0xff]   ;;  %v3347_v35 = vld [vmem:[%s3707_s18 + $0x184] ss:$8 sps:$4 sm:$0xff]  }
 0x16e   : > { %v3314_v14 = vld [vmem:[%s3707_s18 + $0xd4] ss:$8 sps:$4 sm:$0xff]   ;;  %v3315_v17 = vld [vmem:[%s3707_s18 + $0x1d0] ss:$8 sps:$4 sm:$0xff]   ;;  %v3342_v36 = vld [vmem:[%s3707_s18 + $0x80] ss:$8 sps:$4 sm:$0xff]  }
 0x16f   : > { %1866 = vmatpush2.bf16.msra.mxu0 %v3208_v2  ;;  %1909 = vmatpush2.bf16.msra.mxu1 %v3209_v3  ;;  %v3296_v2 = vld [vmem:[%s3707_s18 + $0x4] ss:$8 sps:$4 sm:$0xff]  }
 0x170   : > { %1867 = vmatprep.subr.bf16.mxu0 %v3210_v4  ;;  %1910 = vmatprep.subr.bf16.mxu1 %v3212_v5  ;;  %v3299_v3 = vld [vmem:[%s3707_s18 + $0x104] ss:$8 sps:$4 sm:$0xff]   ;;  %v3294_v4 = vld [vmem:[%s3707_s18] ss:$8 sps:$4 sm:$0xff]  }
 0x171   : > { %v3297_v5 = vld [vmem:[%s3707_s18 + $0x100] ss:$8 sps:$4 sm:$0xff]  }
 0x173   : > { %1868 = vmatpush2.bf16.msra.mxu0 %v3214_v6  ;;  %1911 = vmatpush2.bf16.msra.mxu1 %v3215_v7  ;;  %v3302_v6 = vld [vmem:[%s3707_s18 + $0xf4] ss:$8 sps:$4 sm:$0xff]  }
 0x174   : > { %1869 = vmatprep.subr.bf16.mxu0 %v3216_v8  ;;  %1912 = vmatprep.subr.bf16.mxu1 %v3218_v9  ;;  %v3305_v7 = vld [vmem:[%s3707_s18 + $0x1f4] ss:$8 sps:$4 sm:$0xff]   ;;  %v3300_v8 = vld [vmem:[%s3707_s18 + $0xf0] ss:$8 sps:$4 sm:$0xff]  }
 0x175   : > { %v3303_v9 = vld [vmem:[%s3707_s18 + $0x1f0] ss:$8 sps:$4 sm:$0xff]  }
 0x177   : > { %1870 = vmatpush2.bf16.msra.mxu0 %v3220_v10  ;;  %1913 = vmatpush2.bf16.msra.mxu1 %v3221_v11  ;;  %v3308_v10 = vld [vmem:[%s3707_s18 + $0xe4] ss:$8 sps:$4 sm:$0xff]  }
 0x178   : > { %1871 = vmatprep.subr.bf16.mxu0 %v3222_v12  ;;  %1914 = vmatprep.subr.bf16.mxu1 %v3224_v13  ;;  %v3311_v11 = vld [vmem:[%s3707_s18 + $0x1e4] ss:$8 sps:$4 sm:$0xff]   ;;  %v3306_v12 = vld [vmem:[%s3707_s18 + $0xe0] ss:$8 sps:$4 sm:$0xff]  }
 0x179   : > { %v3309_v13 = vld [vmem:[%s3707_s18 + $0x1e0] ss:$8 sps:$4 sm:$0xff]  }
 0x17b   : > { %1872 = vmatpush2.bf16.msra.mxu0 %v3226_v15  ;;  %1915 = vmatpush2.bf16.msra.mxu1 %v3227_v16  ;;  %v3317_v15 = vld [vmem:[%s3707_s18 + $0x1d4] ss:$8 sps:$4 sm:$0xff]   ;;  %v3312_v16 = vld [vmem:[%s3707_s18 + $0xd0] ss:$8 sps:$4 sm:$0xff]  }
 0x17c   : > { %1873 = vmatprep.subr.bf16.mxu0 %v3228_v18  ;;  %1916 = vmatprep.subr.bf16.mxu1 %v3230_v20  ;;  %v3320_v18 = vld [vmem:[%s3707_s18 + $0xc4] ss:$8 sps:$4 sm:$0xff]   ;;  %v3318_v20 = vld [vmem:[%s3707_s18 + $0xc0] ss:$8 sps:$4 sm:$0xff]  }
 0x17f   : > { %1874 = vmatpush2.bf16.msra.mxu0 %v3232_v21  ;;  %1917 = vmatpush2.bf16.msra.mxu1 %v3233_v22  ;;  %v3321_v21 = vld [vmem:[%s3707_s18 + $0x1c0] ss:$8 sps:$4 sm:$0xff]   ;;  %v3326_v22 = vld [vmem:[%s3707_s18 + $0xb4] ss:$8 sps:$4 sm:$0xff]  }
 0x180   : > { %1875 = vmatprep.subr.bf16.mxu0 %v3234_v23  ;;  %1918 = vmatprep.subr.bf16.mxu1 %v3236_v24  ;;  %v3329_v23 = vld [vmem:[%s3707_s18 + $0x1b4] ss:$8 sps:$4 sm:$0xff]   ;;  %v3324_v24 = vld [vmem:[%s3707_s18 + $0xb0] ss:$8 sps:$4 sm:$0xff]  }
 0x183   : > { %1876 = vmatpush2.bf16.msra.mxu0 %v3238_v25  ;;  %1919 = vmatpush2.bf16.msra.mxu1 %v3239_v26  ;;  %v3327_v25 = vld [vmem:[%s3707_s18 + $0x1b0] ss:$8 sps:$4 sm:$0xff]   ;;  %v3332_v26 = vld [vmem:[%s3707_s18 + $0xa4] ss:$8 sps:$4 sm:$0xff]  }
 0x184   : > { %1877 = vmatprep.subr.bf16.mxu0 %v3240_v27  ;;  %1920 = vmatprep.subr.bf16.mxu1 %v3242_v28  ;;  %v3335_v27 = vld [vmem:[%s3707_s18 + $0x1a4] ss:$8 sps:$4 sm:$0xff]   ;;  %v3330_v28 = vld [vmem:[%s3707_s18 + $0xa0] ss:$8 sps:$4 sm:$0xff]  }
 0x187   : > { %1878 = vmatpush2.bf16.msra.mxu0 %v3244_v29  ;;  %1921 = vmatpush2.bf16.msra.mxu1 %v3245_v30  ;;  %v3333_v29 = vld [vmem:[%s3707_s18 + $0x1a0] ss:$8 sps:$4 sm:$0xff]   ;;  %v3338_v30 = vld [vmem:[%s3707_s18 + $0x94] ss:$8 sps:$4 sm:$0xff]  }
 0x188   : > { %1879 = vmatprep.subr.bf16.mxu0 %v3246_v31  ;;  %1922 = vmatprep.subr.bf16.mxu1 %v3248_v32  ;;  %v3341_v31 = vld [vmem:[%s3707_s18 + $0x194] ss:$8 sps:$4 sm:$0xff]   ;;  %v3336_v32 = vld [vmem:[%s3707_s18 + $0x90] ss:$8 sps:$4 sm:$0xff]  }
 0x18b   : > { %1880 = vmatpush2.bf16.msra.mxu0 %v3250_v33  ;;  %1923 = vmatpush2.bf16.msra.mxu1 %v3251_v34  ;;  %v3339_v33 = vld [vmem:[%s3707_s18 + $0x190] ss:$8 sps:$4 sm:$0xff]   ;;  %v3344_v34 = vld [vmem:[%s3707_s18 + $0x84] ss:$8 sps:$4 sm:$0xff]  }
 0x18c   : > { %2331 = vmatprep.subr.bf16.mxu0 %v3254_v37  ;;  %2374 = vmatprep.subr.bf16.mxu1 %v3257_v38  ;;  %v3345_v37 = vld [vmem:[%s3707_s18 + $0x180] ss:$8 sps:$4 sm:$0xff]   ;;  %v1509_v38 = vlaneseq }
 0x18e   : > { %1882 = vmatmul.mubr.bf16.vlgmr.msra.gmra.mxu0 %v1441_v39  ;;  %1925 = vmatmul.mubr.bf16.vlgmr.msra.gmra.mxu1 %v1441_v39  ;;  %v1510_v39 = vshrl.u32 %v1509_v38, 7 }
 0x18f   : > { %2332 = vmatpush1.bf16.msra.mxu0 %v3252_v40  ;;  %2375 = vmatpush1.bf16.msra.mxu1 %v3255_v41 }
 0x190   : > { %2333 = vmatprep.subr.bf16.mxu0 %v3260_v42  ;;  %2376 = vmatprep.subr.bf16.mxu1 %v3263_v43  ;;  %v1515_v40 = vsub.s32 1, %v1510_v39  ;;  %v1523_v41 = vsub.s32 3, %v1510_v39  ;;  %v1511_v42 = vsub.s32 0, %v1510_v39  ;;  %v1519_v43 = vsub.s32 2, %v1510_v39 }
 0x193   : > { %2334 = vmatpush1.bf16.msra.mxu0 %v3258_v44  ;;  %2377 = vmatpush1.bf16.msra.mxu1 %v3261_v45  ;;  %v1507_v44 = vld [vmem:[%s3966_s11] sm:$0xf] }
 0x194   : > { %2335 = vmatprep.subr.bf16.mxu0 %v3266_v46  ;;  %2378 = vmatprep.subr.bf16.mxu1 %v3269_v47  ;;  %v1516_v47 = vrot.slane %v1507_v44, %v1515_v40 }
 0x197   : > { %2336 = vmatpush1.bf16.msra.mxu0 %v3264_v48  ;;  %2379 = vmatpush1.bf16.msra.mxu1 %v3267_v49  ;;  %v1524_v48 = vrot.slane %v1507_v44, %v1523_v41  ;;  %v1512_v49 = vrot.slane %v1507_v44, %v1511_v42 }
 0x198   : > { %2337 = vmatprep.subr.bf16.mxu0 %v3272_v50  ;;  %2380 = vmatprep.subr.bf16.mxu1 %v3275_v51  ;;  %v1520_v50 = vrot.slane %v1507_v44, %v1519_v43 }
 0x19b   : > { %2338 = vmatpush1.bf16.msra.mxu0 %v3270_v52  ;;  %2381 = vmatpush1.bf16.msra.mxu1 %v3273_v53 }
 0x19c   : > { %2339 = vmatprep.subr.bf16.mxu0 %v3278_v54  ;;  %2382 = vmatprep.subr.bf16.mxu1 %v3281_v55 }
 0x19f   : > { %2340 = vmatpush1.bf16.msra.mxu0 %v3276_v56  ;;  %2383 = vmatpush1.bf16.msra.mxu1 %v3279_v57 }
 0x1a0   : > { %2341 = vmatprep.subr.bf16.mxu0 %v3284_v58  ;;  %2384 = vmatprep.subr.bf16.mxu1 %v3287_v59 }
 0x1a3   : > { %2342 = vmatpush1.bf16.msra.mxu0 %v3282_v60  ;;  %2385 = vmatpush1.bf16.msra.mxu1 %v3285_v61 }
 0x1a4   : > { %2343 = vmatprep.subr.bf16.mxu0 %v3290_v62  ;;  %2386 = vmatprep.subr.bf16.mxu1 %v3293_v63 }
 0x1a7   : > { %2344 = vmatpush1.bf16.msra.mxu0 %v3288_v0  ;;  %2387 = vmatpush1.bf16.msra.mxu1 %v3291_v1 }
 0x1a8   : > { %2345 = vmatprep.subr.bf16.mxu0 %v3296_v2  ;;  %2388 = vmatprep.subr.bf16.mxu1 %v3299_v3 }
 0x1ab   : > { %2346 = vmatpush1.bf16.msra.mxu0 %v3294_v4  ;;  %2389 = vmatpush1.bf16.msra.mxu1 %v3297_v5 }
 0x1ac   : > { %2347 = vmatprep.subr.bf16.mxu0 %v3302_v6  ;;  %2390 = vmatprep.subr.bf16.mxu1 %v3305_v7 }
 0x1af   : > { %2348 = vmatpush2.bf16.msra.mxu0 %v3300_v8  ;;  %2391 = vmatpush2.bf16.msra.mxu1 %v3303_v9 }
 0x1b0   : > { %2349 = vmatprep.subr.bf16.mxu0 %v3308_v10  ;;  %2392 = vmatprep.subr.bf16.mxu1 %v3311_v11 }
 0x1b3   : > { %2350 = vmatpush2.bf16.msra.mxu0 %v3306_v12  ;;  %2393 = vmatpush2.bf16.msra.mxu1 %v3309_v13 }
 0x1b4   : > { %2351 = vmatprep.subr.bf16.mxu0 %v3314_v14  ;;  %2394 = vmatprep.subr.bf16.mxu1 %v3317_v15 }
 0x1b7   : > { %2352 = vmatpush2.bf16.msra.mxu0 %v3312_v16  ;;  %2395 = vmatpush2.bf16.msra.mxu1 %v3315_v17 }
 0x1b8   : > { %2353 = vmatprep.subr.bf16.mxu0 %v3320_v18  ;;  %2396 = vmatprep.subr.bf16.mxu1 %v3323_v19 }
 0x1bb   : > { %2354 = vmatpush2.bf16.msra.mxu0 %v3318_v20  ;;  %2397 = vmatpush2.bf16.msra.mxu1 %v3321_v21 }
 0x1bc   : > { %2355 = vmatprep.subr.bf16.mxu0 %v3326_v22  ;;  %2398 = vmatprep.subr.bf16.mxu1 %v3329_v23 }
 0x1bf   : > { %2356 = vmatpush2.bf16.msra.mxu0 %v3324_v24  ;;  %2399 = vmatpush2.bf16.msra.mxu1 %v3327_v25 }
 0x1c0   : > { %2357 = vmatprep.subr.bf16.mxu0 %v3332_v26  ;;  %2400 = vmatprep.subr.bf16.mxu1 %v3335_v27 }
 0x1c3   : > { %2358 = vmatpush2.bf16.msra.mxu0 %v3330_v28  ;;  %2401 = vmatpush2.bf16.msra.mxu1 %v3333_v29 }
 0x1c4   : > { %2359 = vmatprep.subr.bf16.mxu0 %v3338_v30  ;;  %2402 = vmatprep.subr.bf16.mxu1 %v3341_v31 }
 0x1c7   : > { %2360 = vmatpush2.bf16.msra.mxu0 %v3336_v32  ;;  %2403 = vmatpush2.bf16.msra.mxu1 %v3339_v33 }
 0x1c8   : > { %2361 = vmatprep.subr.bf16.mxu0 %v3344_v34  ;;  %2404 = vmatprep.subr.bf16.mxu1 %v3347_v35 }
 0x1cb   : > { %2362 = vmatpush2.bf16.msra.mxu0 %v3342_v36  ;;  %2405 = vmatpush2.bf16.msra.mxu1 %v3345_v37 }
 0x24e   : > { %v1883_v45 = vpop.f32.mrf.mxu0  ;;  %v1926_v46 = vpop.f32.mrf.mxu1 }
 0x24f   : > { %v1884_v59 = vadd.f32 %v1883_v45, %v1512_v49  ;;  %v1927_v60 = vadd.f32 %v1926_v46, %v1520_v50 }
 0x250   : > { %v1885_v51 = vpop.f32.mrf.mxu0  ;;  %v1928_v52 = vpop.f32.mrf.mxu1 }
 0x251   : > { %v1886_v55 = vadd.f32 %v1885_v51, %v1516_v47  ;;  %v1929_v56 = vadd.f32 %v1928_v52, %v1524_v48  ;;  %v1935_v7 = vmax.f32 %v1884_v59, 0.0  ;;  %v1937_v8 = vmax.f32 %v1927_v60, 0.0 }
 0x252   : > { %v1887_v53 = vpop.f32.mrf.mxu0  ;;  %v1930_v54 = vpop.f32.mrf.mxu1 }
 0x253   : > { %v1888_v57 = vadd.f32 %v1887_v53, %v1512_v49  ;;  %v1931_v58 = vadd.f32 %v1930_v54, %v1520_v50  ;;  %v1936_v3 = vmax.f32 %v1886_v55, 0.0  ;;  %v1938_v4 = vmax.f32 %v1929_v56, 0.0 }
 0x254   : > { %v1889_v61 = vpop.f32.mrf.mxu0  ;;  %v1932_v62 = vpop.f32.mrf.mxu1 }
 0x255   : > { %v1890_v63 = vadd.f32 %v1889_v61, %v1516_v47  ;;  %v1933_v0 = vadd.f32 %v1932_v62, %v1524_v48  ;;  %v1939_v1 = vmax.f32 %v1888_v57, 0.0  ;;  %v1941_v2 = vmax.f32 %v1931_v58, 0.0 }
 0x257   : > { %v1940_v5 = vmax.f32 %v1890_v63, 0.0  ;;  %v1942_v6 = vmax.f32 %v1933_v0, 0.0  ;;  %v1943_v11 = vpack.c.bf16 %v1939_v1, %v1935_v7  ;;  %v1945_v12 = vpack.c.bf16 %v1941_v2, %v1937_v8 }
 0x259   : > { %v1944_v9 = vpack.c.bf16 %v1940_v5, %v1936_v3  ;;  %v1946_v10 = vpack.c.bf16 %v1942_v6, %v1938_v4 }
 0x25b   : > { %2363 = vmatprep.mubr.bf16.mxu0 %v1944_v9  ;;  %2406 = vmatprep.mubr.bf16.mxu1 %v1946_v10 }
 0x25c   : > { %2364 = vmatmul.mubr.bf16.vlgmr.msra.gmra.mxu0 %v1943_v11  ;;  %2407 = vmatmul.mubr.bf16.vlgmr.msra.gmra.mxu1 %v1945_v12 }
 0x31c   : > { %v2365_v13 = vpop.f32.mrf.mxu0  ;;  %v2408_v14 = vpop.f32.mrf.mxu1 }
 0x31d   : > { %v2409_v15 = vadd.f32 %v2408_v14, %v2365_v13 }
 0x31e   : > { %v2367_v16 = vpop.f32.mrf.mxu0  ;;  %v2410_v17 = vpop.f32.mrf.mxu1 }
 0x31f   : > { %v2411_v18 = vadd.f32 %v2410_v17, %v2367_v16  ;;  %2419 = sbr.rel (%p2932_p4) target bundleno = 811 (0x32b), region = 547 }
 0x320   : > { %v2369_v19 = vpop.f32.mrf.mxu0  ;;  %v2412_v20 = vpop.f32.mrf.mxu1 }
 0x321   : > { %v2413_v21 = vadd.f32 %v2412_v20, %v2369_v19 }
 0x322   : > { %v2371_v22 = vpop.f32.mrf.mxu0  ;;  %v2414_v23 = vpop.f32.mrf.mxu1 }
 0x323   : > { %v2415_v24 = vadd.f32 %v2414_v23, %v2371_v22 }
 0x324   : > { %v2420_v25 = vld [vmem:[%s3697_s25] sm:$0x3] }
 0x325   : > { %v2425_v26 = vrot.slane %v2420_v25, %v1511_v42  ;;  %v2429_v27 = vrot.slane %v2420_v25, %v1515_v40 }
 0x327   : > { %v2432_v28 = vadd.f32 %v2425_v26, %v2409_v15  ;;  %v2433_v29 = vadd.f32 %v2429_v27, %v2411_v18  ;;  %v2434_v30 = vadd.f32 %v2425_v26, %v2413_v21  ;;  %v2435_v31 = vadd.f32 %v2429_v27, %v2415_v24 }
 0x329   : > { %2436 = vst [vmem:[%s3702_s13] sm:$0xff] %v2432_v28  ;;  %2437 = vst [vmem:[%s3702_s13 + $0x8] sm:$0xff] %v2433_v29 }
 0x32a   : > { %2438 = vst [vmem:[%s3702_s13 + $0x10] sm:$0xff] %v2434_v30  ;;  %2439 = vst [vmem:[%s3702_s13 + $0x18] sm:$0xff] %v2435_v31 }
 0x32b PF: > { %p3079_p5 = scmp.eq.s32.totalorder %s3432_s28, 0 }
 0x32d   : > { %2443 = sbr.rel (%p3079_p5) target bundleno = 823 (0x337), region = 551 }
 0x332   : > { %v2444_v32 = vld [vmem:[%s3702_s13] sm:$0xff]  ;;  %v2445_v33 = vld [vmem:[%s3702_s13 + $0x8] sm:$0xff]  ;;  %v2446_v34 = vld [vmem:[%s3702_s13 + $0x10] sm:$0xff] }
 0x333   : > { %v2448_v35 = vadd.f32 %v2444_v32, %v2409_v15  ;;  %v2449_v36 = vadd.f32 %v2445_v33, %v2411_v18  ;;  %v2450_v37 = vadd.f32 %v2446_v34, %v2413_v21  ;;  %v2447_v38 = vld [vmem:[%s3702_s13 + $0x18] sm:$0xff] }
 0x334   : > { %v2451_v39 = vadd.f32 %v2447_v38, %v2415_v24 }
 0x335   : > { %2452 = vst [vmem:[%s3702_s13] sm:$0xff] %v2448_v35  ;;  %2453 = vst [vmem:[%s3702_s13 + $0x8] sm:$0xff] %v2449_v36 }
 0x336   : > { %2454 = vst [vmem:[%s3702_s13 + $0x10] sm:$0xff] %v2450_v37  ;;  %2455 = vst [vmem:[%s3702_s13 + $0x18] sm:$0xff] %v2451_v39 }
 0x337 PF: > { %s22_s7 = sadd.s32 1, %s3448_s7   ;;  %s3967_s0 = sld [smem:[#allocation40_spill]] }
 0x338   : > { %p19_p6 = scmp.ge.s32.totalorder %s22_s7, 18   ;;  %s3968_s16 = sld [smem:[#allocation41_spill]] }
 0x339   : > { %s3969_s30 = sld [smem:[#allocation42_spill]]  ;;  %s3970_s26 = smov %s3428_s27 }
 0x33a   : > { %s3971_s27 = smov %s3540_s14  ;;  %s3972_s28 = smov %s3440_s29 }
 0x33b   :  { %21 = sbr.rel (!%p19_p6) target bundleno = 19 (0x13), region = 816 }
 0x33e   : > { %s3973_s29 = smov %s3968_s16 }
 0x340   :  { %2477 = vsyncmov [#allocation3] }
 0x343   :  { %s2478_s25 = vpop.sfrf %2477 }
 0x344   :  { %p3082_p7 = scmp.ne.s32.totalorder %s2478_s25, 0 }
 0x346   :  { %2482 = shalt.err (%p3082_p7)  }
 0x347   :  { %2484 = vsyncmov [#allocation3 + $0x1] }
 0x34a   :  { %s2485_s13 = vpop.sfrf %2484 }
 0x34b   :  { %p3083_p8 = scmp.ne.s32.totalorder %s2485_s13, 0 }
 0x34d   :  { %2489 = shalt.err (%p3083_p8)  }
 0x34e   :  { %2491 = vsyncmov [#allocation3 + $0x2] }
 0x351   :  { %s2492_s14 = vpop.sfrf %2491 }
 0x352   :  { %p3084_p9 = scmp.ne.s32.totalorder %s2492_s14, 0 }
 0x354   :  { %2496 = shalt.err (%p3084_p9)  }
 0x355   :  { %2498 = vsyncmov [#allocation3 + $0x3] }
 0x358   :  { %s2499_s18 = vpop.sfrf %2498 }
 0x359   :  { %p3085_p10 = scmp.ne.s32.totalorder %s2499_s18, 0 }
 0x35b   :  { %2503 = shalt.err (%p3085_p10)  }
 0x35c   :  { %2505 = vsyncmov [#allocation3 + $0x4] }
 0x35f   :  { %s2506_s22 = vpop.sfrf %2505 }
 0x360   :  { %p3086_p11 = scmp.ne.s32.totalorder %s2506_s22, 0 }
 0x362   :  { %2510 = shalt.err (%p3086_p11)  }
 0x363   :  { %2512 = vsyncmov [#allocation3 + $0x5] }
 0x366   :  { %s2513_s1 = vpop.sfrf %2512 }
 0x367   :  { %p3087_p12 = scmp.ne.s32.totalorder %s2513_s1, 0 }
 0x369   :  { %2517 = shalt.err (%p3087_p12)  }
 0x36a   :  { %2519 = vsyncmov [#allocation3 + $0x6] }
 0x36d   :  { %s2520_s3 = vpop.sfrf %2519 }
 0x36e   :  { %p3088_p13 = scmp.ne.s32.totalorder %s2520_s3, 0 }
 0x370   :  { %2524 = shalt.err (%p3088_p13)  }
 0x371   :  { %2526 = vsyncmov [#allocation3 + $0x7] }
 0x374   :  { %s2527_s4 = vpop.sfrf %2526 }
 0x375   :  { %p3089_p0 = scmp.ne.s32.totalorder %s2527_s4, 0 }
 0x377   :  { %2531 = shalt.err (%p3089_p0)  }
 0x378   :  { %2533 = vsyncmov [#allocation3 + $0x8] }
 0x37b   :  { %s2534_s5 = vpop.sfrf %2533 }
 0x37c   :  { %p3090_p1 = scmp.ne.s32.totalorder %s2534_s5, 0 }
 0x37e   :  { %2538 = shalt.err (%p3090_p1)  }
 0x37f   :  { %2540 = vsyncmov [#allocation3 + $0x9] }
 0x382   :  { %s2541_s6 = vpop.sfrf %2540 }
 0x383   :  { %p3091_p2 = scmp.ne.s32.totalorder %s2541_s6, 0 }
 0x385   :  { %2545 = shalt.err (%p3091_p2)  }
 0x386   :  { %2547 = vsyncmov [#allocation3 + $0xa] }
 0x389   :  { %s2548_s27 = vpop.sfrf %2547 }
 0x38a   :  { %p3092_p3 = scmp.ne.s32.totalorder %s2548_s27, 0 }
 0x38c   :  { %2552 = shalt.err (%p3092_p3)  }
 0x38d   :  { %2554 = vsyncmov [#allocation3 + $0xb] }
 0x390   :  { %s2555_s28 = vpop.sfrf %2554 }
 0x391   :  { %p3093_p4 = scmp.ne.s32.totalorder %s2555_s28, 0 }
 0x393   :  { %2559 = shalt.err (%p3093_p4)  }
 0x394   :  { %2561 = vsyncmov [#allocation3 + $0xc] }
 0x397   :  { %s2562_s29 = vpop.sfrf %2561 }
 0x398   :  { %p3094_p5 = scmp.ne.s32.totalorder %s2562_s29, 0 }
 0x39a   :  { %2566 = shalt.err (%p3094_p5)  }
 0x39b   :  { %2568 = vsyncmov [#allocation3 + $0xd] }
 0x39e   :  { %s2569_s7 = vpop.sfrf %2568 }
 0x39f   :  { %p3095_p6 = scmp.ne.s32.totalorder %s2569_s7, 0 }
 0x3a1   :  { %2573 = shalt.err (%p3095_p6)  }
 0x3a2   :  { %2575 = vsyncmov [#allocation3 + $0xe] }
 0x3a5   :  { %s2576_s0 = vpop.sfrf %2575 }
 0x3a6   :  { %p3096_p7 = scmp.ne.s32.totalorder %s2576_s0, 0 }
 0x3a8   :  { %2580 = shalt.err (%p3096_p7)  }
 0x3a9   :  { %2582 = vsyncmov [#allocation3 + $0xf] }
 0x3ac   :  { %s2583_s23 = vpop.sfrf %2582 }
 0x3ad   :  { %p3097_p8 = scmp.ne.s32.totalorder %s2583_s23, 0 }
 0x3af   :  { %2587 = shalt.err (%p3097_p8)  }

</bundles_post_ra>
